<compile_context>
chip_gen: v7x
topology: tpu7x:2x2x1
jax: 0.10.0
libtpu: 0.0.40
codegen_flags: <defaults>
</compile_context>

<pallas_src>
import functools

import jax
import jax.numpy as jnp
from jax.experimental import pallas as pl
from jax.experimental.pallas import tpu as pltpu


_VMEM_LIMIT = 32 * 1024 * 1024          # safe on v5e(16 MiB default)/v6e/v7x


def _round_up(v, m):
    return ((v + m - 1) // m) * m


def _pick_tm(M, tm):
    """M-tile: biggest tile <= tm but always >= 2 grid steps (v7x megacore)."""
    if M <= 8:
        return M
    tiles = max(2, -(-M // tm))
    return min(M, _round_up(-(-M // tiles), 8))


# --------------------------------------------------------------------------
# QKV projection: one x tile, three resident weights, three bf16 outputs.
# --------------------------------------------------------------------------
def _qkv_kernel(x_ref, wq_ref, wk_ref, wv_ref, q_ref, k_ref, v_ref):
    x = x_ref[...]
    q_ref[...] = jnp.dot(x, wq_ref[...],
                         preferred_element_type=jnp.float32).astype(q_ref.dtype)
    k_ref[...] = jnp.dot(x, wk_ref[...],
                         preferred_element_type=jnp.float32).astype(k_ref.dtype)
    v_ref[...] = jnp.dot(x, wv_ref[...],
                         preferred_element_type=jnp.float32).astype(v_ref.dtype)


def qkv_pallas(x, wq, wk, wv, *, tm=512):
    M, K = x.shape
    N = wq.shape[1]
    TM = _pick_tm(M, tm)
    grid = (pl.cdiv(M, TM),)
    x_spec = pl.BlockSpec((TM, K), lambda i: (i, 0))
    w_spec = pl.BlockSpec((K, N), lambda i: (0, 0))      # resident across grid
    o_spec = pl.BlockSpec((TM, N), lambda i: (i, 0))
    out_sd = jax.ShapeDtypeStruct((M, N), jnp.bfloat16)
    return pl.pallas_call(
        _qkv_kernel,
        out_shape=(out_sd, out_sd, out_sd),
        grid=grid,
        in_specs=[x_spec, w_spec, w_spec, w_spec],
        out_specs=(o_spec, o_spec, o_spec),
        compiler_params=pltpu.CompilerParams(
            dimension_semantics=("parallel",),
            vmem_limit_bytes=_VMEM_LIMIT),
    )(x, wq, wk, wv)


# --------------------------------------------------------------------------
# Output projection with the residual add fused in: y = (x1 + x2) @ W + b.
# --------------------------------------------------------------------------
def _proj_add_kernel(x1_ref, x2_ref, w_ref, b_ref, o_ref):
    xs = x1_ref[...].astype(jnp.float32) + x2_ref[...].astype(jnp.float32)
    acc = jnp.dot(xs.astype(w_ref.dtype), w_ref[...],
                  preferred_element_type=jnp.float32)
    o_ref[...] = (acc + b_ref[...].astype(jnp.float32)).astype(o_ref.dtype)


def proj_add_pallas(x1, x2, w, b, *, tm=512):
    M, K = x1.shape
    N = w.shape[1]
    TM = _pick_tm(M, tm)
    grid = (pl.cdiv(M, TM),)
    return pl.pallas_call(
        _proj_add_kernel,
        out_shape=jax.ShapeDtypeStruct((M, N), jnp.float32),
        grid=grid,
        in_specs=[pl.BlockSpec((TM, K), lambda i: (i, 0)),
                  pl.BlockSpec((TM, K), lambda i: (i, 0)),
                  pl.BlockSpec((K, N), lambda i: (0, 0)),
                  pl.BlockSpec((1, N), lambda i: (0, 0))],
        out_specs=pl.BlockSpec((TM, N), lambda i: (i, 0)),
        compiler_params=pltpu.CompilerParams(
            dimension_semantics=("parallel",),
            vmem_limit_bytes=_VMEM_LIMIT),
    )(x1, x2, w, b)


# --------------------------------------------------------------------------
# Agent attention.  Inputs are head-merged / lane-dense:
#   q, k, v : (b, n, c) bf16      agent : (b, A, c) bf16
#   pos_bias, agent_bias_t : (nh, A, n) bf16  (agent bias pre-transposed)
# Grid: (batch, query tiles).  Stage 1 (agent_v) runs once per batch into a
# VMEM scratch; stage 2 runs per query tile with (A, TQ) transposed scores so
# every elementwise op is lane-dense over the query axis.
# --------------------------------------------------------------------------
def _agent_attn_kernel(q_ref, k_ref, v_ref, a_ref, pb_ref, ab_ref,
                       o_ref, agv_ref, *, num_heads, scale, approx):
    nh = num_heads
    c = q_ref.shape[2]
    d = c // nh

    def rcp(x):
        return pl.reciprocal(x, approx=True) if approx else 1.0 / x

    a2 = a_ref[0]                                        # (A, c) bf16

    # ---- stage 1 (once per batch): agent tokens attend to keys -------------
    @pl.when(pl.program_id(1) == 0)
    def _():
        k2 = k_ref[0]                                    # (n, c)
        v2 = v_ref[0]                                    # (n, c)
        for h in range(nh):                              # static unroll
            sl = slice(h * d, (h + 1) * d)
            a_h, k_h, v_h = a2[:, sl], k2[:, sl], v2[:, sl]
            s1 = jnp.dot(a_h, k_h.T,
                         preferred_element_type=jnp.float32)        # (A, n)
            s1 = s1 * scale + pb_ref[h].astype(jnp.float32)
            s1 = s1 - jnp.max(s1, axis=-1, keepdims=True)
            e1 = jnp.exp(s1)
            attn1 = e1 * rcp(jnp.sum(e1, axis=-1, keepdims=True))
            agv_ref[h] = jnp.dot(attn1.astype(v_h.dtype), v_h,
                                 preferred_element_type=jnp.float32)  # (A, d)

    # ---- stage 2 (per query tile): queries attend to agent tokens ----------
    q2 = q_ref[0]                                        # (TQ, c)
    for h in range(nh):
        sl = slice(h * d, (h + 1) * d)
        q_h, a_h = q2[:, sl], a2[:, sl]
        # transposed scores: (A, TQ) -> exp/softmax math is lane-dense over n
        s2t = jnp.dot(a_h, q_h.T,
                      preferred_element_type=jnp.float32)
        s2t = s2t * scale + ab_ref[h].astype(jnp.float32)
        s2t = s2t - jnp.max(s2t, axis=0, keepdims=True)  # softmax over agents
        e2 = jnp.exp(s2t)
        attn2t = e2 * rcp(jnp.sum(e2, axis=0, keepdims=True))
        out_h = jnp.dot(attn2t.astype(jnp.bfloat16).T,
                        agv_ref[h].astype(jnp.bfloat16),
                        preferred_element_type=jnp.float32)          # (TQ, d)
        # head merge via static lane-slice stores (== torch transpose+reshape)
        o_ref[0, :, sl] = out_h.astype(o_ref.dtype)


def agent_attention_pallas(q, k, v, agent, pos_bias, agent_bias_t, scale, *,
                           num_heads, approx=True):
    b, n, c = q.shape
    A = agent.shape[1]
    nh = num_heads
    d = c // nh
    TQ = n if n <= 256 else 256          # 256 is a multiple of 128 (lane tile)
    grid = (b, pl.cdiv(n, TQ))
    kern = functools.partial(_agent_attn_kernel, num_heads=nh, scale=scale,
                             approx=approx)
    return pl.pallas_call(
        kern,
        out_shape=jax.ShapeDtypeStruct((b, n, c), jnp.bfloat16),
        grid=grid,
        in_specs=[
            pl.BlockSpec((1, TQ, c), lambda bi, qi: (bi, qi, 0)),
            pl.BlockSpec((1, n, c), lambda bi, qi: (bi, 0, 0)),
            pl.BlockSpec((1, n, c), lambda bi, qi: (bi, 0, 0)),
            pl.BlockSpec((1, A, c), lambda bi, qi: (bi, 0, 0)),
            # bias blocks: constant / qi-only index maps -> stay resident
            pl.BlockSpec((nh, A, n), lambda bi, qi: (0, 0, 0)),
            pl.BlockSpec((nh, A, TQ), lambda bi, qi: (0, 0, qi)),
        ],
        out_specs=pl.BlockSpec((1, TQ, c), lambda bi, qi: (bi, qi, 0)),
        scratch_shapes=[pltpu.VMEM((nh, A, d), jnp.float32)],   # agent_v
        compiler_params=pltpu.CompilerParams(
            dimension_semantics=("parallel", "arbitrary"),
            vmem_limit_bytes=_VMEM_LIMIT),
    )(q, k, v, agent, pos_bias, agent_bias_t)


# --------------------------------------------------------------------------
# Depthwise 3x3 conv (groups = dim), channels-last, in-VMEM halo handling.
# --------------------------------------------------------------------------
def _dwc_kernel(x_ref, w_ref, b_ref, o_ref, xp_ref, *, ksize):
    Hc, Wc = o_ref.shape[1], o_ref.shape[2]
    p = ksize // 2
    # zero-init halo scratch, copy the unpadded tile into the interior
    xp_ref[...] = jnp.zeros_like(xp_ref)
    xp_ref[p:p + Hc, p:p + Wc, :] = x_ref[0].astype(jnp.float32)
    w = w_ref[...].astype(jnp.float32)            # (k, k, C)
    bias = b_ref[0].astype(jnp.float32)           # (C,)
    # hoist the W-axis (sublane) shifted views; reuse across the kh loop
    xw = [xp_ref[:, kw:kw + Wc, :] for kw in range(ksize)]
    acc = jnp.zeros(o_ref.shape[1:], jnp.float32)
    for kh in range(ksize):
        for kw in range(ksize):
            acc = acc + xw[kw][kh:kh + Hc] * w[kh, kw][None, None, :]
    o_ref[0] = (acc + bias[None, None, :]).astype(o_ref.dtype)


def dwc_pallas(x_img, w, bias, ksize):
    b, H, W, C = x_img.shape
    p = ksize // 2
    kern = functools.partial(_dwc_kernel, ksize=ksize)
    return pl.pallas_call(
        kern,
        out_shape=jax.ShapeDtypeStruct((b, H, W, C), jnp.bfloat16),
        grid=(b,),
        in_specs=[
            pl.BlockSpec((1, H, W, C), lambda i: (i, 0, 0, 0)),
            pl.BlockSpec((ksize, ksize, C), lambda i: (0, 0, 0)),
            pl.BlockSpec((1, C), lambda i: (0, 0)),
        ],
        out_specs=pl.BlockSpec((1, H, W, C), lambda i: (i, 0, 0, 0)),
        scratch_shapes=[pltpu.VMEM((H + 2 * p, W + 2 * p, C), jnp.float32)],
        compiler_params=pltpu.CompilerParams(
            dimension_semantics=("parallel",),
            vmem_limit_bytes=_VMEM_LIMIT),
    )(x_img, w, bias)


# --------------------------------------------------------------------------
# Plain-JAX glue: bilinear resize (torch interpolate, align_corners=False),
# adaptive average pooling, one-time bias preprocessing.
# --------------------------------------------------------------------------
def _interp_coords(out_size, in_size):
    if out_size == in_size:
        idx = jnp.arange(out_size)
        return idx, idx, jnp.ones((out_size,), jnp.float32), jnp.zeros(
            (out_size,), jnp.float32)
    scale = in_size / out_size
    src = (jnp.arange(out_size, dtype=jnp.float32) + 0.5) * scale - 0.5
    src = jnp.maximum(src, 0.0)
    i0 = jnp.minimum(jnp.floor(src).astype(jnp.int32), in_size - 1)
    i1 = jnp.minimum(i0 + 1, in_size - 1)
    frac = src - i0.astype(jnp.float32)
    return i0, i1, 1.0 - frac, frac


def bilinear_resize(x, out_h, out_w):
    H, W = x.shape[-2], x.shape[-1]
    h0, h1, wh0, wh1 = _interp_coords(out_h, H)
    w0, w1, ww0, ww1 = _interp_coords(out_w, W)
    xh = x[..., h0, :] * wh0[:, None] + x[..., h1, :] * wh1[:, None]
    return xh[..., :, w0] * ww0 + xh[..., :, w1] * ww1


def adaptive_avg_pool(x, oh, ow):
    # x: (b, H, W, c) channels-last -> (b, oh, ow, c); f32 accumulation.
    b, H, W, c = x.shape
    if H % oh == 0 and W % ow == 0:
        return x.reshape(b, oh, H // oh, ow, W // ow, c).mean(
            axis=(2, 4), dtype=jnp.float32)
    rows = []
    for i in range(oh):
        hs, he = (i * H) // oh, -(-((i + 1) * H) // oh)
        cols = []
        for j in range(ow):
            ws, we = (j * W) // ow, -(-((j + 1) * W) // ow)
            cols.append(jnp.mean(x[:, hs:he, ws:we, :], axis=(1, 2),
                                 dtype=jnp.float32))
        rows.append(jnp.stack(cols, axis=1))
    return jnp.stack(rows, axis=1)


def compute_biases(p, num_heads, H, W, pool_size, da_shape):
    n = H * W
    da_h, da_w = da_shape
    A = da_h * da_w

    def to_agent_axis(bias_hw):           # (nh, agent_num, H, W) -> (nh, n, A)
        t = bias_hw.reshape(num_heads, pool_size, pool_size, n)
        t = t.transpose(0, 3, 1, 2)
        t = bilinear_resize(t, da_h, da_w)
        return t.reshape(num_heads, n, A)

    pb1 = to_agent_axis(bilinear_resize(p["an_bias"], H, W)).transpose(0, 2, 1)
    pb2_src = (p["ah_bias"] + p["aw_bias"])[0]
    pb2 = to_agent_axis(bilinear_resize(pb2_src, H, W)).transpose(0, 2, 1)
    pos_bias = pb1 + pb2                                 # (nh, A, n)

    ab1 = to_agent_axis(bilinear_resize(p["na_bias"], H, W))
    ab2_src = (p["ha_bias"] + p["wa_bias"])[0].transpose(0, 3, 1, 2)
    ab2 = to_agent_axis(bilinear_resize(ab2_src, H, W))
    agent_bias = ab1 + ab2                               # (nh, n, A)
    return pos_bias, agent_bias


def prepare_inference_params(p, *, num_heads, num_patches, agent_num,
                             downstream_agent_shape):
    """One-time, input-independent preprocessing (weights + biases)."""
    c = p["Wq"].shape[0]
    H = W = int(num_patches ** 0.5)
    pool_size = int(agent_num ** 0.5)
    pos_bias, agent_bias = compute_biases(p, num_heads, H, W, pool_size,
                                          downstream_agent_shape)
    bf16 = jnp.bfloat16
    return {
        "wq": p["Wq"].astype(bf16),
        "wk": p["Wkv"][:, :c].astype(bf16),
        "wv": p["Wkv"][:, c:].astype(bf16),
        "wproj": p["Wproj"].astype(bf16),
        "bproj": p["bproj"].astype(jnp.float32).reshape(1, c),
        "dwc_w": p["dwc_w"].astype(jnp.float32),
        "dwc_b": p["dwc_b"].astype(jnp.float32).reshape(1, c),
        "pos_bias": pos_bias.astype(bf16),                       # (nh, A, n)
        "agent_bias_t": agent_bias.transpose(0, 2, 1).astype(bf16),  # (nh, A, n)
    }


# --------------------------------------------------------------------------
# Forward pass (sr_ratio == 1, dropout == 0)
# --------------------------------------------------------------------------
def agent_attention_forward(x, ip, *, num_heads, downstream_agent_shape,
                            kernel_size, scale_exp=-0.5, approx_softmax=True):
    b, n, c = x.shape
    head_dim = c // num_heads
    scale = float(head_dim) ** scale_exp
    H = W = int(n ** 0.5)
    da_h, da_w = downstream_agent_shape
    A = da_h * da_w
    bf16 = jnp.bfloat16

    # q / k / v projections (three bf16 outputs, single x pass).
    q, k, v = qkv_pallas(x.reshape(b * n, c).astype(bf16),
                         ip["wq"], ip["wk"], ip["wv"])           # (b*n, c) bf16

    # agent tokens: adaptive average pool of q over the spatial grid.
    agent = adaptive_avg_pool(q.reshape(b, H, W, c), da_h, da_w)
    agent = agent.reshape(b, A, c).astype(bf16)

    # two-stage agent attention, head-merged lane-dense output (b, n, c) bf16.
    x_attn = agent_attention_pallas(
        q.reshape(b, n, c), k.reshape(b, n, c), v.reshape(b, n, c), agent,
        ip["pos_bias"], ip["agent_bias_t"], scale,
        num_heads=num_heads, approx=approx_softmax)

    # depthwise conv on V (torch runs it in NCHW; identical math in NHWC).
    dwc_out = dwc_pallas(v.reshape(b, H, W, c), ip["dwc_w"], ip["dwc_b"],
                         kernel_size)                            # (b,H,W,c) bf16

    # output projection with the residual add fused in.
    out = proj_add_pallas(x_attn.reshape(b * n, c), dwc_out.reshape(b * n, c),
                          ip["wproj"], ip["bproj"])              # (b*n, c) f32
    return out.reshape(b, n, c)


# --------------------------------------------------------------------------
# Deterministic parameter init (synthetic; shapes follow the module __init__)
# --------------------------------------------------------------------------
def init_params(key, dim, num_heads, num_patches, agent_num, kernel_size):
    keys = jax.random.split(key, 12)
    Hs = int(num_patches ** 0.5)      # window_size, sr_ratio == 1
    std = 0.02
    return {
        "Wq":    jax.random.normal(keys[0], (dim, dim), jnp.float32) * std,
        "Wkv":   jax.random.normal(keys[1], (dim, 2 * dim), jnp.float32) * std,
        "Wproj": jax.random.normal(keys[2], (dim, dim), jnp.float32) * std,
        "bproj": jax.random.normal(keys[3], (dim,), jnp.float32) * std,
        "dwc_w": jax.random.normal(keys[4], (kernel_size, kernel_size, dim),
                                   jnp.float32) * std,
        "dwc_b": jax.random.normal(keys[5], (dim,), jnp.float32) * std,
        "an_bias": jax.random.normal(keys[6], (num_heads, agent_num, 7, 7),
                                     jnp.float32) * std,
        "na_bias": jax.random.normal(keys[7], (num_heads, agent_num, 7, 7),
                                     jnp.float32) * std,
        "ah_bias": jax.random.normal(keys[8], (1, num_heads, agent_num, Hs, 1),
                                     jnp.float32) * std,
        "aw_bias": jax.random.normal(keys[9], (1, num_heads, agent_num, 1, Hs),
                                     jnp.float32) * std,
        "ha_bias": jax.random.normal(keys[10], (1, num_heads, Hs, 1, agent_num),
                                     jnp.float32) * std,
        "wa_bias": jax.random.normal(keys[11], (1, num_heads, 1, Hs, agent_num),
                                     jnp.float32) * std,
    }


if __name__ == "__main__":
    b, n, c = 2, 64, 32               # batch, num_patches (H=W=8), dim
    num_heads = 4
    agent_num = 49                    # pool_size = 7 (module default)
    downstream_agent_shape = (4, 4)   # downstream agent tokens A = 16
    kernel_size = 3

    key = jax.random.PRNGKey(0)
    kp, kx = jax.random.split(key)
    params = init_params(kp, c, num_heads, n, agent_num, kernel_size)
    ip = prepare_inference_params(
        params, num_heads=num_heads, num_patches=n, agent_num=agent_num,
        downstream_agent_shape=downstream_agent_shape)
    x = jax.random.normal(kx, (b, n, c), jnp.float32)

    fwd = jax.jit(functools.partial(
        agent_attention_forward,
        num_heads=num_heads,
        downstream_agent_shape=downstream_agent_shape,
        kernel_size=kernel_size))
    y = fwd(x, ip)
    jax.block_until_ready(y)
    assert y.shape == (b, n, c) and y.dtype == jnp.float32
    print("KERNEL_OK")
</pallas_src>

<mosaic_0001>
module attributes {stable_mosaic.version = 11 : i64} {
  func.func @_qkv_kernel(%arg0: i32, %arg1: memref<64x32xbf16, #tpu.memory_space<vmem>>, %arg2: memref<32x32xbf16, #tpu.memory_space<vmem>>, %arg3: memref<32x32xbf16, #tpu.memory_space<vmem>>, %arg4: memref<32x32xbf16, #tpu.memory_space<vmem>>, %arg5: memref<64x32xbf16, #tpu.memory_space<vmem>>, %arg6: memref<64x32xbf16, #tpu.memory_space<vmem>>, %arg7: memref<64x32xbf16, #tpu.memory_space<vmem>>) attributes {dimension_semantics = [#tpu.dimension_semantics<parallel>], iteration_bounds = array<i64: 2>, scalar_prefetch = 0 : i64, scratch_operands = 0 : i64, tpu.core_type = #tpu.core_type<tc>, window_params = [{transform_indices = @transform_0, window_bounds = array<i64: 64, 32>}, {pipeline_mode = #tpu.pipeline_mode<synchronous>, transform_indices = @transform_1, window_bounds = array<i64: 32, 32>}, {pipeline_mode = #tpu.pipeline_mode<synchronous>, transform_indices = @transform_2, window_bounds = array<i64: 32, 32>}, {pipeline_mode = #tpu.pipeline_mode<synchronous>, transform_indices = @transform_3, window_bounds = array<i64: 32, 32>}, {transform_indices = @transform_4, window_bounds = array<i64: 64, 32>}, {transform_indices = @transform_5, window_bounds = array<i64: 64, 32>}, {transform_indices = @transform_6, window_bounds = array<i64: 64, 32>}]} {
    %c0 = arith.constant 0 : index
    %c0_0 = arith.constant 0 : index
    %0 = vector.load %arg1[%c0, %c0_0] : memref<64x32xbf16, #tpu.memory_space<vmem>>, vector<64x32xbf16>
    %c0_1 = arith.constant 0 : index
    %c0_2 = arith.constant 0 : index
    %1 = vector.load %arg2[%c0_1, %c0_2] : memref<32x32xbf16, #tpu.memory_space<vmem>>, vector<32x32xbf16>
    %cst = arith.constant dense<0.000000e+00> : vector<64x32xf32>
    %2 = tpu.matmul %0, %1, %cst {dimension_numbers = #tpu.dot_dimension_numbers<[1], [0], [0], [1], [0, 0, 1, 1], [], []>} : vector<64x32xbf16>, vector<32x32xbf16>, vector<64x32xf32> -> vector<64x32xf32>
    %3 = arith.truncf %2 : vector<64x32xf32> to vector<64x32xbf16>
    %c0_3 = arith.constant 0 : index
    %c0_4 = arith.constant 0 : index
    %4 = vector.load %arg5[%c0_3, %c0_4] : memref<64x32xbf16, #tpu.memory_space<vmem>>, vector<64x32xbf16>
    tpu.vector_store %arg5[%c0_3, %c0_4], %3 {strides = array<i32>} : memref<64x32xbf16, #tpu.memory_space<vmem>>, vector<64x32xbf16>,
    %c0_5 = arith.constant 0 : index
    %c0_6 = arith.constant 0 : index
    %5 = vector.load %arg3[%c0_5, %c0_6] : memref<32x32xbf16, #tpu.memory_space<vmem>>, vector<32x32xbf16>
    %cst_7 = arith.constant dense<0.000000e+00> : vector<64x32xf32>
    %6 = tpu.matmul %0, %5, %cst_7 {dimension_numbers = #tpu.dot_dimension_numbers<[1], [0], [0], [1], [0, 0, 1, 1], [], []>} : vector<64x32xbf16>, vector<32x32xbf16>, vector<64x32xf32> -> vector<64x32xf32>
    %7 = arith.truncf %6 : vector<64x32xf32> to vector<64x32xbf16>
    %c0_8 = arith.constant 0 : index
    %c0_9 = arith.constant 0 : index
    %8 = vector.load %arg6[%c0_8, %c0_9] : memref<64x32xbf16, #tpu.memory_space<vmem>>, vector<64x32xbf16>
    tpu.vector_store %arg6[%c0_8, %c0_9], %7 {strides = array<i32>} : memref<64x32xbf16, #tpu.memory_space<vmem>>, vector<64x32xbf16>,
    %c0_10 = arith.constant 0 : index
    %c0_11 = arith.constant 0 : index
    %9 = vector.load %arg4[%c0_10, %c0_11] : memref<32x32xbf16, #tpu.memory_space<vmem>>, vector<32x32xbf16>
    %cst_12 = arith.constant dense<0.000000e+00> : vector<64x32xf32>
    %10 = tpu.matmul %0, %9, %cst_12 {dimension_numbers = #tpu.dot_dimension_numbers<[1], [0], [0], [1], [0, 0, 1, 1], [], []>} : vector<64x32xbf16>, vector<32x32xbf16>, vector<64x32xf32> -> vector<64x32xf32>
    %11 = arith.truncf %10 : vector<64x32xf32> to vector<64x32xbf16>
    %c0_13 = arith.constant 0 : index
    %c0_14 = arith.constant 0 : index
    %12 = vector.load %arg7[%c0_13, %c0_14] : memref<64x32xbf16, #tpu.memory_space<vmem>>, vector<64x32xbf16>
    tpu.vector_store %arg7[%c0_13, %c0_14], %11 {strides = array<i32>} : memref<64x32xbf16, #tpu.memory_space<vmem>>, vector<64x32xbf16>,
    return
  }
  func.func @transform_0(%arg0: i32) -> (i32, i32) {
    %c0_i32 = arith.constant 0 : i32
    %c0_i32_0 = arith.constant 0 : i32
    return %arg0, %c0_i32 : i32, i32
  }
  func.func @transform_1(%arg0: i32) -> (i32, i32) {
    %c0_i32 = arith.constant 0 : i32
    %c0_i32_0 = arith.constant 0 : i32
    %c0_i32_1 = arith.constant 0 : i32
    return %c0_i32, %c0_i32_0 : i32, i32
  }
  func.func @transform_2(%arg0: i32) -> (i32, i32) {
    %c0_i32 = arith.constant 0 : i32
    %c0_i32_0 = arith.constant 0 : i32
    %c0_i32_1 = arith.constant 0 : i32
    return %c0_i32, %c0_i32_0 : i32, i32
  }
  func.func @transform_3(%arg0: i32) -> (i32, i32) {
    %c0_i32 = arith.constant 0 : i32
    %c0_i32_0 = arith.constant 0 : i32
    %c0_i32_1 = arith.constant 0 : i32
    return %c0_i32, %c0_i32_0 : i32, i32
  }
  func.func @transform_4(%arg0: i32) -> (i32, i32) {
    %c0_i32 = arith.constant 0 : i32
    %c0_i32_0 = arith.constant 0 : i32
    return %arg0, %c0_i32 : i32, i32
  }
  func.func @transform_5(%arg0: i32) -> (i32, i32) {
    %c0_i32 = arith.constant 0 : i32
    %c0_i32_0 = arith.constant 0 : i32
    return %arg0, %c0_i32 : i32, i32
  }
  func.func @transform_6(%arg0: i32) -> (i32, i32) {
    %c0_i32 = arith.constant 0 : i32
    %c0_i32_0 = arith.constant 0 : i32
    return %arg0, %c0_i32 : i32, i32
  }
}

module attributes {stable_mosaic.version = 11 : i64} {
  func.func @_dwc_kernel(%arg0: i32, %arg1: memref<1x8x8x32xbf16, #tpu.memory_space<vmem>>, %arg2: memref<3x3x32xf32, #tpu.memory_space<vmem>>, %arg3: memref<1x32xf32, #tpu.memory_space<vmem>>, %arg4: memref<1x8x8x32xbf16, #tpu.memory_space<vmem>>, %arg5: memref<10x10x32xf32, #tpu.memory_space<vmem>>) attributes {dimension_semantics = [#tpu.dimension_semantics<parallel>], iteration_bounds = array<i64: 2>, scalar_prefetch = 0 : i64, scratch_operands = 1 : i64, tpu.core_type = #tpu.core_type<tc>, window_params = [{transform_indices = @transform_0, window_bounds = array<i64: 1, 8, 8, 32>}, {pipeline_mode = #tpu.pipeline_mode<synchronous>, transform_indices = @transform_1, window_bounds = array<i64: 3, 3, 32>}, {pipeline_mode = #tpu.pipeline_mode<synchronous>, transform_indices = @transform_2, window_bounds = array<i64: 1, 32>}, {transform_indices = @transform_3, window_bounds = array<i64: 1, 8, 8, 32>}]} {
    %cst = arith.constant 0.000000e+00 : f32
    %0 = vector.broadcast %cst : f32 to vector<10x10x32xf32>
    %c0 = arith.constant 0 : index
    %c0_0 = arith.constant 0 : index
    %c0_1 = arith.constant 0 : index
    %1 = vector.load %arg5[%c0, %c0_0, %c0_1] : memref<10x10x32xf32, #tpu.memory_space<vmem>>, vector<10x10x32xf32>
    tpu.vector_store %arg5[%c0, %c0_0, %c0_1], %0 {strides = array<i32>} : memref<10x10x32xf32, #tpu.memory_space<vmem>>, vector<10x10x32xf32>,
    %c0_2 = arith.constant 0 : index
    %c0_3 = arith.constant 0 : index
    %c0_4 = arith.constant 0 : index
    %c0_5 = arith.constant 0 : index
    %2 = vector.load %arg1[%c0_2, %c0_3, %c0_4, %c0_5] : memref<1x8x8x32xbf16, #tpu.memory_space<vmem>>, vector<1x8x8x32xbf16>
    %3 = vector.shape_cast %2 : vector<1x8x8x32xbf16> to vector<8x8x32xbf16>
    %4 = arith.extf %3 : vector<8x8x32xbf16> to vector<8x8x32xf32>
    %c1 = arith.constant 1 : index
    %c1_6 = arith.constant 1 : index
    %c0_7 = arith.constant 0 : index
    %5 = vector.load %arg5[%c1, %c1_6, %c0_7] : memref<10x10x32xf32, #tpu.memory_space<vmem>>, vector<8x8x32xf32>
    tpu.vector_store %arg5[%c1, %c1_6, %c0_7], %4 {strides = array<i32>} : memref<10x10x32xf32, #tpu.memory_space<vmem>>, vector<8x8x32xf32>,
    %c0_8 = arith.constant 0 : index
    %c0_9 = arith.constant 0 : index
    %c0_10 = arith.constant 0 : index
    %6 = vector.load %arg2[%c0_8, %c0_9, %c0_10] : memref<3x3x32xf32, #tpu.memory_space<vmem>>, vector<3x3x32xf32>
    %c0_11 = arith.constant 0 : index
    %c0_12 = arith.constant 0 : index
    %7 = vector.load %arg3[%c0_11, %c0_12] : memref<1x32xf32, #tpu.memory_space<vmem>>, vector<1x32xf32>
    %8 = vector.shape_cast %7 : vector<1x32xf32> to vector<32xf32>
    %c0_13 = arith.constant 0 : index
    %c0_14 = arith.constant 0 : index
    %c0_15 = arith.constant 0 : index
    %9 = vector.load %arg5[%c0_13, %c0_14, %c0_15] : memref<10x10x32xf32, #tpu.memory_space<vmem>>, vector<10x8x32xf32>
    %c0_16 = arith.constant 0 : index
    %c1_17 = arith.constant 1 : index
    %c0_18 = arith.constant 0 : index
    %10 = vector.load %arg5[%c0_16, %c1_17, %c0_18] : memref<10x10x32xf32, #tpu.memory_space<vmem>>, vector<10x8x32xf32>
    %c0_19 = arith.constant 0 : index
    %c2 = arith.constant 2 : index
    %c0_20 = arith.constant 0 : index
    %11 = vector.load %arg5[%c0_19, %c2, %c0_20] : memref<10x10x32xf32, #tpu.memory_space<vmem>>, vector<10x8x32xf32>
    %cst_21 = arith.constant 0.000000e+00 : f32
    %12 = vector.broadcast %cst_21 : f32 to vector<8x8x32xf32>
    %13 = vector.extract_strided_slice %9 {offsets = [0, 0, 0], sizes = [8, 8, 32], strides = [1, 1, 1]} : vector<10x8x32xf32> to vector<8x8x32xf32>
    %14 = vector.extract_strided_slice %6 {offsets = [0, 0, 0], sizes = [1, 1, 32], strides = [1, 1, 1]} : vector<3x3x32xf32> to vector<1x1x32xf32>
    %15 = vector.shape_cast %14 : vector<1x1x32xf32> to vector<32xf32>
    %16 = vector.shape_cast %15 : vector<32xf32> to vector<1x1x32xf32>
    %17 = vector.broadcast %16 : vector<1x1x32xf32> to vector<8x8x32xf32>
    %18 = arith.mulf %13, %17 : vector<8x8x32xf32>
    %19 = arith.addf %12, %18 : vector<8x8x32xf32>
    %20 = vector.extract_strided_slice %10 {offsets = [0, 0, 0], sizes = [8, 8, 32], strides = [1, 1, 1]} : vector<10x8x32xf32> to vector<8x8x32xf32>
    %21 = vector.extract_strided_slice %6 {offsets = [0, 1, 0], sizes = [1, 1, 32], strides = [1, 1, 1]} : vector<3x3x32xf32> to vector<1x1x32xf32>
    %22 = vector.shape_cast %21 : vector<1x1x32xf32> to vector<32xf32>
    %23 = vector.shape_cast %22 : vector<32xf32> to vector<1x1x32xf32>
    %24 = vector.broadcast %23 : vector<1x1x32xf32> to vector<8x8x32xf32>
    %25 = arith.mulf %20, %24 : vector<8x8x32xf32>
    %26 = arith.addf %19, %25 : vector<8x8x32xf32>
    %27 = vector.extract_strided_slice %11 {offsets = [0, 0, 0], sizes = [8, 8, 32], strides = [1, 1, 1]} : vector<10x8x32xf32> to vector<8x8x32xf32>
    %28 = vector.extract_strided_slice %6 {offsets = [0, 2, 0], sizes = [1, 1, 32], strides = [1, 1, 1]} : vector<3x3x32xf32> to vector<1x1x32xf32>
    %29 = vector.shape_cast %28 : vector<1x1x32xf32> to vector<32xf32>
    %30 = vector.shape_cast %29 : vector<32xf32> to vector<1x1x32xf32>
    %31 = vector.broadcast %30 : vector<1x1x32xf32> to vector<8x8x32xf32>
    %32 = arith.mulf %27, %31 : vector<8x8x32xf32>
    %33 = arith.addf %26, %32 : vector<8x8x32xf32>
    %34 = vector.extract_strided_slice %9 {offsets = [1, 0, 0], sizes = [8, 8, 32], strides = [1, 1, 1]} : vector<10x8x32xf32> to vector<8x8x32xf32>
    %35 = vector.extract_strided_slice %6 {offsets = [1, 0, 0], sizes = [1, 1, 32], strides = [1, 1, 1]} : vector<3x3x32xf32> to vector<1x1x32xf32>
    %36 = vector.shape_cast %35 : vector<1x1x32xf32> to vector<32xf32>
    %37 = vector.shape_cast %36 : vector<32xf32> to vector<1x1x32xf32>
    %38 = vector.broadcast %37 : vector<1x1x32xf32> to vector<8x8x32xf32>
    %39 = arith.mulf %34, %38 : vector<8x8x32xf32>
    %40 = arith.addf %33, %39 : vector<8x8x32xf32>
    %41 = vector.extract_strided_slice %10 {offsets = [1, 0, 0], sizes = [8, 8, 32], strides = [1, 1, 1]} : vector<10x8x32xf32> to vector<8x8x32xf32>
    %42 = vector.extract_strided_slice %6 {offsets = [1, 1, 0], sizes = [1, 1, 32], strides = [1, 1, 1]} : vector<3x3x32xf32> to vector<1x1x32xf32>
    %43 = vector.shape_cast %42 : vector<1x1x32xf32> to vector<32xf32>
    %44 = vector.shape_cast %43 : vector<32xf32> to vector<1x1x32xf32>
    %45 = vector.broadcast %44 : vector<1x1x32xf32> to vector<8x8x32xf32>
    %46 = arith.mulf %41, %45 : vector<8x8x32xf32>
    %47 = arith.addf %40, %46 : vector<8x8x32xf32>
    %48 = vector.extract_strided_slice %11 {offsets = [1, 0, 0], sizes = [8, 8, 32], strides = [1, 1, 1]} : vector<10x8x32xf32> to vector<8x8x32xf32>
    %49 = vector.extract_strided_slice %6 {offsets = [1, 2, 0], sizes = [1, 1, 32], strides = [1, 1, 1]} : vector<3x3x32xf32> to vector<1x1x32xf32>
    %50 = vector.shape_cast %49 : vector<1x1x32xf32> to vector<32xf32>
    %51 = vector.shape_cast %50 : vector<32xf32> to vector<1x1x32xf32>
    %52 = vector.broadcast %51 : vector<1x1x32xf32> to vector<8x8x32xf32>
    %53 = arith.mulf %48, %52 : vector<8x8x32xf32>
    %54 = arith.addf %47, %53 : vector<8x8x32xf32>
    %55 = vector.extract_strided_slice %9 {offsets = [2, 0, 0], sizes = [8, 8, 32], strides = [1, 1, 1]} : vector<10x8x32xf32> to vector<8x8x32xf32>
    %56 = vector.extract_strided_slice %6 {offsets = [2, 0, 0], sizes = [1, 1, 32], strides = [1, 1, 1]} : vector<3x3x32xf32> to vector<1x1x32xf32>
    %57 = vector.shape_cast %56 : vector<1x1x32xf32> to vector<32xf32>
    %58 = vector.shape_cast %57 : vector<32xf32> to vector<1x1x32xf32>
    %59 = vector.broadcast %58 : vector<1x1x32xf32> to vector<8x8x32xf32>
    %60 = arith.mulf %55, %59 : vector<8x8x32xf32>
    %61 = arith.addf %54, %60 : vector<8x8x32xf32>
    %62 = vector.extract_strided_slice %10 {offsets = [2, 0, 0], sizes = [8, 8, 32], strides = [1, 1, 1]} : vector<10x8x32xf32> to vector<8x8x32xf32>
    %63 = vector.extract_strided_slice %6 {offsets = [2, 1, 0], sizes = [1, 1, 32], strides = [1, 1, 1]} : vector<3x3x32xf32> to vector<1x1x32xf32>
    %64 = vector.shape_cast %63 : vector<1x1x32xf32> to vector<32xf32>
    %65 = vector.shape_cast %64 : vector<32xf32> to vector<1x1x32xf32>
    %66 = vector.broadcast %65 : vector<1x1x32xf32> to vector<8x8x32xf32>
    %67 = arith.mulf %62, %66 : vector<8x8x32xf32>
    %68 = arith.addf %61, %67 : vector<8x8x32xf32>
    %69 = vector.extract_strided_slice %11 {offsets = [2, 0, 0], sizes = [8, 8, 32], strides = [1, 1, 1]} : vector<10x8x32xf32> to vector<8x8x32xf32>
    %70 = vector.extract_strided_slice %6 {offsets = [2, 2, 0], sizes = [1, 1, 32], strides = [1, 1, 1]} : vector<3x3x32xf32> to vector<1x1x32xf32>
    %71 = vector.shape_cast %70 : vector<1x1x32xf32> to vector<32xf32>
    %72 = vector.shape_cast %71 : vector<32xf32> to vector<1x1x32xf32>
    %73 = vector.broadcast %72 : vector<1x1x32xf32> to vector<8x8x32xf32>
    %74 = arith.mulf %69, %73 : vector<8x8x32xf32>
    %75 = arith.addf %68, %74 : vector<8x8x32xf32>
    %76 = vector.shape_cast %8 : vector<32xf32> to vector<1x1x32xf32>
    %77 = vector.broadcast %76 : vector<1x1x32xf32> to vector<8x8x32xf32>
    %78 = arith.addf %75, %77 : vector<8x8x32xf32>
    %79 = arith.truncf %78 : vector<8x8x32xf32> to vector<8x8x32xbf16>
    %c0_22 = arith.constant 0 : index
    %c0_23 = arith.constant 0 : index
    %c0_24 = arith.constant 0 : index
    %c0_25 = arith.constant 0 : index
    %80 = vector.load %arg4[%c0_22, %c0_23, %c0_24, %c0_25] : memref<1x8x8x32xbf16, #tpu.memory_space<vmem>>, vector<1x8x8x32xbf16>
    %81 = vector.shape_cast %80 : vector<1x8x8x32xbf16> to vector<8x8x32xbf16>
    %82 = vector.shape_cast %79 : vector<8x8x32xbf16> to vector<1x8x8x32xbf16>
    tpu.vector_store %arg4[%c0_22, %c0_23, %c0_24, %c0_25], %82 {strides = array<i32>} : memref<1x8x8x32xbf16, #tpu.memory_space<vmem>>, vector<1x8x8x32xbf16>,
    return
  }
  func.func @transform_0(%arg0: i32) -> (i32, i32, i32, i32) {
    %c0_i32 = arith.constant 0 : i32
    %c0_i32_0 = arith.constant 0 : i32
    %c0_i32_1 = arith.constant 0 : i32
    %c0_i32_2 = arith.constant 0 : i32
    return %arg0, %c0_i32, %c0_i32_0, %c0_i32_1 : i32, i32, i32, i32
  }
  func.func @transform_1(%arg0: i32) -> (i32, i32, i32) {
    %c0_i32 = arith.constant 0 : i32
    %c0_i32_0 = arith.constant 0 : i32
    %c0_i32_1 = arith.constant 0 : i32
    %c0_i32_2 = arith.constant 0 : i32
    return %c0_i32, %c0_i32_0, %c0_i32_1 : i32, i32, i32
  }
  func.func @transform_2(%arg0: i32) -> (i32, i32) {
    %c0_i32 = arith.constant 0 : i32
    %c0_i32_0 = arith.constant 0 : i32
    %c0_i32_1 = arith.constant 0 : i32
    return %c0_i32, %c0_i32_0 : i32, i32
  }
  func.func @transform_3(%arg0: i32) -> (i32, i32, i32, i32) {
    %c0_i32 = arith.constant 0 : i32
    %c0_i32_0 = arith.constant 0 : i32
    %c0_i32_1 = arith.constant 0 : i32
    %c0_i32_2 = arith.constant 0 : i32
    return %arg0, %c0_i32, %c0_i32_0, %c0_i32_1 : i32, i32, i32, i32
  }
}

module attributes {stable_mosaic.version = 11 : i64} {
  func.func @_agent_attn_kernel(%arg0: i32, %arg1: i32, %arg2: memref<1x64x32xbf16, #tpu.memory_space<vmem>>, %arg3: memref<1x64x32xbf16, #tpu.memory_space<vmem>>, %arg4: memref<1x64x32xbf16, #tpu.memory_space<vmem>>, %arg5: memref<1x16x32xbf16, #tpu.memory_space<vmem>>, %arg6: memref<4x16x64xbf16, #tpu.memory_space<vmem>>, %arg7: memref<4x16x64xbf16, #tpu.memory_space<vmem>>, %arg8: memref<1x64x32xbf16, #tpu.memory_space<vmem>>, %arg9: memref<4x16x8xf32, #tpu.memory_space<vmem>>) attributes {dimension_semantics = [#tpu.dimension_semantics<parallel>, #tpu.dimension_semantics<arbitrary>], iteration_bounds = array<i64: 2, 1>, scalar_prefetch = 0 : i64, scratch_operands = 1 : i64, tpu.core_type = #tpu.core_type<tc>, window_params = [{transform_indices = @transform_0, window_bounds = array<i64: 1, 64, 32>}, {transform_indices = @transform_1, window_bounds = array<i64: 1, 64, 32>}, {transform_indices = @transform_2, window_bounds = array<i64: 1, 64, 32>}, {transform_indices = @transform_3, window_bounds = array<i64: 1, 16, 32>}, {pipeline_mode = #tpu.pipeline_mode<synchronous>, transform_indices = @transform_4, window_bounds = array<i64: 4, 16, 64>}, {transform_indices = @transform_5, window_bounds = array<i64: 4, 16, 64>}, {transform_indices = @transform_6, window_bounds = array<i64: 1, 64, 32>}]} {
    %c0 = arith.constant 0 : index
    %c0_0 = arith.constant 0 : index
    %c0_1 = arith.constant 0 : index
    %0 = vector.load %arg5[%c0, %c0_0, %c0_1] : memref<1x16x32xbf16, #tpu.memory_space<vmem>>, vector<1x16x32xbf16>
    %1 = vector.shape_cast %0 : vector<1x16x32xbf16> to vector<16x32xbf16>
    %c0_i32 = arith.constant 0 : i32
    %2 = arith.cmpi eq, %arg1, %c0_i32 : i32
    %3 = arith.extui %2 : i1 to i32
    %c0_i32_2 = arith.constant 0 : i32
    %4 = arith.cmpi ne, %3, %c0_i32_2 : i32
    scf.if %4 {
      %c0_55 = arith.constant 0 : index
      %c0_56 = arith.constant 0 : index
      %c0_57 = arith.constant 0 : index
      %127 = vector.load %arg3[%c0_55, %c0_56, %c0_57] : memref<1x64x32xbf16, #tpu.memory_space<vmem>>, vector<1x64x32xbf16>
      %128 = vector.shape_cast %127 : vector<1x64x32xbf16> to vector<64x32xbf16>
      %c0_58 = arith.constant 0 : index
      %c0_59 = arith.constant 0 : index
      %c0_60 = arith.constant 0 : index
      %129 = vector.load %arg4[%c0_58, %c0_59, %c0_60] : memref<1x64x32xbf16, #tpu.memory_space<vmem>>, vector<1x64x32xbf16>
      %130 = vector.shape_cast %129 : vector<1x64x32xbf16> to vector<64x32xbf16>
      %131 = vector.extract_strided_slice %1 {offsets = [0, 0], sizes = [16, 8], strides = [1, 1]} : vector<16x32xbf16> to vector<16x8xbf16>
      %132 = vector.extract_strided_slice %128 {offsets = [0, 0], sizes = [64, 8], strides = [1, 1]} : vector<64x32xbf16> to vector<64x8xbf16>
      %133 = vector.extract_strided_slice %130 {offsets = [0, 0], sizes = [64, 8], strides = [1, 1]} : vector<64x32xbf16> to vector<64x8xbf16>
      %134 = tpu.transpose %132, [1, 0] : vector<64x8xbf16> -> vector<8x64xbf16>
      %cst_61 = arith.constant dense<0.000000e+00> : vector<16x64xf32>
      %135 = tpu.matmul %131, %134, %cst_61 {dimension_numbers = #tpu.dot_dimension_numbers<[1], [0], [0], [1], [0, 0, 1, 1], [], []>} : vector<16x8xbf16>, vector<8x64xbf16>, vector<16x64xf32> -> vector<16x64xf32>
      %cst_62 = arith.constant 0.353553385 : f32
      %136 = vector.broadcast %cst_62 : f32 to vector<16x64xf32>
      %137 = arith.mulf %135, %136 : vector<16x64xf32>
      %c0_63 = arith.constant 0 : index
      %c0_64 = arith.constant 0 : index
      %c0_65 = arith.constant 0 : index
      %138 = vector.load %arg6[%c0_63, %c0_64, %c0_65] : memref<4x16x64xbf16, #tpu.memory_space<vmem>>, vector<1x16x64xbf16>
      %139 = vector.shape_cast %138 : vector<1x16x64xbf16> to vector<16x64xbf16>
      %140 = arith.extf %139 : vector<16x64xbf16> to vector<16x64xf32>
      %141 = arith.addf %137, %140 : vector<16x64xf32>
      %cst_66 = arith.constant dense<0xFF800000> : vector<16xf32>
      %142 = vector.multi_reduction <maximumf>, %141, %cst_66 [1] : vector<16x64xf32> to vector<16xf32>
      %143 = vector.shape_cast %142 : vector<16xf32> to vector<16x1xf32>
      %144 = vector.broadcast %143 : vector<16x1xf32> to vector<16x64xf32>
      %145 = arith.subf %141, %144 : vector<16x64xf32>
      %146 = math.exp %145 : vector<16x64xf32>
      %cst_67 = arith.constant dense<0.000000e+00> : vector<16xf32>
      %147 = vector.multi_reduction <add>, %146, %cst_67 [1] : vector<16x64xf32> to vector<16xf32>
      %148 = vector.shape_cast %147 : vector<16xf32> to vector<16x1xf32>
      %149 = tpu.reciprocal %148 {approx = true} : vector<16x1xf32> -> vector<16x1xf32>
      %150 = vector.broadcast %149 : vector<16x1xf32> to vector<16x64xf32>
      %151 = arith.mulf %146, %150 : vector<16x64xf32>
      %152 = arith.truncf %151 : vector<16x64xf32> to vector<16x64xbf16>
      %cst_68 = arith.constant dense<0.000000e+00> : vector<16x8xf32>
      %153 = tpu.matmul %152, %133, %cst_68 {dimension_numbers = #tpu.dot_dimension_numbers<[1], [0], [0], [1], [0, 0, 1, 1], [], []>} : vector<16x64xbf16>, vector<64x8xbf16>, vector<16x8xf32> -> vector<16x8xf32>
      %c0_69 = arith.constant 0 : index
      %c0_70 = arith.constant 0 : index
      %c0_71 = arith.constant 0 : index
      %154 = vector.load %arg9[%c0_69, %c0_70, %c0_71] : memref<4x16x8xf32, #tpu.memory_space<vmem>>, vector<1x16x8xf32>
      %155 = vector.shape_cast %154 : vector<1x16x8xf32> to vector<16x8xf32>
      %156 = vector.shape_cast %153 : vector<16x8xf32> to vector<1x16x8xf32>
      tpu.vector_store %arg9[%c0_69, %c0_70, %c0_71], %156 {strides = array<i32>} : memref<4x16x8xf32, #tpu.memory_space<vmem>>, vector<1x16x8xf32>,
      %157 = vector.extract_strided_slice %1 {offsets = [0, 8], sizes = [16, 8], strides = [1, 1]} : vector<16x32xbf16> to vector<16x8xbf16>
      %158 = vector.extract_strided_slice %128 {offsets = [0, 8], sizes = [64, 8], strides = [1, 1]} : vector<64x32xbf16> to vector<64x8xbf16>
      %159 = vector.extract_strided_slice %130 {offsets = [0, 8], sizes = [64, 8], strides = [1, 1]} : vector<64x32xbf16> to vector<64x8xbf16>
      %160 = tpu.transpose %158, [1, 0] : vector<64x8xbf16> -> vector<8x64xbf16>
      %cst_72 = arith.constant dense<0.000000e+00> : vector<16x64xf32>
      %161 = tpu.matmul %157, %160, %cst_72 {dimension_numbers = #tpu.dot_dimension_numbers<[1], [0], [0], [1], [0, 0, 1, 1], [], []>} : vector<16x8xbf16>, vector<8x64xbf16>, vector<16x64xf32> -> vector<16x64xf32>
      %cst_73 = arith.constant 0.353553385 : f32
      %162 = vector.broadcast %cst_73 : f32 to vector<16x64xf32>
      %163 = arith.mulf %161, %162 : vector<16x64xf32>
      %c1_74 = arith.constant 1 : index
      %c0_75 = arith.constant 0 : index
      %c0_76 = arith.constant 0 : index
      %164 = vector.load %arg6[%c1_74, %c0_75, %c0_76] : memref<4x16x64xbf16, #tpu.memory_space<vmem>>, vector<1x16x64xbf16>
      %165 = vector.shape_cast %164 : vector<1x16x64xbf16> to vector<16x64xbf16>
      %166 = arith.extf %165 : vector<16x64xbf16> to vector<16x64xf32>
      %167 = arith.addf %163, %166 : vector<16x64xf32>
      %cst_77 = arith.constant dense<0xFF800000> : vector<16xf32>
      %168 = vector.multi_reduction <maximumf>, %167, %cst_77 [1] : vector<16x64xf32> to vector<16xf32>
      %169 = vector.shape_cast %168 : vector<16xf32> to vector<16x1xf32>
      %170 = vector.broadcast %169 : vector<16x1xf32> to vector<16x64xf32>
      %171 = arith.subf %167, %170 : vector<16x64xf32>
      %172 = math.exp %171 : vector<16x64xf32>
      %cst_78 = arith.constant dense<0.000000e+00> : vector<16xf32>
      %173 = vector.multi_reduction <add>, %172, %cst_78 [1] : vector<16x64xf32> to vector<16xf32>
      %174 = vector.shape_cast %173 : vector<16xf32> to vector<16x1xf32>
      %175 = tpu.reciprocal %174 {approx = true} : vector<16x1xf32> -> vector<16x1xf32>
      %176 = vector.broadcast %175 : vector<16x1xf32> to vector<16x64xf32>
      %177 = arith.mulf %172, %176 : vector<16x64xf32>
      %178 = arith.truncf %177 : vector<16x64xf32> to vector<16x64xbf16>
      %cst_79 = arith.constant dense<0.000000e+00> : vector<16x8xf32>
      %179 = tpu.matmul %178, %159, %cst_79 {dimension_numbers = #tpu.dot_dimension_numbers<[1], [0], [0], [1], [0, 0, 1, 1], [], []>} : vector<16x64xbf16>, vector<64x8xbf16>, vector<16x8xf32> -> vector<16x8xf32>
      %c1_80 = arith.constant 1 : index
      %c0_81 = arith.constant 0 : index
      %c0_82 = arith.constant 0 : index
      %180 = vector.load %arg9[%c1_80, %c0_81, %c0_82] : memref<4x16x8xf32, #tpu.memory_space<vmem>>, vector<1x16x8xf32>
      %181 = vector.shape_cast %180 : vector<1x16x8xf32> to vector<16x8xf32>
      %182 = vector.shape_cast %179 : vector<16x8xf32> to vector<1x16x8xf32>
      tpu.vector_store %arg9[%c1_80, %c0_81, %c0_82], %182 {strides = array<i32>} : memref<4x16x8xf32, #tpu.memory_space<vmem>>, vector<1x16x8xf32>,
      %183 = vector.extract_strided_slice %1 {offsets = [0, 16], sizes = [16, 8], strides = [1, 1]} : vector<16x32xbf16> to vector<16x8xbf16>
      %184 = vector.extract_strided_slice %128 {offsets = [0, 16], sizes = [64, 8], strides = [1, 1]} : vector<64x32xbf16> to vector<64x8xbf16>
      %185 = vector.extract_strided_slice %130 {offsets = [0, 16], sizes = [64, 8], strides = [1, 1]} : vector<64x32xbf16> to vector<64x8xbf16>
      %186 = tpu.transpose %184, [1, 0] : vector<64x8xbf16> -> vector<8x64xbf16>
      %cst_83 = arith.constant dense<0.000000e+00> : vector<16x64xf32>
      %187 = tpu.matmul %183, %186, %cst_83 {dimension_numbers = #tpu.dot_dimension_numbers<[1], [0], [0], [1], [0, 0, 1, 1], [], []>} : vector<16x8xbf16>, vector<8x64xbf16>, vector<16x64xf32> -> vector<16x64xf32>
      %cst_84 = arith.constant 0.353553385 : f32
      %188 = vector.broadcast %cst_84 : f32 to vector<16x64xf32>
      %189 = arith.mulf %187, %188 : vector<16x64xf32>
      %c2_85 = arith.constant 2 : index
      %c0_86 = arith.constant 0 : index
      %c0_87 = arith.constant 0 : index
      %190 = vector.load %arg6[%c2_85, %c0_86, %c0_87] : memref<4x16x64xbf16, #tpu.memory_space<vmem>>, vector<1x16x64xbf16>
      %191 = vector.shape_cast %190 : vector<1x16x64xbf16> to vector<16x64xbf16>
      %192 = arith.extf %191 : vector<16x64xbf16> to vector<16x64xf32>
      %193 = arith.addf %189, %192 : vector<16x64xf32>
      %cst_88 = arith.constant dense<0xFF800000> : vector<16xf32>
      %194 = vector.multi_reduction <maximumf>, %193, %cst_88 [1] : vector<16x64xf32> to vector<16xf32>
      %195 = vector.shape_cast %194 : vector<16xf32> to vector<16x1xf32>
      %196 = vector.broadcast %195 : vector<16x1xf32> to vector<16x64xf32>
      %197 = arith.subf %193, %196 : vector<16x64xf32>
      %198 = math.exp %197 : vector<16x64xf32>
      %cst_89 = arith.constant dense<0.000000e+00> : vector<16xf32>
      %199 = vector.multi_reduction <add>, %198, %cst_89 [1] : vector<16x64xf32> to vector<16xf32>
      %200 = vector.shape_cast %199 : vector<16xf32> to vector<16x1xf32>
      %201 = tpu.reciprocal %200 {approx = true} : vector<16x1xf32> -> vector<16x1xf32>
      %202 = vector.broadcast %201 : vector<16x1xf32> to vector<16x64xf32>
      %203 = arith.mulf %198, %202 : vector<16x64xf32>
      %204 = arith.truncf %203 : vector<16x64xf32> to vector<16x64xbf16>
      %cst_90 = arith.constant dense<0.000000e+00> : vector<16x8xf32>
      %205 = tpu.matmul %204, %185, %cst_90 {dimension_numbers = #tpu.dot_dimension_numbers<[1], [0], [0], [1], [0, 0, 1, 1], [], []>} : vector<16x64xbf16>, vector<64x8xbf16>, vector<16x8xf32> -> vector<16x8xf32>
      %c2_91 = arith.constant 2 : index
      %c0_92 = arith.constant 0 : index
      %c0_93 = arith.constant 0 : index
      %206 = vector.load %arg9[%c2_91, %c0_92, %c0_93] : memref<4x16x8xf32, #tpu.memory_space<vmem>>, vector<1x16x8xf32>
      %207 = vector.shape_cast %206 : vector<1x16x8xf32> to vector<16x8xf32>
      %208 = vector.shape_cast %205 : vector<16x8xf32> to vector<1x16x8xf32>
      tpu.vector_store %arg9[%c2_91, %c0_92, %c0_93], %208 {strides = array<i32>} : memref<4x16x8xf32, #tpu.memory_space<vmem>>, vector<1x16x8xf32>,
      %209 = vector.extract_strided_slice %1 {offsets = [0, 24], sizes = [16, 8], strides = [1, 1]} : vector<16x32xbf16> to vector<16x8xbf16>
      %210 = vector.extract_strided_slice %128 {offsets = [0, 24], sizes = [64, 8], strides = [1, 1]} : vector<64x32xbf16> to vector<64x8xbf16>
      %211 = vector.extract_strided_slice %130 {offsets = [0, 24], sizes = [64, 8], strides = [1, 1]} : vector<64x32xbf16> to vector<64x8xbf16>
      %212 = tpu.transpose %210, [1, 0] : vector<64x8xbf16> -> vector<8x64xbf16>
      %cst_94 = arith.constant dense<0.000000e+00> : vector<16x64xf32>
      %213 = tpu.matmul %209, %212, %cst_94 {dimension_numbers = #tpu.dot_dimension_numbers<[1], [0], [0], [1], [0, 0, 1, 1], [], []>} : vector<16x8xbf16>, vector<8x64xbf16>, vector<16x64xf32> -> vector<16x64xf32>
      %cst_95 = arith.constant 0.353553385 : f32
      %214 = vector.broadcast %cst_95 : f32 to vector<16x64xf32>
      %215 = arith.mulf %213, %214 : vector<16x64xf32>
      %c3_96 = arith.constant 3 : index
      %c0_97 = arith.constant 0 : index
      %c0_98 = arith.constant 0 : index
      %216 = vector.load %arg6[%c3_96, %c0_97, %c0_98] : memref<4x16x64xbf16, #tpu.memory_space<vmem>>, vector<1x16x64xbf16>
      %217 = vector.shape_cast %216 : vector<1x16x64xbf16> to vector<16x64xbf16>
      %218 = arith.extf %217 : vector<16x64xbf16> to vector<16x64xf32>
      %219 = arith.addf %215, %218 : vector<16x64xf32>
      %cst_99 = arith.constant dense<0xFF800000> : vector<16xf32>
      %220 = vector.multi_reduction <maximumf>, %219, %cst_99 [1] : vector<16x64xf32> to vector<16xf32>
      %221 = vector.shape_cast %220 : vector<16xf32> to vector<16x1xf32>
      %222 = vector.broadcast %221 : vector<16x1xf32> to vector<16x64xf32>
      %223 = arith.subf %219, %222 : vector<16x64xf32>
      %224 = math.exp %223 : vector<16x64xf32>
      %cst_100 = arith.constant dense<0.000000e+00> : vector<16xf32>
      %225 = vector.multi_reduction <add>, %224, %cst_100 [1] : vector<16x64xf32> to vector<16xf32>
      %226 = vector.shape_cast %225 : vector<16xf32> to vector<16x1xf32>
      %227 = tpu.reciprocal %226 {approx = true} : vector<16x1xf32> -> vector<16x1xf32>
      %228 = vector.broadcast %227 : vector<16x1xf32> to vector<16x64xf32>
      %229 = arith.mulf %224, %228 : vector<16x64xf32>
      %230 = arith.truncf %229 : vector<16x64xf32> to vector<16x64xbf16>
      %cst_101 = arith.constant dense<0.000000e+00> : vector<16x8xf32>
      %231 = tpu.matmul %230, %211, %cst_101 {dimension_numbers = #tpu.dot_dimension_numbers<[1], [0], [0], [1], [0, 0, 1, 1], [], []>} : vector<16x64xbf16>, vector<64x8xbf16>, vector<16x8xf32> -> vector<16x8xf32>
      %c3_102 = arith.constant 3 : index
      %c0_103 = arith.constant 0 : index
      %c0_104 = arith.constant 0 : index
      %232 = vector.load %arg9[%c3_102, %c0_103, %c0_104] : memref<4x16x8xf32, #tpu.memory_space<vmem>>, vector<1x16x8xf32>
      %233 = vector.shape_cast %232 : vector<1x16x8xf32> to vector<16x8xf32>
      %234 = vector.shape_cast %231 : vector<16x8xf32> to vector<1x16x8xf32>
      tpu.vector_store %arg9[%c3_102, %c0_103, %c0_104], %234 {strides = array<i32>} : memref<4x16x8xf32, #tpu.memory_space<vmem>>, vector<1x16x8xf32>,
    } else {
    }
    %c0_3 = arith.constant 0 : index
    %c0_4 = arith.constant 0 : index
    %c0_5 = arith.constant 0 : index
    %5 = vector.load %arg2[%c0_3, %c0_4, %c0_5] : memref<1x64x32xbf16, #tpu.memory_space<vmem>>, vector<1x64x32xbf16>
    %6 = vector.shape_cast %5 : vector<1x64x32xbf16> to vector<64x32xbf16>
    %7 = vector.extract_strided_slice %6 {offsets = [0, 0], sizes = [64, 8], strides = [1, 1]} : vector<64x32xbf16> to vector<64x8xbf16>
    %8 = vector.extract_strided_slice %1 {offsets = [0, 0], sizes = [16, 8], strides = [1, 1]} : vector<16x32xbf16> to vector<16x8xbf16>
    %9 = tpu.transpose %7, [1, 0] : vector<64x8xbf16> -> vector<8x64xbf16>
    %cst = arith.constant dense<0.000000e+00> : vector<16x64xf32>
    %10 = tpu.matmul %8, %9, %cst {dimension_numbers = #tpu.dot_dimension_numbers<[1], [0], [0], [1], [0, 0, 1, 1], [], []>} : vector<16x8xbf16>, vector<8x64xbf16>, vector<16x64xf32> -> vector<16x64xf32>
    %cst_6 = arith.constant 0.353553385 : f32
    %11 = vector.broadcast %cst_6 : f32 to vector<16x64xf32>
    %12 = arith.mulf %10, %11 : vector<16x64xf32>
    %c0_7 = arith.constant 0 : index
    %c0_8 = arith.constant 0 : index
    %c0_9 = arith.constant 0 : index
    %13 = vector.load %arg7[%c0_7, %c0_8, %c0_9] : memref<4x16x64xbf16, #tpu.memory_space<vmem>>, vector<1x16x64xbf16>
    %14 = vector.shape_cast %13 : vector<1x16x64xbf16> to vector<16x64xbf16>
    %15 = arith.extf %14 : vector<16x64xbf16> to vector<16x64xf32>
    %16 = arith.addf %12, %15 : vector<16x64xf32>
    %cst_10 = arith.constant dense<0xFF800000> : vector<64xf32>
    %17 = vector.multi_reduction <maximumf>, %16, %cst_10 [0] : vector<16x64xf32> to vector<64xf32>
    %18 = vector.shape_cast %17 : vector<64xf32> to vector<1x64xf32>
    %19 = vector.broadcast %18 : vector<1x64xf32> to vector<16x64xf32>
    %20 = arith.subf %16, %19 : vector<16x64xf32>
    %21 = math.exp %20 : vector<16x64xf32>
    %cst_11 = arith.constant dense<0.000000e+00> : vector<64xf32>
    %22 = vector.multi_reduction <add>, %21, %cst_11 [0] : vector<16x64xf32> to vector<64xf32>
    %23 = vector.shape_cast %22 : vector<64xf32> to vector<1x64xf32>
    %24 = tpu.reciprocal %23 {approx = true} : vector<1x64xf32> -> vector<1x64xf32>
    %25 = vector.broadcast %24 : vector<1x64xf32> to vector<16x64xf32>
    %26 = arith.mulf %21, %25 : vector<16x64xf32>
    %27 = arith.truncf %26 : vector<16x64xf32> to vector<16x64xbf16>
    %28 = tpu.transpose %27, [1, 0] : vector<16x64xbf16> -> vector<64x16xbf16>
    %c0_12 = arith.constant 0 : index
    %c0_13 = arith.constant 0 : index
    %c0_14 = arith.constant 0 : index
    %29 = vector.load %arg9[%c0_12, %c0_13, %c0_14] : memref<4x16x8xf32, #tpu.memory_space<vmem>>, vector<1x16x8xf32>
    %30 = vector.shape_cast %29 : vector<1x16x8xf32> to vector<16x8xf32>
    %31 = arith.truncf %30 : vector<16x8xf32> to vector<16x8xbf16>
    %cst_15 = arith.constant dense<0.000000e+00> : vector<64x8xf32>
    %32 = tpu.matmul %28, %31, %cst_15 {dimension_numbers = #tpu.dot_dimension_numbers<[1], [0], [0], [1], [0, 0, 1, 1], [], []>} : vector<64x16xbf16>, vector<16x8xbf16>, vector<64x8xf32> -> vector<64x8xf32>
    %33 = arith.truncf %32 : vector<64x8xf32> to vector<64x8xbf16>
    %c0_16 = arith.constant 0 : index
    %c0_17 = arith.constant 0 : index
    %c0_18 = arith.constant 0 : index
    %34 = vector.load %arg8[%c0_16, %c0_17, %c0_18] : memref<1x64x32xbf16, #tpu.memory_space<vmem>>, vector<1x64x8xbf16>
    %35 = vector.shape_cast %34 : vector<1x64x8xbf16> to vector<64x8xbf16>
    %36 = vector.shape_cast %33 : vector<64x8xbf16> to vector<1x64x8xbf16>
    tpu.vector_store %arg8[%c0_16, %c0_17, %c0_18], %36 {strides = array<i32>} : memref<1x64x32xbf16, #tpu.memory_space<vmem>>, vector<1x64x8xbf16>,
    %37 = vector.extract_strided_slice %6 {offsets = [0, 8], sizes = [64, 8], strides = [1, 1]} : vector<64x32xbf16> to vector<64x8xbf16>
    %38 = vector.extract_strided_slice %1 {offsets = [0, 8], sizes = [16, 8], strides = [1, 1]} : vector<16x32xbf16> to vector<16x8xbf16>
    %39 = tpu.transpose %37, [1, 0] : vector<64x8xbf16> -> vector<8x64xbf16>
    %cst_19 = arith.constant dense<0.000000e+00> : vector<16x64xf32>
    %40 = tpu.matmul %38, %39, %cst_19 {dimension_numbers = #tpu.dot_dimension_numbers<[1], [0], [0], [1], [0, 0, 1, 1], [], []>} : vector<16x8xbf16>, vector<8x64xbf16>, vector<16x64xf32> -> vector<16x64xf32>
    %cst_20 = arith.constant 0.353553385 : f32
    %41 = vector.broadcast %cst_20 : f32 to vector<16x64xf32>
    %42 = arith.mulf %40, %41 : vector<16x64xf32>
    %c1 = arith.constant 1 : index
    %c0_21 = arith.constant 0 : index
    %c0_22 = arith.constant 0 : index
    %43 = vector.load %arg7[%c1, %c0_21, %c0_22] : memref<4x16x64xbf16, #tpu.memory_space<vmem>>, vector<1x16x64xbf16>
    %44 = vector.shape_cast %43 : vector<1x16x64xbf16> to vector<16x64xbf16>
    %45 = arith.extf %44 : vector<16x64xbf16> to vector<16x64xf32>
    %46 = arith.addf %42, %45 : vector<16x64xf32>
    %cst_23 = arith.constant dense<0xFF800000> : vector<64xf32>
    %47 = vector.multi_reduction <maximumf>, %46, %cst_23 [0] : vector<16x64xf32> to vector<64xf32>
    %48 = vector.shape_cast %47 : vector<64xf32> to vector<1x64xf32>
    %49 = vector.broadcast %48 : vector<1x64xf32> to vector<16x64xf32>
    %50 = arith.subf %46, %49 : vector<16x64xf32>
    %51 = math.exp %50 : vector<16x64xf32>
    %cst_24 = arith.constant dense<0.000000e+00> : vector<64xf32>
    %52 = vector.multi_reduction <add>, %51, %cst_24 [0] : vector<16x64xf32> to vector<64xf32>
    %53 = vector.shape_cast %52 : vector<64xf32> to vector<1x64xf32>
    %54 = tpu.reciprocal %53 {approx = true} : vector<1x64xf32> -> vector<1x64xf32>
    %55 = vector.broadcast %54 : vector<1x64xf32> to vector<16x64xf32>
    %56 = arith.mulf %51, %55 : vector<16x64xf32>
    %57 = arith.truncf %56 : vector<16x64xf32> to vector<16x64xbf16>
    %58 = tpu.transpose %57, [1, 0] : vector<16x64xbf16> -> vector<64x16xbf16>
    %c1_25 = arith.constant 1 : index
    %c0_26 = arith.constant 0 : index
    %c0_27 = arith.constant 0 : index
    %59 = vector.load %arg9[%c1_25, %c0_26, %c0_27] : memref<4x16x8xf32, #tpu.memory_space<vmem>>, vector<1x16x8xf32>
    %60 = vector.shape_cast %59 : vector<1x16x8xf32> to vector<16x8xf32>
    %61 = arith.truncf %60 : vector<16x8xf32> to vector<16x8xbf16>
    %cst_28 = arith.constant dense<0.000000e+00> : vector<64x8xf32>
    %62 = tpu.matmul %58, %61, %cst_28 {dimension_numbers = #tpu.dot_dimension_numbers<[1], [0], [0], [1], [0, 0, 1, 1], [], []>} : vector<64x16xbf16>, vector<16x8xbf16>, vector<64x8xf32> -> vector<64x8xf32>
    %63 = arith.truncf %62 : vector<64x8xf32> to vector<64x8xbf16>
    %c0_29 = arith.constant 0 : index
    %c0_30 = arith.constant 0 : index
    %c8 = arith.constant 8 : index
    %64 = vector.load %arg8[%c0_29, %c0_30, %c8] : memref<1x64x32xbf16, #tpu.memory_space<vmem>>, vector<1x64x8xbf16>
    %65 = vector.shape_cast %64 : vector<1x64x8xbf16> to vector<64x8xbf16>
    %66 = vector.shape_cast %63 : vector<64x8xbf16> to vector<1x64x8xbf16>
    tpu.vector_store %arg8[%c0_29, %c0_30, %c8], %66 {strides = array<i32>} : memref<1x64x32xbf16, #tpu.memory_space<vmem>>, vector<1x64x8xbf16>,
    %67 = vector.extract_strided_slice %6 {offsets = [0, 16], sizes = [64, 8], strides = [1, 1]} : vector<64x32xbf16> to vector<64x8xbf16>
    %68 = vector.extract_strided_slice %1 {offsets = [0, 16], sizes = [16, 8], strides = [1, 1]} : vector<16x32xbf16> to vector<16x8xbf16>
    %69 = tpu.transpose %67, [1, 0] : vector<64x8xbf16> -> vector<8x64xbf16>
    %cst_31 = arith.constant dense<0.000000e+00> : vector<16x64xf32>
    %70 = tpu.matmul %68, %69, %cst_31 {dimension_numbers = #tpu.dot_dimension_numbers<[1], [0], [0], [1], [0, 0, 1, 1], [], []>} : vector<16x8xbf16>, vector<8x64xbf16>, vector<16x64xf32> -> vector<16x64xf32>
    %cst_32 = arith.constant 0.353553385 : f32
    %71 = vector.broadcast %cst_32 : f32 to vector<16x64xf32>
    %72 = arith.mulf %70, %71 : vector<16x64xf32>
    %c2 = arith.constant 2 : index
    %c0_33 = arith.constant 0 : index
    %c0_34 = arith.constant 0 : index
    %73 = vector.load %arg7[%c2, %c0_33, %c0_34] : memref<4x16x64xbf16, #tpu.memory_space<vmem>>, vector<1x16x64xbf16>
    %74 = vector.shape_cast %73 : vector<1x16x64xbf16> to vector<16x64xbf16>
    %75 = arith.extf %74 : vector<16x64xbf16> to vector<16x64xf32>
    %76 = arith.addf %72, %75 : vector<16x64xf32>
    %cst_35 = arith.constant dense<0xFF800000> : vector<64xf32>
    %77 = vector.multi_reduction <maximumf>, %76, %cst_35 [0] : vector<16x64xf32> to vector<64xf32>
    %78 = vector.shape_cast %77 : vector<64xf32> to vector<1x64xf32>
    %79 = vector.broadcast %78 : vector<1x64xf32> to vector<16x64xf32>
    %80 = arith.subf %76, %79 : vector<16x64xf32>
    %81 = math.exp %80 : vector<16x64xf32>
    %cst_36 = arith.constant dense<0.000000e+00> : vector<64xf32>
    %82 = vector.multi_reduction <add>, %81, %cst_36 [0] : vector<16x64xf32> to vector<64xf32>
    %83 = vector.shape_cast %82 : vector<64xf32> to vector<1x64xf32>
    %84 = tpu.reciprocal %83 {approx = true} : vector<1x64xf32> -> vector<1x64xf32>
    %85 = vector.broadcast %84 : vector<1x64xf32> to vector<16x64xf32>
    %86 = arith.mulf %81, %85 : vector<16x64xf32>
    %87 = arith.truncf %86 : vector<16x64xf32> to vector<16x64xbf16>
    %88 = tpu.transpose %87, [1, 0] : vector<16x64xbf16> -> vector<64x16xbf16>
    %c2_37 = arith.constant 2 : index
    %c0_38 = arith.constant 0 : index
    %c0_39 = arith.constant 0 : index
    %89 = vector.load %arg9[%c2_37, %c0_38, %c0_39] : memref<4x16x8xf32, #tpu.memory_space<vmem>>, vector<1x16x8xf32>
    %90 = vector.shape_cast %89 : vector<1x16x8xf32> to vector<16x8xf32>
    %91 = arith.truncf %90 : vector<16x8xf32> to vector<16x8xbf16>
    %cst_40 = arith.constant dense<0.000000e+00> : vector<64x8xf32>
    %92 = tpu.matmul %88, %91, %cst_40 {dimension_numbers = #tpu.dot_dimension_numbers<[1], [0], [0], [1], [0, 0, 1, 1], [], []>} : vector<64x16xbf16>, vector<16x8xbf16>, vector<64x8xf32> -> vector<64x8xf32>
    %93 = arith.truncf %92 : vector<64x8xf32> to vector<64x8xbf16>
    %c0_41 = arith.constant 0 : index
    %c0_42 = arith.constant 0 : index
    %c16 = arith.constant 16 : index
    %94 = vector.load %arg8[%c0_41, %c0_42, %c16] : memref<1x64x32xbf16, #tpu.memory_space<vmem>>, vector<1x64x8xbf16>
    %95 = vector.shape_cast %94 : vector<1x64x8xbf16> to vector<64x8xbf16>
    %96 = vector.shape_cast %93 : vector<64x8xbf16> to vector<1x64x8xbf16>
    tpu.vector_store %arg8[%c0_41, %c0_42, %c16], %96 {strides = array<i32>} : memref<1x64x32xbf16, #tpu.memory_space<vmem>>, vector<1x64x8xbf16>,
    %97 = vector.extract_strided_slice %6 {offsets = [0, 24], sizes = [64, 8], strides = [1, 1]} : vector<64x32xbf16> to vector<64x8xbf16>
    %98 = vector.extract_strided_slice %1 {offsets = [0, 24], sizes = [16, 8], strides = [1, 1]} : vector<16x32xbf16> to vector<16x8xbf16>
    %99 = tpu.transpose %97, [1, 0] : vector<64x8xbf16> -> vector<8x64xbf16>
    %cst_43 = arith.constant dense<0.000000e+00> : vector<16x64xf32>
    %100 = tpu.matmul %98, %99, %cst_43 {dimension_numbers = #tpu.dot_dimension_numbers<[1], [0], [0], [1], [0, 0, 1, 1], [], []>} : vector<16x8xbf16>, vector<8x64xbf16>, vector<16x64xf32> -> vector<16x64xf32>
    %cst_44 = arith.constant 0.353553385 : f32
    %101 = vector.broadcast %cst_44 : f32 to vector<16x64xf32>
    %102 = arith.mulf %100, %101 : vector<16x64xf32>
    %c3 = arith.constant 3 : index
    %c0_45 = arith.constant 0 : index
    %c0_46 = arith.constant 0 : index
    %103 = vector.load %arg7[%c3, %c0_45, %c0_46] : memref<4x16x64xbf16, #tpu.memory_space<vmem>>, vector<1x16x64xbf16>
    %104 = vector.shape_cast %103 : vector<1x16x64xbf16> to vector<16x64xbf16>
    %105 = arith.extf %104 : vector<16x64xbf16> to vector<16x64xf32>
    %106 = arith.addf %102, %105 : vector<16x64xf32>
    %cst_47 = arith.constant dense<0xFF800000> : vector<64xf32>
    %107 = vector.multi_reduction <maximumf>, %106, %cst_47 [0] : vector<16x64xf32> to vector<64xf32>
    %108 = vector.shape_cast %107 : vector<64xf32> to vector<1x64xf32>
    %109 = vector.broadcast %108 : vector<1x64xf32> to vector<16x64xf32>
    %110 = arith.subf %106, %109 : vector<16x64xf32>
    %111 = math.exp %110 : vector<16x64xf32>
    %cst_48 = arith.constant dense<0.000000e+00> : vector<64xf32>
    %112 = vector.multi_reduction <add>, %111, %cst_48 [0] : vector<16x64xf32> to vector<64xf32>
    %113 = vector.shape_cast %112 : vector<64xf32> to vector<1x64xf32>
    %114 = tpu.reciprocal %113 {approx = true} : vector<1x64xf32> -> vector<1x64xf32>
    %115 = vector.broadcast %114 : vector<1x64xf32> to vector<16x64xf32>
    %116 = arith.mulf %111, %115 : vector<16x64xf32>
    %117 = arith.truncf %116 : vector<16x64xf32> to vector<16x64xbf16>
    %118 = tpu.transpose %117, [1, 0] : vector<16x64xbf16> -> vector<64x16xbf16>
    %c3_49 = arith.constant 3 : index
    %c0_50 = arith.constant 0 : index
    %c0_51 = arith.constant 0 : index
    %119 = vector.load %arg9[%c3_49, %c0_50, %c0_51] : memref<4x16x8xf32, #tpu.memory_space<vmem>>, vector<1x16x8xf32>
    %120 = vector.shape_cast %119 : vector<1x16x8xf32> to vector<16x8xf32>
    %121 = arith.truncf %120 : vector<16x8xf32> to vector<16x8xbf16>
    %cst_52 = arith.constant dense<0.000000e+00> : vector<64x8xf32>
    %122 = tpu.matmul %118, %121, %cst_52 {dimension_numbers = #tpu.dot_dimension_numbers<[1], [0], [0], [1], [0, 0, 1, 1], [], []>} : vector<64x16xbf16>, vector<16x8xbf16>, vector<64x8xf32> -> vector<64x8xf32>
    %123 = arith.truncf %122 : vector<64x8xf32> to vector<64x8xbf16>
    %c0_53 = arith.constant 0 : index
    %c0_54 = arith.constant 0 : index
    %c24 = arith.constant 24 : index
    %124 = vector.load %arg8[%c0_53, %c0_54, %c24] : memref<1x64x32xbf16, #tpu.memory_space<vmem>>, vector<1x64x8xbf16>
    %125 = vector.shape_cast %124 : vector<1x64x8xbf16> to vector<64x8xbf16>
    %126 = vector.shape_cast %123 : vector<64x8xbf16> to vector<1x64x8xbf16>
    tpu.vector_store %arg8[%c0_53, %c0_54, %c24], %126 {strides = array<i32>} : memref<1x64x32xbf16, #tpu.memory_space<vmem>>, vector<1x64x8xbf16>,
    return
  }
  func.func @transform_0(%arg0: i32, %arg1: i32) -> (i32, i32, i32) {
    %c0_i32 = arith.constant 0 : i32
    %c0_i32_0 = arith.constant 0 : i32
    return %arg0, %arg1, %c0_i32 : i32, i32, i32
  }
  func.func @transform_1(%arg0: i32, %arg1: i32) -> (i32, i32, i32) {
    %c0_i32 = arith.constant 0 : i32
    %c0_i32_0 = arith.constant 0 : i32
    %c0_i32_1 = arith.constant 0 : i32
    return %arg0, %c0_i32, %c0_i32_0 : i32, i32, i32
  }
  func.func @transform_2(%arg0: i32, %arg1: i32) -> (i32, i32, i32) {
    %c0_i32 = arith.constant 0 : i32
    %c0_i32_0 = arith.constant 0 : i32
    %c0_i32_1 = arith.constant 0 : i32
    return %arg0, %c0_i32, %c0_i32_0 : i32, i32, i32
  }
  func.func @transform_3(%arg0: i32, %arg1: i32) -> (i32, i32, i32) {
    %c0_i32 = arith.constant 0 : i32
    %c0_i32_0 = arith.constant 0 : i32
    %c0_i32_1 = arith.constant 0 : i32
    return %arg0, %c0_i32, %c0_i32_0 : i32, i32, i32
  }
  func.func @transform_4(%arg0: i32, %arg1: i32) -> (i32, i32, i32) {
    %c0_i32 = arith.constant 0 : i32
    %c0_i32_0 = arith.constant 0 : i32
    %c0_i32_1 = arith.constant 0 : i32
    %c0_i32_2 = arith.constant 0 : i32
    return %c0_i32, %c0_i32_0, %c0_i32_1 : i32, i32, i32
  }
  func.func @transform_5(%arg0: i32, %arg1: i32) -> (i32, i32, i32) {
    %c0_i32 = arith.constant 0 : i32
    %c0_i32_0 = arith.constant 0 : i32
    %c0_i32_1 = arith.constant 0 : i32
    return %c0_i32, %c0_i32_0, %arg1 : i32, i32, i32
  }
  func.func @transform_6(%arg0: i32, %arg1: i32) -> (i32, i32, i32) {
    %c0_i32 = arith.constant 0 : i32
    %c0_i32_0 = arith.constant 0 : i32
    return %arg0, %arg1, %c0_i32 : i32, i32, i32
  }
}

module attributes {stable_mosaic.version = 11 : i64} {
  func.func @_proj_add_kernel(%arg0: i32, %arg1: memref<64x32xbf16, #tpu.memory_space<vmem>>, %arg2: memref<64x32xbf16, #tpu.memory_space<vmem>>, %arg3: memref<32x32xbf16, #tpu.memory_space<vmem>>, %arg4: memref<1x32xf32, #tpu.memory_space<vmem>>, %arg5: memref<64x32xf32, #tpu.memory_space<vmem>>) attributes {dimension_semantics = [#tpu.dimension_semantics<parallel>], iteration_bounds = array<i64: 2>, scalar_prefetch = 0 : i64, scratch_operands = 0 : i64, tpu.core_type = #tpu.core_type<tc>, window_params = [{transform_indices = @transform_0, window_bounds = array<i64: 64, 32>}, {transform_indices = @transform_1, window_bounds = array<i64: 64, 32>}, {pipeline_mode = #tpu.pipeline_mode<synchronous>, transform_indices = @transform_2, window_bounds = array<i64: 32, 32>}, {pipeline_mode = #tpu.pipeline_mode<synchronous>, transform_indices = @transform_3, window_bounds = array<i64: 1, 32>}, {transform_indices = @transform_4, window_bounds = array<i64: 64, 32>}]} {
    %c0 = arith.constant 0 : index
    %c0_0 = arith.constant 0 : index
    %0 = vector.load %arg1[%c0, %c0_0] : memref<64x32xbf16, #tpu.memory_space<vmem>>, vector<64x32xbf16>
    %1 = arith.extf %0 : vector<64x32xbf16> to vector<64x32xf32>
    %c0_1 = arith.constant 0 : index
    %c0_2 = arith.constant 0 : index
    %2 = vector.load %arg2[%c0_1, %c0_2] : memref<64x32xbf16, #tpu.memory_space<vmem>>, vector<64x32xbf16>
    %3 = arith.extf %2 : vector<64x32xbf16> to vector<64x32xf32>
    %4 = arith.addf %1, %3 : vector<64x32xf32>
    %5 = arith.truncf %4 : vector<64x32xf32> to vector<64x32xbf16>
    %c0_3 = arith.constant 0 : index
    %c0_4 = arith.constant 0 : index
    %6 = vector.load %arg3[%c0_3, %c0_4] : memref<32x32xbf16, #tpu.memory_space<vmem>>, vector<32x32xbf16>
    %cst = arith.constant dense<0.000000e+00> : vector<64x32xf32>
    %7 = tpu.matmul %5, %6, %cst {dimension_numbers = #tpu.dot_dimension_numbers<[1], [0], [0], [1], [0, 0, 1, 1], [], []>} : vector<64x32xbf16>, vector<32x32xbf16>, vector<64x32xf32> -> vector<64x32xf32>
    %c0_5 = arith.constant 0 : index
    %c0_6 = arith.constant 0 : index
    %8 = vector.load %arg4[%c0_5, %c0_6] : memref<1x32xf32, #tpu.memory_space<vmem>>, vector<1x32xf32>
    %9 = vector.broadcast %8 : vector<1x32xf32> to vector<64x32xf32>
    %10 = arith.addf %7, %9 : vector<64x32xf32>
    %c0_7 = arith.constant 0 : index
    %c0_8 = arith.constant 0 : index
    %11 = vector.load %arg5[%c0_7, %c0_8] : memref<64x32xf32, #tpu.memory_space<vmem>>, vector<64x32xf32>
    tpu.vector_store %arg5[%c0_7, %c0_8], %10 {strides = array<i32>} : memref<64x32xf32, #tpu.memory_space<vmem>>, vector<64x32xf32>,
    return
  }
  func.func @transform_0(%arg0: i32) -> (i32, i32) {
    %c0_i32 = arith.constant 0 : i32
    %c0_i32_0 = arith.constant 0 : i32
    return %arg0, %c0_i32 : i32, i32
  }
  func.func @transform_1(%arg0: i32) -> (i32, i32) {
    %c0_i32 = arith.constant 0 : i32
    %c0_i32_0 = arith.constant 0 : i32
    return %arg0, %c0_i32 : i32, i32
  }
  func.func @transform_2(%arg0: i32) -> (i32, i32) {
    %c0_i32 = arith.constant 0 : i32
    %c0_i32_0 = arith.constant 0 : i32
    %c0_i32_1 = arith.constant 0 : i32
    return %c0_i32, %c0_i32_0 : i32, i32
  }
  func.func @transform_3(%arg0: i32) -> (i32, i32) {
    %c0_i32 = arith.constant 0 : i32
    %c0_i32_0 = arith.constant 0 : i32
    %c0_i32_1 = arith.constant 0 : i32
    return %c0_i32, %c0_i32_0 : i32, i32
  }
  func.func @transform_4(%arg0: i32) -> (i32, i32) {
    %c0_i32 = arith.constant 0 : i32
    %c0_i32_0 = arith.constant 0 : i32
    return %arg0, %c0_i32 : i32, i32
  }
}

</mosaic_0001>

<bundles_post_ra>
// kernel: agent_attention_forward.6
= control target key start
LH: loop header
LB: loop body
LE: loop exit
PB: predicated region body
PF: predicated region fallthrough
CT: control target
= control target key end

     0   :  { %s589_s12 = smov 0   ;;  %s781_s0 = inlined_call_operand.vmem [shape: bf16[2,8,8,32], index: 0, kind: input, shape index: {}]   ;;  %s782_s1 = inlined_call_operand.vmem [shape: f32[3,3,32], index: 1, kind: input, shape index: {}]   ;;  %s783_s2 = inlined_call_operand.vmem [shape: f32[1,32], index: 2, kind: input, shape index: {}]   ;;  %s784_s3 = inlined_call_operand.vmem [shape: bf16[2,8,8,32], index: 3, kind: output, shape index: {}]  }
   0x1 LB: > { %s518_s13 = sadd.s32 4294967295, %s566_s12   ;;  %p522_p0 = scmp.ge.s32.totalorder %s566_s12, 1  ;;  %s566_s12 = sphi %s589_s12, %s13_s12  }
   0x2   : > { %p137_p1 = scmp.lt.s32.totalorder %s566_s12, 3 }
   0x4   : > { %p138_p2 = pnand %p522_p0, %p137_p1 }
   0x5   : > { %vm171_vm0 = vcmask (!%p138_p2), 261120   ;;  %vm173_vm1 = vcmask (!%p138_p2), 254976   ;;  %p599_p3 = scmp.lt.s32.totalorder (!%p138_p2), %s518_s13, 1  ;;  %v252_v0 = vlaneseq (!%p138_p2)  ;;  %v568_v1 = vmov (!%p138_p2), 0.0   ;;  %v218_v3 = vld [vmem:[%s782_s1] sm:$0x7] (!%p138_p2) }
   0x6   : > { %141 = sbr.rel (%p138_p2) target bundleno = 73 (0x49), region = 32  ;;  %172 = vst.msk [vmem:[#allocation2] sm:$0xff] (!%p138_p2), %vm171_vm0, %v568_v1  ;;  %175 = vst.msk [vmem:[#allocation2 + $0x10] sm:$0xff] (!%p138_p2), %vm171_vm0, %v568_v1  ;;  %v219_v27 = vld [vmem:[%s782_s1 + $0x4] sm:$0x7] (!%p138_p2)  ;;  %vm454_vm2 = vcmask (!%p138_p2), 257024  }
   0x7   : > { %177 = vst.msk [vmem:[#allocation2 + $0x20] sm:$0xff] (!%p138_p2), %vm171_vm0, %v568_v1  ;;  %179 = vst.msk [vmem:[#allocation2 + $0x30] sm:$0xff] (!%p138_p2), %vm171_vm0, %v568_v1  ;;  %v253_v2 = vshrl.u32 (!%p138_p2), %v252_v0, 7  ;;  %v220_v31 = vld [vmem:[%s782_s1 + $0x8] sm:$0x7] (!%p138_p2) }
   0x8   : > { %181 = vst.msk [vmem:[#allocation2 + $0x40] sm:$0xff] (!%p138_p2), %vm171_vm0, %v568_v1  ;;  %183 = vst.msk [vmem:[#allocation2 + $0x50] sm:$0xff] (!%p138_p2), %vm171_vm0, %v568_v1 }
   0x9   : > { %185 = vst.msk [vmem:[#allocation2 + $0x60] sm:$0xff] (!%p138_p2), %vm171_vm0, %v568_v1  ;;  %187 = vst.msk [vmem:[#allocation2 + $0x70] sm:$0xff] (!%p138_p2), %vm171_vm0, %v568_v1  ;;  %v254_v4 = vsub.s32 (!%p138_p2), 0, %v253_v2  ;;  %v274_v5 = vsub.s32 (!%p138_p2), 1, %v253_v2  ;;  %v294_v6 = vsub.s32 (!%p138_p2), 2, %v253_v2 }
   0xa   : > { %189 = vst.msk [vmem:[#allocation2 + $0x80] sm:$0xff] (!%p138_p2), %vm171_vm0, %v568_v1  ;;  %191 = vst.msk [vmem:[#allocation2 + $0x90] sm:$0xff] (!%p138_p2), %vm171_vm0, %v568_v1 }
   0xb   : > { %174 = vst.msk [vmem:[#allocation2 + $0x8] sm:$0x3] (!%p138_p2), %vm173_vm1, %v568_v1  ;;  %176 = vst.msk [vmem:[#allocation2 + $0x18] sm:$0x3] (!%p138_p2), %vm173_vm1, %v568_v1  ;;  %v638_v10 = vrot.slane (!%p138_p2), %v218_v3, %v254_v4  ;;  %v640_v11 = vrot.slane (!%p138_p2), %v218_v3, %v274_v5  ;;  %v642_v12 = vrot.slane (!%p138_p2), %v218_v3, %v294_v6 }
   0xc   : > { %178 = vst.msk [vmem:[#allocation2 + $0x28] sm:$0x3] (!%p138_p2), %vm173_vm1, %v568_v1  ;;  %180 = vst.msk [vmem:[#allocation2 + $0x38] sm:$0x3] (!%p138_p2), %vm173_vm1, %v568_v1  ;;  %v658_v30 = vrot.slane (!%p138_p2), %v219_v27, %v254_v4  ;;  %v663_v33 = vrot.slane (!%p138_p2), %v219_v27, %v274_v5  ;;  %v667_v42 = vrot.slane (!%p138_p2), %v219_v27, %v294_v6 }
   0xd   : > { %182 = vst.msk [vmem:[#allocation2 + $0x48] sm:$0x3] %vm173_vm1, %v568_v1  ;;  %184 = vst.msk [vmem:[#allocation2 + $0x58] sm:$0x3] %vm173_vm1, %v568_v1  ;;  %s787_s13 = smov (!%p599_p3, %s518_s13), 1  ;;  %v222_v22 = vld [vmem:[#allocation2] sm:$0xff]  ;;  %v672_v46 = vrot.slane %v220_v31, %v254_v4  ;;  %v675_v51 = vrot.slane %v220_v31, %v274_v5  ;;  %v677_v52 = vrot.slane %v220_v31, %v294_v6 }
   0xe   : > { %186 = vst.msk [vmem:[#allocation2 + $0x68] sm:$0x3] %vm173_vm1, %v568_v1  ;;  %188 = vst.msk [vmem:[#allocation2 + $0x78] sm:$0x3] %vm173_vm1, %v568_v1  ;;  %s530_s17 = sshll.u32 %s787_s13, 5  ;;  %v256_v25 = vmul.f32 %v638_v10, %v222_v22 }
   0xf   : > { %190 = vst.msk [vmem:[#allocation2 + $0x88] sm:$0x3] %vm173_vm1, %v568_v1  ;;  %192 = vst.msk [vmem:[#allocation2 + $0x98] sm:$0x3] %vm173_vm1, %v568_v1  ;;  %s165_s20 = scalar_lea.vmem %s781_s0, %s530_s17  ;;  %v702_v31 = vld [vmem:[%s783_s2] ss:$0 sm:$0xff]  ;;  %s718_s29 = scalar_lea.vmem %s784_s3, %s530_s17 }
  0x10   : > { %v533_v7 = vld [vmem:[%s165_s20] sm:$0xff]   ;;  %v548_v8 = vld [vmem:[%s165_s20 + $0x8] sm:$0xff]   ;;  %v549_v9 = vld [vmem:[%s165_s20 + $0x10] sm:$0xff]  }
  0x11   : > { %v534_v13 = vunpack.c.l.bf16 %v533_v7  ;;  %v535_v14 = vunpack.c.h.bf16 %v533_v7  ;;  %v538_v15 = vunpack.c.l.bf16 %v548_v8  ;;  %v539_v16 = vunpack.c.h.bf16 %v548_v8  ;;  %v550_v17 = vld [vmem:[%s165_s20 + $0x18] sm:$0xff]  }
  0x12   : > { %v542_v18 = vunpack.c.l.bf16 %v549_v9  ;;  %v543_v19 = vunpack.c.h.bf16 %v549_v9  ;;  %v546_v20 = vunpack.c.l.bf16 %v550_v17  ;;  %v547_v21 = vunpack.c.h.bf16 %v550_v17  ;;  %v232_v23 = vld [vmem:[#allocation2 + $0x1] sm:$0xff] }
  0x13   : > { %v242_v24 = vld [vmem:[#allocation2 + $0x2] sm:$0xff]  ;;  %210 = vst.msk [vmem:[#allocation2 + $0x11] sm:$0xff] %vm171_vm0, %v534_v13  ;;  %211 = vst.msk [vmem:[#allocation2 + $0x21] sm:$0xff] %vm171_vm0, %v535_v14  ;;  %v276_v26 = vmul.f32 %v640_v11, %v232_v23 }
  0x14   : > { %212 = vst.msk [vmem:[#allocation2 + $0x31] sm:$0xff] %vm171_vm0, %v538_v15  ;;  %213 = vst.msk [vmem:[#allocation2 + $0x41] sm:$0xff] %vm171_vm0, %v539_v16  ;;  %v296_v29 = vmul.f32 %v642_v12, %v242_v24 }
  0x15   : > { %214 = vst.msk [vmem:[#allocation2 + $0x51] sm:$0xff] %vm171_vm0, %v542_v18  ;;  %215 = vst.msk [vmem:[#allocation2 + $0x61] sm:$0xff] %vm171_vm0, %v543_v19  ;;  %v284_v28 = vadd.f32 %v276_v26, %v256_v25 }
  0x16   : > { %216 = vst.msk [vmem:[#allocation2 + $0x71] sm:$0xff] %vm171_vm0, %v546_v20  ;;  %217 = vst.msk [vmem:[#allocation2 + $0x81] sm:$0xff] %vm171_vm0, %v547_v21 }
  0x17   : > { %v304_v32 = vadd.f32 %v296_v29, %v284_v28 }
  0x1a   : > { %v223_v34 = vld [vmem:[#allocation2 + $0x10] sm:$0xff]  ;;  %v224_v35 = vld [vmem:[#allocation2 + $0x20] sm:$0xff] }
  0x1b   : > { %v233_v36 = vld [vmem:[#allocation2 + $0x11] sm:$0xff]  ;;  %v234_v37 = vld [vmem:[#allocation2 + $0x21] sm:$0xff]  ;;  %v258_v40 = vmul.f32 %v638_v10, %v224_v35  ;;  %v316_v41 = vmul.f32 %v658_v30, %v223_v34  ;;  %v257_v43 = vmul.f32 %v638_v10, %v223_v34  ;;  %v317_v56 = vmul.f32 %v658_v30, %v224_v35 }
  0x1c   : > { %v243_v38 = vld [vmem:[#allocation2 + $0x12] sm:$0xff]  ;;  %v244_v39 = vld [vmem:[#allocation2 + $0x22] sm:$0xff]  ;;  %v277_v44 = vmul.f32 %v640_v11, %v233_v36  ;;  %v278_v45 = vmul.f32 %v640_v11, %v234_v37  ;;  %v336_v50 = vmul.f32 %v663_v33, %v233_v36  ;;  %v337_v63 = vmul.f32 %v663_v33, %v234_v37 }
  0x1d   : > { %v225_v47 = vld [vmem:[#allocation2 + $0x30] sm:$0xff]  ;;  %v324_v49 = vadd.f32 %v316_v41, %v304_v32  ;;  %v297_v54 = vmul.f32 %v642_v12, %v243_v38  ;;  %v298_v55 = vmul.f32 %v642_v12, %v244_v39  ;;  %v356_v58 = vmul.f32 %v667_v42, %v243_v38  ;;  %v226_v2 = vld [vmem:[#allocation2 + $0x40] sm:$0xff] }
  0x1e   : > { %v235_v48 = vld [vmem:[#allocation2 + $0x31] sm:$0xff]  ;;  %v286_v53 = vadd.f32 %v278_v45, %v258_v40  ;;  %v259_v60 = vmul.f32 %v638_v10, %v225_v47  ;;  %v357_v0 = vmul.f32 %v667_v42, %v244_v39  ;;  %v285_v1 = vadd.f32 %v277_v44, %v257_v43  ;;  %v236_v3 = vld [vmem:[#allocation2 + $0x41] sm:$0xff] }
  0x1f   : > { %v344_v57 = vadd.f32 %v336_v50, %v324_v49  ;;  %v245_v59 = vld [vmem:[#allocation2 + $0x32] sm:$0xff]  ;;  %v279_v61 = vmul.f32 %v640_v11, %v235_v48  ;;  %v376_v5 = vmul.f32 %v672_v46, %v224_v35  ;;  %v396_v6 = vmul.f32 %v675_v51, %v234_v37  ;;  %v246_v17 = vld [vmem:[#allocation2 + $0x42] sm:$0xff] }
  0x20   : > { %v306_v62 = vadd.f32 %v298_v55, %v286_v53  ;;  %v416_v8 = vmul.f32 %v677_v52, %v244_v39  ;;  %v299_v9 = vmul.f32 %v642_v12, %v245_v59  ;;  %v305_v13 = vadd.f32 %v297_v54, %v285_v1  ;;  %v227_v24 = vld [vmem:[#allocation2 + $0x50] sm:$0xff] }
  0x21   : > { %v364_v4 = vadd.f32 %v356_v58, %v344_v57  ;;  %v287_v7 = vadd.f32 %v279_v61, %v259_v60  ;;  %v318_v14 = vmul.f32 %v658_v30, %v225_v47  ;;  %v338_v16 = vmul.f32 %v663_v33, %v235_v48  ;;  %v237_v29 = vld [vmem:[#allocation2 + $0x51] sm:$0xff]  ;;  %v228_v58 = vld [vmem:[#allocation2 + $0x60] sm:$0xff] }
  0x22   : > { %v260_v18 = vmul.f32 %v638_v10, %v226_v2  ;;  %v280_v19 = vmul.f32 %v640_v11, %v236_v3  ;;  %v325_v20 = vadd.f32 %v317_v56, %v305_v13  ;;  %v358_v21 = vmul.f32 %v667_v42, %v245_v59  ;;  %v247_v45 = vld [vmem:[#allocation2 + $0x52] sm:$0xff] }
  0x23   : > { %v384_v15 = vadd.f32 %v376_v5, %v364_v4  ;;  %v377_v22 = vmul.f32 %v672_v46, %v225_v47  ;;  %v326_v23 = vadd.f32 %v318_v14, %v306_v62  ;;  %v307_v26 = vadd.f32 %v299_v9, %v287_v7  ;;  %v248_v14 = vld [vmem:[#allocation2 + $0x62] sm:$0xff] }
  0x24   : > { %v397_v27 = vmul.f32 %v675_v51, %v235_v48  ;;  %v417_v28 = vmul.f32 %v677_v52, %v245_v59  ;;  %v345_v32 = vadd.f32 %v337_v63, %v325_v20  ;;  %v288_v34 = vadd.f32 %v280_v19, %v260_v18  ;;  %v238_v59 = vld [vmem:[#allocation2 + $0x61] sm:$0xff]  ;;  %v229_v20 = vld [vmem:[#allocation2 + $0x70] sm:$0xff] }
  0x25   : > { %v404_v25 = vadd.f32 %v396_v6, %v384_v15  ;;  %v300_v35 = vmul.f32 %v642_v12, %v246_v17  ;;  %v346_v36 = vadd.f32 %v338_v16, %v326_v23  ;;  %v319_v38 = vmul.f32 %v658_v30, %v226_v2 }
  0x26   : > { %v339_v39 = vmul.f32 %v663_v33, %v236_v3  ;;  %v261_v40 = vmul.f32 %v638_v10, %v227_v24  ;;  %v365_v41 = vadd.f32 %v357_v0, %v345_v32  ;;  %v378_v44 = vmul.f32 %v672_v46, %v226_v2 }
  0x27   : > { %v424_v37 = vadd.f32 %v416_v8, %v404_v25  ;;  %v366_v43 = vadd.f32 %v358_v21, %v346_v36  ;;  %v281_v47 = vmul.f32 %v640_v11, %v237_v29  ;;  %v359_v49 = vmul.f32 %v667_v42, %v246_v17  ;;  %v239_v25 = vld [vmem:[#allocation2 + $0x71] sm:$0xff] }
  0x28   : > { %v398_v50 = vmul.f32 %v675_v51, %v236_v3  ;;  %v327_v53 = vadd.f32 %v319_v38, %v307_v26  ;;  %v385_v54 = vadd.f32 %v377_v22, %v365_v41  ;;  %v308_v55 = vadd.f32 %v300_v35, %v288_v34  ;;  %v249_v36 = vld [vmem:[#allocation2 + $0x72] sm:$0xff] }
  0x29   : > { %v438_v48 = vadd.f32 %v702_v31, %v424_v37  ;;  %v386_v56 = vadd.f32 %v378_v44, %v366_v43  ;;  %v418_v57 = vmul.f32 %v677_v52, %v246_v17  ;;  %v289_v61 = vadd.f32 %v281_v47, %v261_v40  ;;  %v230_v43 = vld [vmem:[#allocation2 + $0x80] sm:$0xff] }
  0x2a   : > { %v301_v62 = vmul.f32 %v642_v12, %v247_v45  ;;  %v347_v63 = vadd.f32 %v339_v39, %v327_v53  ;;  %v405_v0 = vadd.f32 %v397_v27, %v385_v54  ;;  %v320_v2 = vmul.f32 %v658_v30, %v227_v24 }
  0x2b   : > { %v446_v60 = vpack.c.bf16 %v438_v48, %v438_v48  ;;  %v406_v1 = vadd.f32 %v398_v50, %v386_v56  ;;  %v340_v3 = vmul.f32 %v663_v33, %v237_v29  ;;  %v379_v5 = vmul.f32 %v672_v46, %v227_v24  ;;  %v240_v56 = vld [vmem:[#allocation2 + $0x81] sm:$0xff] }
  0x2c   : > { %v367_v4 = vadd.f32 %v359_v49, %v347_v63  ;;  %v262_v6 = vmul.f32 %v638_v10, %v228_v58  ;;  %v282_v7 = vmul.f32 %v640_v11, %v238_v59  ;;  %v425_v8 = vadd.f32 %v417_v28, %v405_v0 }
  0x2d   : > { %455 = vst.msk [vmem:[%s718_s29] sm:$0xf] %vm454_vm2, %v446_v60  ;;  %v426_v9 = vadd.f32 %v418_v57, %v406_v1  ;;  %v360_v13 = vmul.f32 %v667_v42, %v247_v45  ;;  %v328_v15 = vadd.f32 %v320_v2, %v308_v55  ;;  %v309_v16 = vadd.f32 %v301_v62, %v289_v61  ;;  %v231_v62 = vld [vmem:[#allocation2 + $0x90] sm:$0xff]  ;;  %v250_v1 = vld [vmem:[#allocation2 + $0x82] sm:$0xff] }
  0x2e   : > { %v387_v17 = vadd.f32 %v379_v5, %v367_v4  ;;  %v399_v18 = vmul.f32 %v675_v51, %v237_v29  ;;  %v290_v19 = vadd.f32 %v282_v7, %v262_v6  ;;  %v439_v21 = vadd.f32 %v702_v31, %v425_v8 }
  0x2f   : > { %v440_v22 = vadd.f32 %v702_v31, %v426_v9  ;;  %v419_v23 = vmul.f32 %v677_v52, %v247_v45  ;;  %v348_v24 = vadd.f32 %v340_v3, %v328_v15  ;;  %v302_v27 = vmul.f32 %v642_v12, %v248_v14 }
  0x30   : > { %v407_v26 = vadd.f32 %v399_v18, %v387_v17  ;;  %v321_v28 = vmul.f32 %v658_v30, %v228_v58  ;;  %v380_v32 = vmul.f32 %v672_v46, %v228_v58  ;;  %v447_v29 = vpack.c.bf16 %v439_v21, %v439_v21  ;;  %v241_v18 = vld [vmem:[#allocation2 + $0x91] sm:$0xff] }
  0x31   : > { %v448_v34 = vpack.c.bf16 %v440_v22, %v440_v22  ;;  %v368_v35 = vadd.f32 %v360_v13, %v348_v24  ;;  %v263_v37 = vmul.f32 %v638_v10, %v229_v20  ;;  %v310_v39 = vadd.f32 %v302_v27, %v290_v19 }
  0x32   : > { %v427_v38 = vadd.f32 %v419_v23, %v407_v26  ;;  %v341_v40 = vmul.f32 %v663_v33, %v238_v59  ;;  %v283_v41 = vmul.f32 %v640_v11, %v239_v25  ;;  %456 = vst.msk [vmem:[%s718_s29 + $0x4] sm:$0xf] %vm454_vm2, %v447_v29  ;;  %v361_v44 = vmul.f32 %v667_v42, %v248_v14  ;;  %v251_v23 = vld [vmem:[#allocation2 + $0x92] sm:$0xff] }
  0x33   : > { %457 = vst.msk [vmem:[%s718_s29 + $0x8] sm:$0xf] %vm454_vm2, %v448_v34  ;;  %v388_v45 = vadd.f32 %v380_v32, %v368_v35  ;;  %v400_v47 = vmul.f32 %v675_v51, %v238_v59  ;;  %v329_v48 = vadd.f32 %v321_v28, %v309_v16  ;;  %v303_v50 = vmul.f32 %v642_v12, %v249_v36 }
  0x34   : > { %v441_v49 = vadd.f32 %v702_v31, %v427_v38  ;;  %v291_v10 = vadd.f32 %v283_v41, %v263_v37  ;;  %v322_v53 = vmul.f32 %v658_v30, %v229_v20  ;;  %v420_v54 = vmul.f32 %v677_v52, %v248_v14 }
  0x35   : > { %v408_v11 = vadd.f32 %v400_v47, %v388_v45  ;;  %v349_v55 = vadd.f32 %v341_v40, %v329_v48  ;;  %v323_v57 = vmul.f32 %v658_v30, %v230_v43  ;;  %v342_v59 = vmul.f32 %v663_v33, %v239_v25 }
  0x36   : > { %v449_v58 = vpack.c.bf16 %v441_v49, %v441_v49  ;;  %v311_v60 = vadd.f32 %v303_v50, %v291_v10  ;;  %v330_v61 = vadd.f32 %v322_v53, %v310_v39  ;;  %v381_v12 = vmul.f32 %v672_v46, %v229_v20 }
  0x37   : > { %v428_v63 = vadd.f32 %v420_v54, %v408_v11  ;;  %v369_v0 = vadd.f32 %v361_v44, %v349_v55  ;;  %v362_v2 = vmul.f32 %v667_v42, %v249_v36  ;;  %v343_v3 = vmul.f32 %v663_v33, %v240_v56 }
  0x38   : > { %458 = vst.msk [vmem:[%s718_s29 + $0xc] sm:$0xf] %vm454_vm2, %v449_v58  ;;  %v350_v4 = vadd.f32 %v342_v59, %v330_v61  ;;  %v331_v5 = vadd.f32 %v323_v57, %v311_v60  ;;  %v401_v7 = vmul.f32 %v675_v51, %v239_v25  ;;  %v383_v8 = vmul.f32 %v672_v46, %v231_v62 }
  0x39   : > { %v442_v30 = vadd.f32 %v702_v31, %v428_v63  ;;  %v389_v6 = vadd.f32 %v381_v12, %v369_v0  ;;  %v363_v9 = vmul.f32 %v667_v42, %v250_v1  ;;  %v382_v14 = vmul.f32 %v672_v46, %v230_v43 }
  0x3a   : > { %v370_v13 = vadd.f32 %v362_v2, %v350_v4  ;;  %v351_v15 = vadd.f32 %v343_v3, %v331_v5  ;;  %v421_v33 = vmul.f32 %v677_v52, %v249_v36  ;;  %v402_v20 = vmul.f32 %v675_v51, %v240_v56 }
  0x3b   : > { %v450_v16 = vpack.c.bf16 %v442_v30, %v442_v30  ;;  %v409_v17 = vadd.f32 %v401_v7, %v389_v6  ;;  %v422_v46 = vmul.f32 %v677_v52, %v250_v1  ;;  %v403_v25 = vmul.f32 %v675_v51, %v241_v18 }
  0x3c   : > { %v390_v19 = vadd.f32 %v382_v14, %v370_v13  ;;  %v371_v21 = vadd.f32 %v363_v9, %v351_v15  ;;  %v423_v32 = vmul.f32 %v677_v52, %v251_v23 }
  0x3d   : > { %459 = vst.msk [vmem:[%s718_s29 + $0x10] sm:$0xf] %vm454_vm2, %v450_v16  ;;  %v429_v22 = vadd.f32 %v421_v33, %v409_v17 }
  0x3e   : > { %v410_v42 = vadd.f32 %v402_v20, %v390_v19  ;;  %v391_v24 = vadd.f32 %v383_v8, %v371_v21 }
  0x3f   : > { %v443_v26 = vadd.f32 %v702_v31, %v429_v22 }
  0x40   : > { %v430_v27 = vadd.f32 %v422_v46, %v410_v42  ;;  %v411_v28 = vadd.f32 %v403_v25, %v391_v24 }
  0x41   : > { %v451_v29 = vpack.c.bf16 %v443_v26, %v443_v26 }
  0x42   : > { %v444_v34 = vadd.f32 %v702_v31, %v430_v27  ;;  %v431_v35 = vadd.f32 %v423_v32, %v411_v28 }
  0x43   : > { %460 = vst.msk [vmem:[%s718_s29 + $0x14] sm:$0xf] %vm454_vm2, %v451_v29 }
  0x44   : > { %v452_v36 = vpack.c.bf16 %v444_v34, %v444_v34  ;;  %v445_v37 = vadd.f32 %v702_v31, %v431_v35 }
  0x46   : > { %461 = vst.msk [vmem:[%s718_s29 + $0x18] sm:$0xf] %vm454_vm2, %v452_v36  ;;  %v453_v38 = vpack.c.bf16 %v445_v37, %v445_v37 }
  0x48   : > { %462 = vst.msk [vmem:[%s718_s29 + $0x1c] sm:$0xf] %vm454_vm2, %v453_v38 }
  0x49 PF: > { %s13_s12 = sadd.s32 1, %s566_s12  }
  0x4a   : > { %p10_p4 = scmp.ge.s32.totalorder %s13_s12, 4  }
  0x4c   :  { %12 = sbr.rel (!%p10_p4) target bundleno = 1 (0x1), region = 63 }

// kernel: agent_attention_forward.4
= control target key start
LH: loop header
LB: loop body
LE: loop exit
PB: predicated region body
PF: predicated region fallthrough
CT: control target
= control target key end

     0   :  { %s1016_s21 = smov 0   ;;  %s1119_s0 = inlined_call_operand.vmem [shape: bf16[128,32], index: 0, kind: input, shape index: {}]   ;;  %s1120_s1 = inlined_call_operand.vmem [shape: bf16[32,32], index: 1, kind: input, shape index: {}]   ;;  %s1121_s2 = inlined_call_operand.vmem [shape: bf16[32,32], index: 2, kind: input, shape index: {}]   ;;  %s1122_s3 = inlined_call_operand.vmem [shape: bf16[32,32], index: 3, kind: input, shape index: {}]   ;;  %s1123_s4 = inlined_call_operand.vmem [shape: bf16[128,32], index: 4, kind: output, shape index: {0}]   ;;  %s1124_s5 = inlined_call_operand.vmem [shape: bf16[128,32], index: 5, kind: output, shape index: {1}]   ;;  %s1125_s6 = inlined_call_operand.vmem [shape: bf16[128,32], index: 6, kind: output, shape index: {2}]  }
   0x1 LB: > { %s812_s22 = sadd.s32 4294967295, %s979_s21   ;;  %p816_p0 = scmp.ge.s32.totalorder %s979_s21, 1  ;;  %s979_s21 = sphi %s1016_s21, %s17_s21  }
   0x2   : > { %p218_p1 = scmp.lt.s32.totalorder %s979_s21, 3 }
   0x4   : > { %p219_p2 = pnand %p816_p0, %p218_p1 }
   0x5   : > { %v963_v0 = vld [vmem:[%s1120_s1] sm:$0xff] (!%p219_p2)   ;;  %s817_s25 = sshll.u32 (!%p219_p2), %s812_s22, 3  ;;  %v964_v1 = vld [vmem:[%s1120_s1 + $0x8] sm:$0xff] (!%p219_p2)   ;;  %vm327_vm0 = vcmask (!%p219_p2), 261120   ;;  %vm437_vm1 = vcmask (!%p219_p2), 257024  }
   0x6   : > { %222 = sbr.rel (%p219_p2) target bundleno = 252 (0xfc), region = 36  ;;  %p259_p3 = scmp.lt.s32.totalorder (!%p219_p2), %s817_s25, 15  ;;  %915 = vmatprep.subr.bf16.mxu0 (!%p219_p2), %v963_v0  ;;  %951 = vmatprep.subr.bf16.mxu1 (!%p219_p2), %v963_v0  ;;  %v969_v2 = vld [vmem:[%s1121_s2] sm:$0xff] (!%p219_p2)   ;;  %v972_v5 = vld [vmem:[%s1122_s3 + $0x8] sm:$0xff] (!%p219_p2)  }
   0x7   : > { %916 = vmatpush3.bf16.msra.mxu0 (!%p219_p2), %v963_v0  ;;  %953 = vmatpush3.bf16.msra.mxu1 (!%p219_p2), %v963_v0  ;;  %v970_v3 = vld [vmem:[%s1122_s3] sm:$0xff] (!%p219_p2)   ;;  %v971_v7 = vld [vmem:[%s1121_s2 + $0x8] sm:$0xff] (!%p219_p2)  }
   0x8   : > { %917 = vmatprep.subr.bf16.mxu0 (!%p219_p2), %v964_v1  ;;  %952 = vmatprep.subr.bf16.mxu1 (!%p219_p2), %v964_v1 }
   0xb   : > { %918 = vmatpush3.bf16.msra.mxu0 (!%p219_p2), %v964_v1  ;;  %954 = vmatpush3.bf16.msra.mxu1 (!%p219_p2), %v964_v1 }
   0xc   : > { %927 = vmatprep.subr.bf16.mxu1 (!%p219_p2), %v969_v2  ;;  %939 = vmatprep.subr.bf16.mxu0 (!%p219_p2), %v970_v3 }
   0xd   : > { %s1127_s25 = smov (!%p259_p3, %s817_s25), 15 }
   0xe   : > { %s1036_s8 = sshll.u32 %s1127_s25, 2 }
   0xf   : > { %s262_s11 = scalar_lea.vmem %s1119_s0, %s1036_s8  ;;  %s268_s18 = scalar_lea.vmem %s1123_s4, %s1036_s8 }
  0x10   : > { %v965_v4 = vld [vmem:[%s262_s11] sm:$0xff]   ;;  %v966_v6 = vld [vmem:[%s262_s11 + $0x10] sm:$0xff]   ;;  %v967_v8 = vld [vmem:[%s262_s11 + $0x8] sm:$0xff]   ;;  %s1076_s22 = scalar_lea.vmem %s1125_s6, %s1036_s8  ;;  %s1082_s25 = scalar_lea.vmem %s1124_s5, %s1036_s8 }
  0x11   : > { %919 = vmatprep.mubr.msk.bf16.mxu0 %vm327_vm0, %v965_v4  ;;  %923 = vmatprep.mubr.msk.bf16.mxu1 %vm327_vm0, %v966_v6  ;;  %v968_v9 = vld [vmem:[%s262_s11 + $0x18] sm:$0xff]  }
  0x12   : > { %920 = vmatmul.mubr.msk.bf16.vlgmr.msra.gmra.mrb[0].mxu0 %vm327_vm0, %v967_v8  ;;  %924 = vmatmul.mubr.msk.bf16.vlgmr.msra.gmra.mrb[0].mxu1 %vm327_vm0, %v968_v9 }
  0x13   : > { %940 = vmatpush3.bf16.msra.mxu0 %v970_v3  ;;  %928 = vmatpush3.bf16.msra.mxu1 %v969_v2 }
  0x14   : > { %941 = vmatprep.subr.bf16.mxu0 %v972_v5  ;;  %929 = vmatprep.subr.bf16.mxu1 %v971_v7 }
  0x15   : > { %931 = vmatprep.mubr.msk.bf16.mxu1 %vm327_vm0, %v965_v4  ;;  %943 = vmatprep.mubr.msk.bf16.mxu0 %vm327_vm0, %v965_v4 }
  0x17   : > { %942 = vmatpush3.bf16.msra.mxu0 %v972_v5  ;;  %930 = vmatpush3.bf16.msra.mxu1 %v971_v7 }
  0x1a   : > { %944 = vmatmul.mubr.msk.bf16.vlgmr.msra.gmra.mrb[4].mxu0 %vm327_vm0, %v967_v8  ;;  %932 = vmatmul.mubr.msk.bf16.vlgmr.msra.gmra.mrb[4].mxu1 %vm327_vm0, %v967_v8 }
  0x1b   : > { %947 = vmatprep.mubr.msk.bf16.mxu0 %vm327_vm0, %v966_v6  ;;  %935 = vmatprep.mubr.msk.bf16.mxu1 %vm327_vm0, %v966_v6 }
  0x22   : > { %948 = vmatmul.mubr.msk.bf16.gmra.mrb[8].mxu0 %vm327_vm0, %v968_v9  ;;  %936 = vmatmul.mubr.msk.bf16.gmra.mrb[8].mxu1 %vm327_vm0, %v968_v9 }
  0xe5   : > { %v921_v10 = vpop.f32.mrb[0].mxu0  ;;  %v925_v12 = vpop.f32.mrb[0].mxu1 }
  0xe6   : > { %v875_v11 = vpack.c.bf16 %v921_v10, %v921_v10  ;;  %v374_v13 = vpop.f32.mrb[1].mxu0  ;;  %v879_v14 = vpack.c.bf16 %v925_v12, %v925_v12  ;;  %v390_v16 = vpop.f32.mrb[1].mxu1 }
  0xe7   : > { %v873_v15 = vpack.c.bf16 %v374_v13, %v374_v13  ;;  %v922_v17 = vpop.f32.mrb[2].mxu0  ;;  %v877_v18 = vpack.c.bf16 %v390_v16, %v390_v16  ;;  %v926_v20 = vpop.f32.mrb[2].mxu1 }
  0xe8   : > { %440 = vst.msk [vmem:[%s268_s18 + $0x8] sm:$0xf] %vm437_vm1, %v875_v11  ;;  %v876_v19 = vpack.c.bf16 %v922_v17, %v922_v17  ;;  %v377_v21 = vpop.f32.mrb[3].mxu0  ;;  %444 = vst.msk [vmem:[%s268_s18 + $0x18] sm:$0xf] %vm437_vm1, %v879_v14  ;;  %v880_v22 = vpack.c.bf16 %v926_v20, %v926_v20  ;;  %v393_v24 = vpop.f32.mrb[3].mxu1 }
  0xe9   : > { %438 = vst.msk [vmem:[%s268_s18] sm:$0xf] %vm437_vm1, %v873_v15  ;;  %v874_v23 = vpack.c.bf16 %v377_v21, %v377_v21  ;;  %442 = vst.msk [vmem:[%s268_s18 + $0x10] sm:$0xf] %vm437_vm1, %v877_v18  ;;  %v878_v25 = vpack.c.bf16 %v393_v24, %v393_v24 }
  0xea   : > { %441 = vst.msk [vmem:[%s268_s18 + $0xc] sm:$0xf] %vm437_vm1, %v876_v19  ;;  %445 = vst.msk [vmem:[%s268_s18 + $0x1c] sm:$0xf] %vm437_vm1, %v880_v22 }
  0xeb   : > { %439 = vst.msk [vmem:[%s268_s18 + $0x4] sm:$0xf] %vm437_vm1, %v874_v23  ;;  %443 = vst.msk [vmem:[%s268_s18 + $0x14] sm:$0xf] %vm437_vm1, %v878_v25 }
  0xed   : > { %v945_v26 = vpop.f32.mrb[4].mxu0  ;;  %v933_v27 = vpop.f32.mrb[4].mxu1 }
  0xee   : > { %v891_v28 = vpack.c.bf16 %v945_v26, %v945_v26  ;;  %v617_v29 = vpop.f32.mrb[5].mxu0  ;;  %v883_v30 = vpack.c.bf16 %v933_v27, %v933_v27  ;;  %v496_v31 = vpop.f32.mrb[5].mxu1 }
  0xef   : > { %v889_v32 = vpack.c.bf16 %v617_v29, %v617_v29  ;;  %v946_v33 = vpop.f32.mrb[6].mxu0  ;;  %v881_v34 = vpack.c.bf16 %v496_v31, %v496_v31  ;;  %v934_v35 = vpop.f32.mrb[6].mxu1 }
  0xf0   : > { %682 = vst.msk [vmem:[%s1076_s22 + $0x8] sm:$0xf] %vm437_vm1, %v891_v28  ;;  %v892_v36 = vpack.c.bf16 %v946_v33, %v946_v33  ;;  %v620_v37 = vpop.f32.mrb[7].mxu0  ;;  %561 = vst.msk [vmem:[%s1082_s25 + $0x8] sm:$0xf] %vm437_vm1, %v883_v30  ;;  %v884_v38 = vpack.c.bf16 %v934_v35, %v934_v35  ;;  %v499_v39 = vpop.f32.mrb[7].mxu1 }
  0xf1   : > { %680 = vst.msk [vmem:[%s1076_s22] sm:$0xf] %vm437_vm1, %v889_v32  ;;  %v890_v40 = vpack.c.bf16 %v620_v37, %v620_v37  ;;  %559 = vst.msk [vmem:[%s1082_s25] sm:$0xf] %vm437_vm1, %v881_v34  ;;  %v882_v41 = vpack.c.bf16 %v499_v39, %v499_v39 }
  0xf2   : > { %683 = vst.msk [vmem:[%s1076_s22 + $0xc] sm:$0xf] %vm437_vm1, %v892_v36  ;;  %562 = vst.msk [vmem:[%s1082_s25 + $0xc] sm:$0xf] %vm437_vm1, %v884_v38 }
  0xf3   : > { %681 = vst.msk [vmem:[%s1076_s22 + $0x4] sm:$0xf] %vm437_vm1, %v890_v40  ;;  %560 = vst.msk [vmem:[%s1082_s25 + $0x4] sm:$0xf] %vm437_vm1, %v882_v41 }
  0xf5   : > { %v949_v42 = vpop.f32.mrb[8].mxu0  ;;  %v937_v43 = vpop.f32.mrb[8].mxu1 }
  0xf6   : > { %v895_v44 = vpack.c.bf16 %v949_v42, %v949_v42  ;;  %v633_v45 = vpop.f32.mrb[9].mxu0  ;;  %v887_v46 = vpack.c.bf16 %v937_v43, %v937_v43  ;;  %v512_v47 = vpop.f32.mrb[9].mxu1 }
  0xf7   : > { %v893_v48 = vpack.c.bf16 %v633_v45, %v633_v45  ;;  %v950_v49 = vpop.f32.mrb[10].mxu0  ;;  %v885_v50 = vpack.c.bf16 %v512_v47, %v512_v47  ;;  %v938_v51 = vpop.f32.mrb[10].mxu1 }
  0xf8   : > { %686 = vst.msk [vmem:[%s1076_s22 + $0x18] sm:$0xf] %vm437_vm1, %v895_v44  ;;  %v896_v52 = vpack.c.bf16 %v950_v49, %v950_v49  ;;  %v636_v53 = vpop.f32.mrb[11].mxu0  ;;  %565 = vst.msk [vmem:[%s1082_s25 + $0x18] sm:$0xf] %vm437_vm1, %v887_v46  ;;  %v888_v54 = vpack.c.bf16 %v938_v51, %v938_v51  ;;  %v515_v55 = vpop.f32.mrb[11].mxu1 }
  0xf9   : > { %684 = vst.msk [vmem:[%s1076_s22 + $0x10] sm:$0xf] %vm437_vm1, %v893_v48  ;;  %v894_v56 = vpack.c.bf16 %v636_v53, %v636_v53  ;;  %563 = vst.msk [vmem:[%s1082_s25 + $0x10] sm:$0xf] %vm437_vm1, %v885_v50  ;;  %v886_v57 = vpack.c.bf16 %v515_v55, %v515_v55 }
  0xfa   : > { %687 = vst.msk [vmem:[%s1076_s22 + $0x1c] sm:$0xf] %vm437_vm1, %v896_v52  ;;  %566 = vst.msk [vmem:[%s1082_s25 + $0x1c] sm:$0xf] %vm437_vm1, %v888_v54 }
  0xfb   : > { %685 = vst.msk [vmem:[%s1076_s22 + $0x14] sm:$0xf] %vm437_vm1, %v894_v56  ;;  %564 = vst.msk [vmem:[%s1082_s25 + $0x14] sm:$0xf] %vm437_vm1, %v886_v57 }
  0xfc PF: > { %s17_s21 = sadd.s32 1, %s979_s21  }
  0xfd   : > { %p14_p4 = scmp.ge.s32.totalorder %s17_s21, 4  }
  0xff   :  { %16 = sbr.rel (!%p14_p4) target bundleno = 1 (0x1), region = 90 }

// kernel: agent_attention_forward.7
= control target key start
LH: loop header
LB: loop body
LE: loop exit
PB: predicated region body
PF: predicated region fallthrough
CT: control target
= control target key end

     0   :  { %s568_s15 = smov 0   ;;  %s613_s0 = inlined_call_operand.vmem [shape: bf16[128,32], index: 0, kind: input, shape index: {}]   ;;  %s614_s1 = inlined_call_operand.vmem [shape: bf16[128,32], index: 1, kind: input, shape index: {}]   ;;  %s615_s2 = inlined_call_operand.vmem [shape: bf16[32,32], index: 2, kind: input, shape index: {}]   ;;  %s616_s3 = inlined_call_operand.vmem [shape: f32[1,32], index: 3, kind: input, shape index: {}]   ;;  %s617_s4 = inlined_call_operand.vmem [shape: f32[128,32], index: 4, kind: output, shape index: {}]  }
   0x1 LB: > { %s445_s16 = sadd.s32 4294967295, %s541_s15   ;;  %p449_p0 = scmp.ge.s32.totalorder %s541_s15, 1  ;;  %s541_s15 = sphi %s568_s15, %s14_s15  }
   0x2   : > { %p174_p1 = scmp.lt.s32.totalorder %s541_s15, 3 }
   0x4   : > { %p175_p2 = pnand %p449_p0, %p174_p1 }
   0x5   : > { %v533_v0 = vld [vmem:[%s615_s2] sm:$0xff] (!%p175_p2)   ;;  %s450_s19 = sshll.u32 (!%p175_p2), %s445_s16, 3  ;;  %v534_v1 = vld [vmem:[%s615_s2 + $0x8] sm:$0xff] (!%p175_p2)   ;;  %vm291_vm0 = vcmask (!%p175_p2), 261120  }
   0x6   : > { %178 = sbr.rel (%p175_p2) target bundleno = 246 (0xf6), region = 36  ;;  %p206_p3 = scmp.lt.s32.totalorder (!%p175_p2), %s450_s19, 15  ;;  %509 = vmatprep.subr.bf16.mxu0 (!%p175_p2), %v533_v0  ;;  %521 = vmatprep.subr.bf16.mxu1 (!%p175_p2), %v533_v0  ;;  %v456_v38 = vld [vmem:[%s616_s3] ss:$0 sm:$0xff] (!%p175_p2) }
   0x7   : > { %510 = vmatpush3.bf16.msra.mxu0 (!%p175_p2), %v533_v0  ;;  %523 = vmatpush3.bf16.msra.mxu1 (!%p175_p2), %v533_v0 }
   0x8   : > { %511 = vmatprep.subr.bf16.mxu0 (!%p175_p2), %v534_v1  ;;  %522 = vmatprep.subr.bf16.mxu1 (!%p175_p2), %v534_v1 }
   0xb   : > { %512 = vmatpush3.bf16.msra.mxu0 (!%p175_p2), %v534_v1  ;;  %524 = vmatpush3.bf16.msra.mxu1 (!%p175_p2), %v534_v1 }
   0xd   : > { %s619_s19 = smov (!%p206_p3, %s450_s19), 15 }
   0xe   : > { %s451_s22 = sshll.u32 %s619_s19, 2  ;;  %s455_s29 = sshll.u32 %s619_s19, 3 }
   0xf   : > { %s209_s25 = scalar_lea.vmem %s613_s0, %s451_s22  ;;  %s215_s28 = scalar_lea.vmem %s614_s1, %s451_s22 }
  0x10   : > { %v466_v2 = vld [vmem:[%s209_s25] sm:$0xff]   ;;  %v498_v4 = vld [vmem:[%s209_s25 + $0x10] sm:$0xff]   ;;  %v497_v10 = vld [vmem:[%s209_s25 + $0x8] sm:$0xff]   ;;  %s221_s8 = scalar_lea.vmem %s617_s4, %s455_s29 }
  0x11   : > { %v482_v3 = vld [vmem:[%s215_s28] sm:$0xff]   ;;  %v467_v5 = vunpack.c.l.bf16 %v466_v2  ;;  %v468_v6 = vunpack.c.h.bf16 %v466_v2  ;;  %v501_v9 = vld [vmem:[%s215_s28 + $0x10] sm:$0xff]   ;;  %v500_v11 = vld [vmem:[%s215_s28 + $0x8] sm:$0xff]   ;;  %v475_v12 = vunpack.c.l.bf16 %v498_v4  ;;  %v476_v13 = vunpack.c.h.bf16 %v498_v4 }
  0x12   : > { %v483_v7 = vunpack.c.l.bf16 %v482_v3  ;;  %v484_v8 = vunpack.c.h.bf16 %v482_v3  ;;  %v491_v14 = vunpack.c.l.bf16 %v501_v9  ;;  %v492_v15 = vunpack.c.h.bf16 %v501_v9  ;;  %v499_v16 = vld [vmem:[%s209_s25 + $0x18] sm:$0xff]  }
  0x13   : > { %v502_v17 = vld [vmem:[%s215_s28 + $0x18] sm:$0xff]   ;;  %v471_v20 = vunpack.c.l.bf16 %v497_v10  ;;  %v472_v21 = vunpack.c.h.bf16 %v497_v10  ;;  %v487_v24 = vunpack.c.l.bf16 %v500_v11  ;;  %v488_v25 = vunpack.c.h.bf16 %v500_v11 }
  0x14   : > { %v256_v18 = vadd.f32 %v483_v7, %v467_v5  ;;  %v257_v19 = vadd.f32 %v484_v8, %v468_v6  ;;  %v260_v22 = vadd.f32 %v491_v14, %v475_v12  ;;  %v261_v23 = vadd.f32 %v492_v15, %v476_v13 }
  0x15   : > { %v479_v27 = vunpack.c.l.bf16 %v499_v16  ;;  %v480_v28 = vunpack.c.h.bf16 %v499_v16  ;;  %v495_v29 = vunpack.c.l.bf16 %v502_v17  ;;  %v258_v31 = vadd.f32 %v487_v24, %v471_v20 }
  0x16   : > { %v264_v26 = vpack.c.bf16 %v257_v19, %v256_v18  ;;  %v266_v30 = vpack.c.bf16 %v261_v23, %v260_v22  ;;  %v259_v32 = vadd.f32 %v488_v25, %v472_v21  ;;  %v496_v33 = vunpack.c.h.bf16 %v502_v17 }
  0x17   : > { %v262_v34 = vadd.f32 %v495_v29, %v479_v27 }
  0x18   : > { %513 = vmatprep.mubr.msk.bf16.mxu0 %vm291_vm0, %v264_v26  ;;  %517 = vmatprep.mubr.msk.bf16.mxu1 %vm291_vm0, %v266_v30  ;;  %v265_v35 = vpack.c.bf16 %v259_v32, %v258_v31  ;;  %v263_v36 = vadd.f32 %v496_v33, %v480_v28 }
  0x1a   : > { %514 = vmatmul.mubr.msk.bf16.vlgmr.msra.gmra.mrb[0].mxu0 %vm291_vm0, %v265_v35  ;;  %v267_v37 = vpack.c.bf16 %v263_v36, %v262_v34 }
  0x1c   : > { %518 = vmatmul.mubr.msk.bf16.vlgmr.msra.gmra.mrb[0].mxu1 %vm291_vm0, %v267_v37 }
  0xed   : > { %v515_v39 = vpop.f32.mrb[0].mxu0 }
  0xee   : > { %v347_v40 = vadd.f32 %v515_v39, %v456_v38  ;;  %v338_v41 = vpop.f32.mrb[1].mxu0 }
  0xef   : > { %v519_v42 = vpop.f32.mrb[0].mxu1  ;;  %v339_v43 = vadd.f32 %v456_v38, %v338_v41  ;;  %v516_v44 = vpop.f32.mrb[2].mxu0 }
  0xf0   : > { %371 = vst.msk [vmem:[%s221_s8 + $0x10] sm:$0xff] %vm291_vm0, %v347_v40  ;;  %v363_v45 = vadd.f32 %v519_v42, %v456_v38  ;;  %v354_v46 = vpop.f32.mrb[1].mxu1  ;;  %v350_v47 = vadd.f32 %v516_v44, %v456_v38  ;;  %v341_v48 = vpop.f32.mrb[3].mxu0 }
  0xf1   : > { %369 = vst.msk [vmem:[%s221_s8] sm:$0xff] %vm291_vm0, %v339_v43  ;;  %v355_v49 = vadd.f32 %v456_v38, %v354_v46  ;;  %v520_v50 = vpop.f32.mrb[2].mxu1  ;;  %v342_v51 = vadd.f32 %v456_v38, %v341_v48 }
  0xf2   : > { %375 = vst.msk [vmem:[%s221_s8 + $0x30] sm:$0xff] %vm291_vm0, %v363_v45  ;;  %372 = vst.msk [vmem:[%s221_s8 + $0x18] sm:$0xff] %vm291_vm0, %v350_v47  ;;  %v366_v52 = vadd.f32 %v520_v50, %v456_v38  ;;  %v357_v53 = vpop.f32.mrb[3].mxu1 }
  0xf3   : > { %373 = vst.msk [vmem:[%s221_s8 + $0x20] sm:$0xff] %vm291_vm0, %v355_v49  ;;  %370 = vst.msk [vmem:[%s221_s8 + $0x8] sm:$0xff] %vm291_vm0, %v342_v51  ;;  %v358_v54 = vadd.f32 %v456_v38, %v357_v53 }
  0xf4   : > { %376 = vst.msk [vmem:[%s221_s8 + $0x38] sm:$0xff] %vm291_vm0, %v366_v52 }
  0xf5   : > { %374 = vst.msk [vmem:[%s221_s8 + $0x28] sm:$0xff] %vm291_vm0, %v358_v54 }
  0xf6 PF: > { %s14_s15 = sadd.s32 1, %s541_s15  }
  0xf7   : > { %p11_p4 = scmp.ge.s32.totalorder %s14_s15, 4  }
  0xf9   :  { %13 = sbr.rel (!%p11_p4) target bundleno = 1 (0x1), region = 69 }

// kernel: agent_attention_forward.5
= control target key start
LH: loop header
LB: loop body
LE: loop exit
PB: predicated region body
PF: predicated region fallthrough
CT: control target
= control target key end

     0   :  { %s2833_s21 = smov 0   ;;  %s2835_s22 = smov 0   ;;  %s3310_s0 = inlined_call_operand.vmem [shape: bf16[2,64,32], index: 0, kind: input, shape index: {}]   ;;  %s3311_s1 = inlined_call_operand.vmem [shape: bf16[2,64,32], index: 1, kind: input, shape index: {}]   ;;  %s3312_s2 = inlined_call_operand.vmem [shape: bf16[2,64,32], index: 2, kind: input, shape index: {}]   ;;  %s3313_s3 = inlined_call_operand.vmem [shape: bf16[2,16,32], index: 3, kind: input, shape index: {}]   ;;  %s3314_s4 = inlined_call_operand.vmem [shape: bf16[4,16,64], index: 4, kind: input, shape index: {}]   ;;  %s3315_s5 = inlined_call_operand.vmem [shape: bf16[4,16,64], index: 5, kind: input, shape index: {}]   ;;  %s3316_s6 = inlined_call_operand.vmem [shape: bf16[2,64,32], index: 6, kind: output, shape index: {}]  }
   0x1   :  { %s2837_s23 = smov 0  }
   0x2 LB: > { %s28_s24 = sadd.s32 1, %s2784_s22  ;;  %p2225_p0 = scmp.ge.s32.totalorder %s2788_s23, 1  ;;  %s2788_s23 = sphi %s2837_s23, %s16_s23   ;;  %s2784_s22 = sphi %s2835_s22, %s3318_s22   ;;  %s2780_s21 = sphi %s2833_s21, %s3317_s21  }
   0x3   : > { %p30_p1 = scmp.ge.s32.totalorder %s28_s24, 2  ;;  %p272_p2 = scmp.lt.s32.totalorder %s2788_s23, 3 }
   0x5   : > { %s3320_s24 = smov (%p30_p1, %s28_s24), 0  ;;  %p273_p3 = pnand %p2225_p0, %p272_p2 }
   0x6   : > { %p330_p4 = scmp.lt.s32.totalorder (!%p273_p3), %s2780_s21, 1  ;;  %v2790_v0 = vmov (!%p273_p3), 0.0   ;;  %vm2791_vm0 = vmmov (!%p273_p3), 0   ;;  %vm416_vm1 = vcmask (!%p273_p3), 64512   ;;  %v2362_v10 = vld [vmem:[%s3314_s4] sm:$0xff] (!%p273_p3)   ;;  %vm481_vm2 = vcmask (!%p273_p3), 523264  }
   0x7   : > { %276 = sbr.rel (%p273_p3) target bundleno = 4317 (0x10dd), region = 44  ;;  %2479 = vmatprep.subr.bf16.mxu0 (!%p273_p3), %v2790_v0  ;;  %2487 = vmatprep.mubr.msk.bf16.mxu0 (!%p273_p3), %vm2791_vm0, %v2790_v0  ;;  %v2363_v11 = vunpack.c.l.bf16 (!%p273_p3), %v2362_v10  ;;  %v2364_v15 = vunpack.c.h.bf16 (!%p273_p3), %v2362_v10  ;;  %s2792_s11 = smov (!%p273_p3), 120   ;;  %v2393_v57 = vld [vmem:[%s3314_s4 + $0x8] sm:$0xff] (!%p273_p3)   ;;  %vm1192_vm3 = vcmask (!%p273_p3), 130048   ;;  %vm1302_vm4 = vcmask (!%p273_p3), 60416  }
   0x8   : > { %2491 = vmatprep.subr.bf16.mxu1 (!%p273_p3), %v2790_v0  ;;  %2499 = vmatprep.mubr.msk.bf16.mxu1 (!%p273_p3), %vm2791_vm0, %v2790_v0  ;;  %v2367_v58 = vunpack.c.l.bf16 (!%p273_p3), %v2393_v57  ;;  %v2368_v62 = vunpack.c.h.bf16 (!%p273_p3), %v2393_v57  ;;  %s2793_s17 = smov (!%p273_p3), 112   ;;  %s2794_s20 = smov (!%p273_p3), 104   ;;  %vm1559_vm5 = vcmask (!%p273_p3), 126016   ;;  %vm1816_vm6 = vcmask (!%p273_p3), 191616  }
   0x9   : > { %s2796_s15 = smov (!%p273_p3), 16   ;;  %s2797_s18 = smov (!%p273_p3), 24   ;;  %vm2073_vm7 = vcmask (!%p273_p3), 257216  }
   0xe   : > { %s3322_s21 = smov (!%p330_p4, %s2780_s21), 1 }
   0xf   : > { %s2857_s25 = sshll.u32 %s3322_s21, 5  ;;  %s2327_s29 = sshll.u32 %s3322_s21, 3 }
  0x10   : > { %s343_s28 = scalar_lea.vmem %s3311_s1, %s2857_s25  ;;  %s2870_s8 = scalar_lea.vmem %s3313_s3, %s2327_s29 }
  0x11   : > { %v2863_v1 = vld [vmem:[%s343_s28] sm:$0xff]   ;;  %v2873_v3 = vld [vmem:[%s343_s28 + $0x8] sm:$0xff]   ;;  %v2878_v5 = vld [vmem:[%s343_s28 + $0x10] sm:$0xff]   ;;  %s348_s14 = scalar_lea.vmem %s3312_s2, %s2857_s25  ;;  %s337_s29 = scalar_lea.vmem %s3310_s0, %s2857_s25 }
  0x12   : > { %v421_v2 = vsel %vm416_vm1, %v2863_v1, 0  ;;  %v424_v4 = vsel %vm416_vm1, %v2873_v3, 0  ;;  %v427_v6 = vsel %vm416_vm1, %v2878_v5, 0  ;;  %v2883_v7 = vld [vmem:[%s343_s28 + $0x18] sm:$0xff]   ;;  %v2889_v9 = vld [vmem:[%s2870_s8] sm:$0xff]   ;;  %v2914_v34 = vld [vmem:[%s348_s14 + $0x8] sm:$0xff]  }
  0x13   : > { %2480 = vmatpush3.bf16.xpose.msra.mxu0 %v421_v2  ;;  %v430_v8 = vsel %vm416_vm1, %v2883_v7, 0  ;;  %v2908_v23 = vld [vmem:[%s348_s14] sm:$0xff]   ;;  %v2918_v35 = vld [vmem:[%s348_s14 + $0x10] sm:$0xff]   ;;  %v2921_v36 = vld [vmem:[%s348_s14 + $0x18] sm:$0xff]   ;;  %s2795_s14 = smov 8  }
  0x14   : > { %2481 = vmatprep.subr.bf16.mxu0 %v2790_v0  ;;  %2492 = vmatpush3.bf16.msra.mxu1 %v2908_v23 }
  0x15   : > { %2493 = vmatprep.subr.bf16.mxu1 %v2790_v0 }
  0x18   : > { %2494 = vmatpush3.bf16.msra.mxu1 %v2914_v34 }
  0x19   : > { %2495 = vmatprep.subr.bf16.mxu1 %v2790_v0 }
  0x1b   : > { %2482 = vmatpush3.bf16.xpose.msra.mxu0 %v424_v4 }
  0x1c   : > { %2483 = vmatprep.subr.bf16.mxu0 %v2790_v0  ;;  %2496 = vmatpush3.bf16.msra.mxu1 %v2918_v35 }
  0x1d   : > { %2497 = vmatprep.subr.bf16.mxu1 %v2790_v0 }
  0x20   : > { %2498 = vmatpush3.bf16.msra.mxu1 %v2921_v36 }
  0x21   : > { %2503 = vmatprep.subr.bf16.mxu1 %v2790_v0 }
  0x23   : > { %2484 = vmatpush3.bf16.xpose.msra.mxu0 %v427_v6 }
  0x24   : > { %2485 = vmatprep.subr.bf16.mxu0 %v2790_v0 }
  0x2b   : > { %2486 = vmatpush3.bf16.xpose.msra.mxu0 %v430_v8 }
  0x2c   : > { %2515 = vmatprep.subr.bf16.mxu0 %v2790_v0 }
  0x32   : > { %2488 = vmatmul.mubr.msk.bf16.vlgmr.msra.gmra.mrb[0].mxu0 %vm416_vm1, %v2889_v9 }
  0x33   : > { %2523 = vmatprep.mubr.msk.bf16.mxu0 %vm2791_vm0, %v2790_v0 }
 0x105   : > { %v466_v12 = vpop.f32.mrb[0].mxu0 }
 0x106   : > { %v473_v13 = vmul.f32 0.35355338, %v466_v12  ;;  %v2489_v14 = vpop.f32.mrb[1].mxu0 }
 0x107   : > { %v469_v16 = vpop.f32.mrb[2].mxu0 }
 0x108   : > { %v474_v17 = vmul.f32 0.35355338, %v469_v16  ;;  %v2490_v18 = vpop.f32.mrb[3].mxu0  ;;  %v479_v19 = vadd.f32 %v2363_v11, %v473_v13 }
 0x10a   : > { %v482_v20 = vsel %vm481_vm2, %v479_v19, -inf  ;;  %v480_v21 = vadd.f32 %v2364_v15, %v474_v17 }
 0x10b   : > { %483 = vmax.xlane.f32.xlu0 %v482_v20 }
 0x10c   : > { %v485_v22 = vsel %vm481_vm2, %v480_v21, -inf }
 0x10f   : > { %486 = vmax.xlane.f32.xlu0 %v485_v22 }
 0x125   : > { %577 = vrot.lane.b32.xlu0 %v2863_v1, %s2792_s11 }
 0x129   : > { %575 = vrot.lane.b32.xlu0 %v2889_v9, %s2792_s11 }
 0x198   : > { %v484_v24 = vpop.xlane.xlu0 %483 }
 0x199   : > { %v488_v25 = vsub.f32 %v479_v19, %v484_v24 }
 0x19b   : > { %v490_v26 = vmul.f32 1.442695, %v488_v25 }
 0x19c   : > { %v487_v27 = vpop.xlane.xlu0 %486 }
 0x19d   : > { %2709 = vpow2.f32 %v490_v26  ;;  %v489_v28 = vsub.f32 %v480_v21, %v487_v27 }
 0x19f   : > { %v492_v29 = vmul.f32 1.442695, %v489_v28 }
 0x1a0   : > { %v578_v41 = vpop.permute.xlu0 %577 }
 0x1a1   : > { %2711 = vpow2.f32 %v492_v29  ;;  %v589_v44 = vsel %vm416_vm1, %v578_v41, 0 }
 0x1a4   : > { %v576_v52 = vpop.permute.xlu0 %575 }
 0x1a7   : > { %v2710_v30 = vpop.eup %2709 }
 0x1a8   : > { %v494_v31 = vsel %vm481_vm2, %v2710_v30, 0.0 }
 0x1a9   : > { %495 = vadd.xlane.f32.xlu1 %v494_v31 }
 0x1ab   : > { %v2712_v32 = vpop.eup %2711 }
 0x1ac   : > { %v497_v33 = vsel %vm481_vm2, %v2712_v32, 0.0 }
 0x1ad   : > { %498 = vadd.xlane.f32.xlu1 %v497_v33 }
 0x1be   : > { %579 = vrot.lane.b32.xlu1 %v2873_v3, %s2792_s11 }
 0x1c2   : > { %581 = vrot.lane.b32.xlu1 %v2878_v5, %s2792_s11 }
 0x1c6   : > { %583 = vrot.lane.b32.xlu1 %v2883_v7, %s2792_s11 }
 0x236   : > { %v496_v37 = vpop.xlane.xlu1 %495 }
 0x237   : > { %2713 = vrcp.f32 %v496_v37 }
 0x23a   : > { %v499_v38 = vpop.xlane.xlu1 %498 }
 0x23b   : > { %2715 = vrcp.f32 %v499_v38 }
 0x23e   : > { %v580_v46 = vpop.permute.xlu1 %579 }
 0x23f   : > { %v592_v47 = vsel %vm416_vm1, %v580_v46, 0 }
 0x241   : > { %v2714_v39 = vpop.eup %2713 }
 0x242   : > { %v502_v42 = vmul.f32 %v2714_v39, %v2710_v30  ;;  %v582_v48 = vpop.permute.xlu1 %581 }
 0x243   : > { %v595_v49 = vsel %vm416_vm1, %v582_v48, 0 }
 0x245   : > { %v2716_v40 = vpop.eup %2715 }
 0x246   : > { %v503_v43 = vmul.f32 %v2716_v40, %v2712_v32  ;;  %v584_v50 = vpop.permute.xlu1 %583 }
 0x247   : > { %v598_v51 = vsel %vm416_vm1, %v584_v50, 0  ;;  %v2394_v50 = vld [vmem:[%s3314_s4 + $0x10] sm:$0xff]  }
 0x248   : > { %v504_v45 = vpack.c.bf16 %v503_v43, %v502_v42 }
 0x24a   : > { %2500 = vmatmul.mubr.msk.bf16.vlgmr.msra.gmra.mrb[0].mxu1 %vm481_vm2, %v504_v45 }
 0x24b   : > { %2504 = vmatpush3.bf16.xpose.msra.mxu1 %v589_v44  ;;  %2511 = vmatprep.mubr.msk.bf16.mxu1 %vm2791_vm0, %v2790_v0 }
 0x24c   : > { %2505 = vmatprep.subr.bf16.mxu1 %v2790_v0 }
 0x253   : > { %2506 = vmatpush3.bf16.xpose.msra.mxu1 %v592_v47 }
 0x254   : > { %2507 = vmatprep.subr.bf16.mxu1 %v2790_v0 }
 0x25b   : > { %2508 = vmatpush3.bf16.xpose.msra.mxu1 %v595_v49 }
 0x25c   : > { %2509 = vmatprep.subr.bf16.mxu1 %v2790_v0 }
 0x263   : > { %2510 = vmatpush3.bf16.xpose.msra.mxu1 %v598_v51  ;;  %v2371_v51 = vunpack.c.l.bf16 %v2394_v50 }
 0x264   : > { %2539 = vmatprep.subr.bf16.mxu1 %v2790_v0 }
 0x26a   : > { %2512 = vmatmul.mubr.msk.bf16.vlgmr.msra.gmra.mrb[4].mxu1 %vm416_vm1, %v576_v52 }
 0x26b   : > { %2547 = vmatprep.mubr.msk.bf16.mxu1 %vm2791_vm0, %v2790_v0 }
 0x31d   : > { %v566_v53 = vpop.f32.mrb[0].mxu1 }
 0x31e   : > { %573 = vst.msk [vmem:[#allocation2] sm:$0xff] %vm416_vm1, %v566_v53  ;;  %v2501_v54 = vpop.f32.mrb[1].mxu1 }
 0x31f   : > { %v569_v55 = vpop.f32.mrb[2].mxu1 }
 0x320   : > { %574 = vst.msk [vmem:[#allocation2 + $0x8] sm:$0xff] %vm416_vm1, %v569_v55  ;;  %v2502_v56 = vpop.f32.mrb[3].mxu1  ;;  %v2372_v55 = vunpack.c.h.bf16 %v2394_v50 }
 0x33d   : > { %v634_v59 = vpop.f32.mrb[4].mxu1 }
 0x33e   : > { %v641_v60 = vmul.f32 0.35355338, %v634_v59  ;;  %v2513_v61 = vpop.f32.mrb[5].mxu1 }
 0x33f   : > { %v637_v63 = vpop.f32.mrb[6].mxu1 }
 0x340   : > { %v642_v2 = vmul.f32 0.35355338, %v637_v63  ;;  %v2514_v4 = vpop.f32.mrb[7].mxu1  ;;  %v648_v6 = vadd.f32 %v2367_v58, %v641_v60 }
 0x342   : > { %v650_v8 = vsel %vm481_vm2, %v648_v6, -inf  ;;  %v649_v10 = vadd.f32 %v2368_v62, %v642_v2 }
 0x343   : > { %651 = vmax.xlane.f32.xlu1 %v650_v8 }
 0x344   : > { %v653_v11 = vsel %vm481_vm2, %v649_v10, -inf }
 0x345   : > { %654 = vmax.xlane.f32.xlu0 %v653_v11 }
 0x354   : > { %673 = vrot.lane.b32.xlu1 %v2908_v23, %s2792_s11 }
 0x358   : > { %677 = vrot.lane.b32.xlu1 %v2918_v35, %s2792_s11 }
 0x35c   : > { %679 = vrot.lane.b32.xlu1 %v2921_v36, %s2792_s11 }
 0x360   : > { %734 = vrot.lane.b32.xlu1 %v2863_v1, %s2793_s17 }
 0x364   : > { %738 = vrot.lane.b32.xlu1 %v2878_v5, %s2793_s17 }
 0x368   : > { %732 = vrot.lane.b32.xlu1 %v2889_v9, %s2793_s17 }
 0x3d0   : > { %v652_v12 = vpop.xlane.xlu1 %651 }
 0x3d1   : > { %v656_v13 = vsub.f32 %v648_v6, %v652_v12 }
 0x3d2   : > { %v655_v14 = vpop.xlane.xlu0 %654 }
 0x3d3   : > { %v658_v15 = vmul.f32 1.442695, %v656_v13  ;;  %v657_v16 = vsub.f32 %v649_v10, %v655_v14 }
 0x3d4   : > { %v674_v22 = vpop.permute.xlu1 %673 }
 0x3d5   : > { %2717 = vpow2.f32 %v658_v15  ;;  %v660_v17 = vmul.f32 1.442695, %v657_v16  ;;  %2516 = vmatpush3.bf16.msra.mxu0 %v674_v22 }
 0x3d6   : > { %2517 = vmatprep.subr.bf16.mxu0 %v2790_v0 }
 0x3d7   : > { %2719 = vpow2.f32 %v660_v17 }
 0x3d8   : > { %v678_v27 = vpop.permute.xlu1 %677 }
 0x3dc   : > { %v680_v29 = vpop.permute.xlu1 %679 }
 0x3df   : > { %v2718_v18 = vpop.eup %2717 }
 0x3e0   : > { %v662_v19 = vsel %vm481_vm2, %v2718_v18, 0.0  ;;  %v735_v37 = vpop.permute.xlu1 %734 }
 0x3e1   : > { %v2720_v20 = vpop.eup %2719  ;;  %663 = vadd.xlane.f32.xlu0 %v662_v19  ;;  %v746_v38 = vsel %vm416_vm1, %v735_v37, 0 }
 0x3e2   : > { %v665_v21 = vsel %vm481_vm2, %v2720_v20, 0.0 }
 0x3e4   : > { %v739_v41 = vpop.permute.xlu1 %738 }
 0x3e5   : > { %666 = vadd.xlane.f32.xlu0 %v665_v21  ;;  %v752_v42 = vsel %vm416_vm1, %v739_v41, 0 }
 0x3e8   : > { %v733_v45 = vpop.permute.xlu1 %732 }
 0x3fb   : > { %675 = vrot.lane.b32.xlu0 %v2914_v34, %s2792_s11 }
 0x3ff   : > { %736 = vrot.lane.b32.xlu0 %v2873_v3, %s2793_s17 }
 0x403   : > { %740 = vrot.lane.b32.xlu0 %v2883_v7, %s2793_s17 }
 0x46e   : > { %v664_v24 = vpop.xlane.xlu0 %663 }
 0x46f   : > { %2721 = vrcp.f32 %v664_v24 }
 0x472   : > { %v667_v25 = vpop.xlane.xlu0 %666 }
 0x473   : > { %2723 = vrcp.f32 %v667_v25 }
 0x476   : > { %v676_v26 = vpop.permute.xlu0 %675 }
 0x477   : > { %2518 = vmatpush3.bf16.msra.mxu0 %v676_v26 }
 0x478   : > { %2519 = vmatprep.subr.bf16.mxu0 %v2790_v0 }
 0x479   : > { %v2722_v28 = vpop.eup %2721 }
 0x47a   : > { %v670_v31 = vmul.f32 %v2722_v28, %v2718_v18  ;;  %v737_v39 = vpop.permute.xlu0 %736 }
 0x47b   : > { %2520 = vmatpush3.bf16.msra.mxu0 %v678_v27  ;;  %v749_v40 = vsel %vm416_vm1, %v737_v39, 0 }
 0x47c   : > { %2521 = vmatprep.subr.bf16.mxu0 %v2790_v0 }
 0x47d   : > { %v2724_v30 = vpop.eup %2723 }
 0x47e   : > { %v671_v32 = vmul.f32 %v2724_v30, %v2720_v20  ;;  %v741_v43 = vpop.permute.xlu0 %740  ;;  %v1190_v30 = vld [vmem:[#allocation2 + $0x8] sm:$0xff] }
 0x47f   : > { %2522 = vmatpush3.bf16.msra.mxu0 %v680_v29  ;;  %v755_v44 = vsel %vm416_vm1, %v741_v43, 0 }
 0x480   : > { %v672_v33 = vpack.c.bf16 %v671_v32, %v670_v31  ;;  %2527 = vmatprep.subr.bf16.mxu0 %v2790_v0  ;;  %v1189_v32 = vld [vmem:[#allocation2] sm:$0xff] }
 0x482   : > { %2524 = vmatmul.mubr.msk.bf16.vlgmr.msra.gmra.mrb[4].mxu0 %vm481_vm2, %v672_v33  ;;  %v1191_v33 = vpack.c.bf16 %v1190_v30, %v1189_v32 }
 0x483   : > { %2535 = vmatprep.mubr.msk.bf16.mxu0 %vm2791_vm0, %v2790_v0 }
 0x488   : > { %2528 = vmatpush3.bf16.xpose.msra.mxu0 %v746_v38 }
 0x489   : > { %2529 = vmatprep.subr.bf16.mxu0 %v2790_v0 }
 0x490   : > { %2530 = vmatpush3.bf16.xpose.msra.mxu0 %v749_v40 }
 0x491   : > { %2531 = vmatprep.subr.bf16.mxu0 %v2790_v0 }
 0x498   : > { %2532 = vmatpush3.bf16.xpose.msra.mxu0 %v752_v42  ;;  %v2395_v42 = vld [vmem:[%s3314_s4 + $0x18] sm:$0xff]  }
 0x499   : > { %2533 = vmatprep.subr.bf16.mxu0 %v2790_v0  ;;  %v2375_v43 = vunpack.c.l.bf16 %v2395_v42 }
 0x4a0   : > { %2534 = vmatpush3.bf16.xpose.msra.mxu0 %v755_v44 }
 0x4a1   : > { %2563 = vmatprep.subr.bf16.mxu0 %v2790_v0 }
 0x4a7   : > { %2536 = vmatmul.mubr.msk.bf16.vlgmr.msra.gmra.mrb[8].mxu0 %vm416_vm1, %v733_v45 }
 0x4a8   : > { %2571 = vmatprep.mubr.msk.bf16.mxu0 %vm2791_vm0, %v2790_v0 }
 0x555   : > { %v722_v46 = vpop.f32.mrb[4].mxu0 }
 0x556   : > { %730 = vst.msk [vmem:[#allocation2 + $0x10] sm:$0xff] %vm416_vm1, %v722_v46  ;;  %v2525_v47 = vpop.f32.mrb[5].mxu0 }
 0x557   : > { %v725_v48 = vpop.f32.mrb[6].mxu0  ;;  %v2376_v47 = vunpack.c.h.bf16 %v2395_v42 }
 0x558   : > { %731 = vst.msk [vmem:[#allocation2 + $0x18] sm:$0xff] %vm416_vm1, %v725_v48  ;;  %v2526_v49 = vpop.f32.mrb[7].mxu0 }
 0x57a   : > { %v791_v52 = vpop.f32.mrb[8].mxu0 }
 0x57b   : > { %v798_v53 = vmul.f32 0.35355338, %v791_v52  ;;  %v2537_v54 = vpop.f32.mrb[9].mxu0 }
 0x57c   : > { %v794_v56 = vpop.f32.mrb[10].mxu0 }
 0x57d   : > { %v799_v57 = vmul.f32 0.35355338, %v794_v56  ;;  %v2538_v58 = vpop.f32.mrb[11].mxu0  ;;  %v805_v59 = vadd.f32 %v2371_v51, %v798_v53 }
 0x57f   : > { %v807_v60 = vsel %vm481_vm2, %v805_v59, -inf  ;;  %v806_v61 = vadd.f32 %v2372_v55, %v799_v57 }
 0x580   : > { %808 = vmax.xlane.f32.xlu0 %v807_v60 }
 0x581   : > { %v810_v62 = vsel %vm481_vm2, %v806_v61, -inf }
 0x582   : > { %811 = vmax.xlane.f32.xlu1 %v810_v62 }
 0x593   : > { %832 = vrot.lane.b32.xlu1 %v2914_v34, %s2793_s17 }
 0x596   : > { %830 = vrot.lane.b32.xlu0 %v2908_v23, %s2793_s17 }
 0x597   : > { %834 = vrot.lane.b32.xlu1 %v2918_v35, %s2793_s17 }
 0x59b   : > { %836 = vrot.lane.b32.xlu1 %v2921_v36, %s2793_s17 }
 0x59f   : > { %893 = vrot.lane.b32.xlu1 %v2873_v3, %s2794_s20 }
 0x5a3   : > { %897 = vrot.lane.b32.xlu1 %v2883_v7, %s2794_s20 }
 0x60d   : > { %v809_v63 = vpop.xlane.xlu0 %808 }
 0x60e   : > { %v813_v2 = vsub.f32 %v805_v59, %v809_v63 }
 0x60f   : > { %v812_v4 = vpop.xlane.xlu1 %811 }
 0x610   : > { %v815_v6 = vmul.f32 1.442695, %v813_v2  ;;  %v814_v8 = vsub.f32 %v806_v61, %v812_v4  ;;  %v3060_v2 = vld [vmem:[%s337_s29 + $0x8] sm:$0xff]   ;;  %v3064_v4 = vld [vmem:[%s337_s29 + $0x10] sm:$0xff]  }
 0x611   : > { %v831_v10 = vpop.permute.xlu0 %830 }
 0x612   : > { %2725 = vpow2.f32 %v815_v6  ;;  %v817_v11 = vmul.f32 1.442695, %v814_v8  ;;  %2540 = vmatpush3.bf16.msra.mxu1 %v831_v10 }
 0x613   : > { %2541 = vmatprep.subr.bf16.mxu1 %v2790_v0  ;;  %v833_v7 = vpop.permute.xlu1 %832 }
 0x614   : > { %2727 = vpow2.f32 %v817_v11 }
 0x616   : > { %2542 = vmatpush3.bf16.msra.mxu1 %v833_v7 }
 0x617   : > { %2543 = vmatprep.subr.bf16.mxu1 %v2790_v0  ;;  %v835_v15 = vpop.permute.xlu1 %834 }
 0x61a   : > { %2544 = vmatpush3.bf16.msra.mxu1 %v835_v15 }
 0x61b   : > { %2545 = vmatprep.subr.bf16.mxu1 %v2790_v0  ;;  %v837_v16 = vpop.permute.xlu1 %836 }
 0x61c   : > { %v2726_v12 = vpop.eup %2725 }
 0x61d   : > { %v819_v13 = vsel %vm481_vm2, %v2726_v12, 0.0 }
 0x61e   : > { %v2728_v14 = vpop.eup %2727  ;;  %820 = vadd.xlane.f32.xlu0 %v819_v13  ;;  %2546 = vmatpush3.bf16.msra.mxu1 %v837_v16 }
 0x61f   : > { %v822_v3 = vsel %vm481_vm2, %v2728_v14, 0.0  ;;  %2551 = vmatprep.subr.bf16.mxu1 %v2790_v0 }
 0x622   : > { %823 = vadd.xlane.f32.xlu0 %v822_v3 }
 0x638   : > { %891 = vrot.lane.b32.xlu0 %v2863_v1, %s2794_s20  ;;  %v894_v1 = vpop.permute.xlu1 %893 }
 0x63c   : > { %895 = vrot.lane.b32.xlu0 %v2878_v5, %s2794_s20  ;;  %v906_v5 = vsel %vm416_vm1, %v894_v1, 0  ;;  %v898_v29 = vpop.permute.xlu1 %897 }
 0x63d   : > { %v912_v31 = vsel %vm416_vm1, %v898_v29, 0 }
 0x640   : > { %889 = vrot.lane.b32.xlu0 %v2889_v9, %s2794_s20 }
 0x6ab   : > { %v821_v17 = vpop.xlane.xlu0 %820 }
 0x6ac   : > { %2729 = vrcp.f32 %v821_v17  ;;  %v1087_v17 = vsel %vm416_vm1, %v3060_v2, 0 }
 0x6af   : > { %v824_v18 = vpop.xlane.xlu0 %823 }
 0x6b0   : > { %2731 = vrcp.f32 %v824_v18  ;;  %v1090_v18 = vsel %vm416_vm1, %v3064_v4, 0 }
 0x6b3   : > { %v892_v21 = vpop.permute.xlu0 %891 }
 0x6b4   : > { %v903_v25 = vsel %vm416_vm1, %v892_v21, 0  ;;  %v1431_v21 = vld [vmem:[#allocation2 + $0x10] sm:$0xff] }
 0x6b6   : > { %v2730_v19 = vpop.eup %2729 }
 0x6b7   : > { %v827_v22 = vmul.f32 %v2730_v19, %v2726_v12  ;;  %v896_v27 = vpop.permute.xlu0 %895  ;;  %v1432_v19 = vld [vmem:[#allocation2 + $0x18] sm:$0xff] }
 0x6b8   : > { %v909_v28 = vsel %vm416_vm1, %v896_v27, 0 }
 0x6ba   : > { %v2732_v20 = vpop.eup %2731 }
 0x6bb   : > { %v828_v24 = vmul.f32 %v2732_v20, %v2728_v14  ;;  %v890_v37 = vpop.permute.xlu0 %889 }
 0x6bd   : > { %v829_v26 = vpack.c.bf16 %v828_v24, %v827_v22  ;;  %v1433_v22 = vpack.c.bf16 %v1432_v19, %v1431_v21 }
 0x6bf   : > { %2548 = vmatmul.mubr.msk.bf16.vlgmr.msra.gmra.mrb[8].mxu1 %vm481_vm2, %v829_v26 }
 0x6c0   : > { %2552 = vmatpush3.bf16.xpose.msra.mxu1 %v903_v25  ;;  %2559 = vmatprep.mubr.msk.bf16.mxu1 %vm2791_vm0, %v2790_v0 }
 0x6c1   : > { %2553 = vmatprep.subr.bf16.mxu1 %v2790_v0 }
 0x6c8   : > { %2554 = vmatpush3.bf16.xpose.msra.mxu1 %v906_v5  ;;  %v2378_v5 = vld [vmem:[%s3315_s5] sm:$0xff]  }
 0x6c9   : > { %2555 = vmatprep.subr.bf16.mxu1 %v2790_v0  ;;  %v2379_v27 = vunpack.c.l.bf16 %v2378_v5 }
 0x6d0   : > { %2556 = vmatpush3.bf16.xpose.msra.mxu1 %v909_v28 }
 0x6d1   : > { %2557 = vmatprep.subr.bf16.mxu1 %v2790_v0 }
 0x6d8   : > { %2558 = vmatpush3.bf16.xpose.msra.mxu1 %v912_v31  ;;  %v2380_v31 = vunpack.c.h.bf16 %v2378_v5 }
 0x6d9   : > { %2587 = vmatprep.subr.bf16.mxu1 %v1191_v33 }
 0x6df   : > { %2560 = vmatmul.mubr.msk.bf16.vlgmr.msra.gmra.mrb[12].mxu1 %vm416_vm1, %v890_v37 }
 0x6e0   : > { %2588 = vmatpush3.bf16.msra.mxu1 %v1191_v33 }
 0x6e1   : > { %2597 = vmatprep.subr.bf16.mxu1 %v2790_v0 }
 0x792   : > { %v879_v38 = vpop.f32.mrb[8].mxu1 }
 0x793   : > { %887 = vst.msk [vmem:[#allocation2 + $0x20] sm:$0xff] %vm416_vm1, %v879_v38  ;;  %v2549_v39 = vpop.f32.mrb[9].mxu1 }
 0x794   : > { %v882_v40 = vpop.f32.mrb[10].mxu1 }
 0x795   : > { %888 = vst.msk [vmem:[#allocation2 + $0x28] sm:$0xff] %vm416_vm1, %v882_v40  ;;  %v2550_v41 = vpop.f32.mrb[11].mxu1 }
 0x7b2   : > { %v948_v44 = vpop.f32.mrb[12].mxu1 }
 0x7b3   : > { %v955_v45 = vmul.f32 0.35355338, %v948_v44  ;;  %v2561_v46 = vpop.f32.mrb[13].mxu1 }
 0x7b4   : > { %v951_v48 = vpop.f32.mrb[14].mxu1 }
 0x7b5   : > { %v956_v49 = vmul.f32 0.35355338, %v951_v48  ;;  %v2562_v50 = vpop.f32.mrb[15].mxu1  ;;  %v962_v51 = vadd.f32 %v2375_v43, %v955_v45 }
 0x7b7   : > { %v964_v52 = vsel %vm481_vm2, %v962_v51, -inf  ;;  %v963_v53 = vadd.f32 %v2376_v47, %v956_v49 }
 0x7b8   : > { %965 = vmax.xlane.f32.xlu1 %v964_v52 }
 0x7b9   : > { %v967_v54 = vsel %vm481_vm2, %v963_v53, -inf }
 0x7ba   : > { %968 = vmax.xlane.f32.xlu0 %v967_v54 }
 0x7c9   : > { %987 = vrot.lane.b32.xlu1 %v2908_v23, %s2794_s20 }
 0x7cd   : > { %991 = vrot.lane.b32.xlu1 %v2918_v35, %s2794_s20 }
 0x7d1   : > { %993 = vrot.lane.b32.xlu1 %v2921_v36, %s2794_s20  ;;  %v3056_v36 = vld [vmem:[%s337_s29] sm:$0xff]  }
 0x7d2   : > { %v1084_v16 = vsel %vm416_vm1, %v3056_v36, 0 }
 0x7d5   : > { %1313 = vrot.lane.b32.xlu1 %v3056_v36, %s2792_s11 }
 0x7d9   : > { %1317 = vrot.lane.b32.xlu1 %v3064_v4, %s2792_s11 }
 0x845   : > { %v966_v55 = vpop.xlane.xlu1 %965 }
 0x846   : > { %v970_v56 = vsub.f32 %v962_v51, %v966_v55 }
 0x847   : > { %v969_v57 = vpop.xlane.xlu0 %968 }
 0x848   : > { %v972_v58 = vmul.f32 1.442695, %v970_v56  ;;  %v971_v59 = vsub.f32 %v963_v53, %v969_v57 }
 0x849   : > { %v988_v35 = vpop.permute.xlu1 %987 }
 0x84a   : > { %2733 = vpow2.f32 %v972_v58  ;;  %v974_v60 = vmul.f32 1.442695, %v971_v59  ;;  %2564 = vmatpush3.bf16.msra.mxu0 %v988_v35 }
 0x84b   : > { %2565 = vmatprep.subr.bf16.mxu0 %v2790_v0 }
 0x84c   : > { %2735 = vpow2.f32 %v974_v60 }
 0x84d   : > { %v992_v11 = vpop.permute.xlu1 %991 }
 0x851   : > { %v994_v13 = vpop.permute.xlu1 %993 }
 0x854   : > { %v2734_v61 = vpop.eup %2733 }
 0x855   : > { %v976_v62 = vsel %vm481_vm2, %v2734_v61, 0.0 }
 0x856   : > { %v2736_v63 = vpop.eup %2735  ;;  %977 = vadd.xlane.f32.xlu0 %v976_v62 }
 0x857   : > { %v979_v23 = vsel %vm481_vm2, %v2736_v63, 0.0 }
 0x85a   : > { %980 = vadd.xlane.f32.xlu0 %v979_v23 }
 0x870   : > { %989 = vrot.lane.b32.xlu0 %v2914_v34, %s2794_s20  ;;  %v3068_v34 = vld [vmem:[%s337_s29 + $0x18] sm:$0xff]  }
 0x871   : > { %1319 = vrot.lane.b32.xlu1 %v3068_v34, %s2792_s11  ;;  %v1093_v20 = vsel %vm416_vm1, %v3068_v34, 0 }
 0x874   : > { %1315 = vrot.lane.b32.xlu0 %v3060_v2, %s2792_s11 }
 0x875   : > { %1311 = vrot.lane.b32.xlu1 %v2889_v9, %s2792_s11  ;;  %s3136_s11 = scalar_lea.vmem %s3316_s6, %s2857_s25 }
 0x879   : > { %1570 = vrot.lane.b32.xlu1 %v3056_v36, %s2793_s17 }
 0x87d   : > { %1572 = vrot.lane.b32.xlu1 %v3060_v2, %s2793_s17 }
 0x881   : > { %1574 = vrot.lane.b32.xlu1 %v3064_v4, %s2793_s17 }
 0x8e3   : > { %v978_v6 = vpop.xlane.xlu0 %977 }
 0x8e4   : > { %2737 = vrcp.f32 %v978_v6 }
 0x8e7   : > { %v981_v8 = vpop.xlane.xlu0 %980 }
 0x8e8   : > { %2739 = vrcp.f32 %v981_v8 }
 0x8eb   : > { %v990_v10 = vpop.permute.xlu0 %989 }
 0x8ec   : > { %2566 = vmatpush3.bf16.msra.mxu0 %v990_v10 }
 0x8ed   : > { %2567 = vmatprep.subr.bf16.mxu0 %v2790_v0 }
 0x8ee   : > { %v2738_v12 = vpop.eup %2737 }
 0x8ef   : > { %v984_v3 = vmul.f32 %v2738_v12, %v2734_v61  ;;  %v1316_v10 = vpop.permute.xlu0 %1315  ;;  %v1314_v12 = vpop.permute.xlu1 %1313 }
 0x8f0   : > { %2568 = vmatpush3.bf16.msra.mxu0 %v992_v11 }
 0x8f1   : > { %2569 = vmatprep.subr.bf16.mxu0 %v2790_v0 }
 0x8f2   : > { %v2740_v14 = vpop.eup %2739 }
 0x8f3   : > { %v985_v7 = vmul.f32 %v2740_v14, %v2736_v63 }
 0x8f4   : > { %2570 = vmatpush3.bf16.msra.mxu0 %v994_v13  ;;  %v1325_v13 = vsel %vm416_vm1, %v1314_v12, 0 }
 0x8f5   : > { %v986_v15 = vpack.c.bf16 %v985_v7, %v984_v3  ;;  %2575 = vmatprep.subr.bf16.mxu0 %v2790_v0  ;;  %v1318_v3 = vpop.permute.xlu1 %1317 }
 0x8f6   : > { %v1331_v7 = vsel %vm416_vm1, %v1318_v3, 0 }
 0x8f7   : > { %2572 = vmatmul.mubr.msk.bf16.vlgmr.msra.gmra.mrb[12].mxu0 %vm481_vm2, %v986_v15 }
 0x8f8   : > { %2583 = vmatprep.mubr.msk.bf16.mxu0 %vm2791_vm0, %v2790_v0 }
 0x8f9   : > { %v1320_v15 = vpop.permute.xlu1 %1319 }
 0x8fd   : > { %2576 = vmatpush3.bf16.xpose.msra.mxu0 %v1084_v16  ;;  %v1689_v16 = vld [vmem:[#allocation2 + $0x28] sm:$0xff] }
 0x8fe   : > { %2577 = vmatprep.subr.bf16.mxu0 %v2790_v0 }
 0x905   : > { %2578 = vmatpush3.bf16.xpose.msra.mxu0 %v1087_v17  ;;  %v1334_v17 = vsel %vm416_vm1, %v1320_v15, 0  ;;  %v2765_v15 = vld [vmem:[%s2870_s8] sm:$0xff]  }
 0x906   : > { %2579 = vmatprep.subr.bf16.mxu0 %v2790_v0 }
 0x90d   : > { %2580 = vmatpush3.bf16.xpose.msra.mxu0 %v1090_v18  ;;  %v1688_v18 = vld [vmem:[#allocation2 + $0x20] sm:$0xff] }
 0x90e   : > { %2581 = vmatprep.subr.bf16.mxu0 %v2790_v0  ;;  %v1690_v19 = vpack.c.bf16 %v1689_v16, %v1688_v18 }
 0x915   : > { %2582 = vmatpush3.bf16.xpose.msra.mxu0 %v1093_v20  ;;  %v1312_v20 = vpop.permute.xlu1 %1311 }
 0x916   : > { %2609 = vmatprep.subr.bf16.mxu0 %v1433_v22 }
 0x919   : > { %v1571_v16 = vpop.permute.xlu1 %1570 }
 0x91c   : > { %2584 = vmatmul.mubr.msk.bf16.vlgmr.msra.gmra.mrb[16].mxu0 %vm416_vm1, %v2889_v9 }
 0x91d   : > { %2610 = vmatpush3.bf16.msra.mxu0 %v1433_v22 }
 0x91e   : > { %2619 = vmatprep.subr.bf16.mxu0 %v2790_v0 }
 0x9ca   : > { %v1036_v24 = vpop.f32.mrb[12].mxu0 }
 0x9cb   : > { %1044 = vst.msk [vmem:[#allocation2 + $0x30] sm:$0xff] %vm416_vm1, %v1036_v24  ;;  %v2573_v25 = vpop.f32.mrb[13].mxu0 }
 0x9cc   : > { %v1039_v26 = vpop.f32.mrb[14].mxu0 }
 0x9cd   : > { %1045 = vst.msk [vmem:[#allocation2 + $0x38] sm:$0xff] %vm416_vm1, %v1039_v26  ;;  %v2574_v1 = vpop.f32.mrb[15].mxu0 }
 0x9ef   : > { %v1129_v28 = vpop.f32.mrb[16].mxu0 }
 0x9f0   : > { %v1136_v29 = vmul.f32 0.35355338, %v1129_v28  ;;  %v2585_v30 = vpop.f32.mrb[17].mxu0 }
 0x9f1   : > { %v1132_v32 = vpop.f32.mrb[18].mxu0 }
 0x9f2   : > { %v1142_v33 = vadd.f32 %v2379_v27, %v1136_v29  ;;  %v1137_v37 = vmul.f32 0.35355338, %v1132_v32  ;;  %v2586_v38 = vpop.f32.mrb[19].mxu0 }
 0x9f4   : > { %v1143_v39 = vadd.f32 %v2380_v31, %v1137_v37  ;;  %v1145_v40 = vsel %vm481_vm2, %v1142_v33, -inf }
 0x9f6   : > { %v1146_v41 = vsel %vm481_vm2, %v1143_v39, -inf }
 0x9f7   : > { %v1147_v42 = vmax.f32 %v1145_v40, %v1146_v41 }
 0x9f9   : > { %v1148_v43 = vrot.slane %v1147_v42, 4 }
 0x9fb   : > { %v1149_v44 = vmax.f32 %v1147_v42, %v1148_v43 }
 0x9fd   : > { %v1150_v45 = vrot.slane %v1149_v44, 2 }
 0x9ff   : > { %v1151_v46 = vmax.f32 %v1149_v44, %v1150_v45 }
 0xa01   : > { %v1152_v47 = vrot.slane %v1151_v46, 1 }
 0xa03   : > { %v1153_v48 = vmax.f32 %v1151_v46, %v1152_v47 }
 0xa05   : > { %v1154_v49 = vsub.f32 %v1142_v33, %v1153_v48  ;;  %v1155_v50 = vsub.f32 %v1143_v39, %v1153_v48  ;;  %v2396_v39 = vld [vmem:[%s3315_s5 + $0x8] sm:$0xff]  }
 0xa06   : > { %v2383_v40 = vunpack.c.l.bf16 %v2396_v39  ;;  %v2384_v44 = vunpack.c.h.bf16 %v2396_v39 }
 0xa07   : > { %v1156_v51 = vmul.f32 1.442695, %v1154_v49  ;;  %v1158_v52 = vmul.f32 1.442695, %v1155_v50 }
 0xa09   : > { %2741 = vpow2.f32 %v1156_v51 }
 0xa0a   : > { %2743 = vpow2.f32 %v1158_v52 }
 0xa13   : > { %v2742_v53 = vpop.eup %2741 }
 0xa14   : > { %v2744_v54 = vpop.eup %2743  ;;  %v1160_v55 = vsel %vm481_vm2, %v2742_v53, 0.0 }
 0xa15   : > { %v1161_v56 = vsel %vm481_vm2, %v2744_v54, 0.0 }
 0xa16   : > { %v1162_v57 = vadd.f32 %v1161_v56, %v1160_v55 }
 0xa18   : > { %v1163_v58 = vrot.slane %v1162_v57, 4 }
 0xa1a   : > { %v1164_v59 = vadd.f32 %v1163_v58, %v1162_v57 }
 0xa1c   : > { %v1165_v60 = vrot.slane %v1164_v59, 2 }
 0xa1e   : > { %v1166_v61 = vadd.f32 %v1165_v60, %v1164_v59 }
 0xa20   : > { %v1167_v62 = vrot.slane %v1166_v61, 1 }
 0xa22   : > { %v1168_v63 = vadd.f32 %v1167_v62, %v1166_v61 }
 0xa24   : > { %2745 = vrcp.f32 %v1168_v63 }
 0xa2e   : > { %v2746_v23 = vpop.eup %2745 }
 0xa2f   : > { %v1170_v35 = vmul.f32 %v2746_v23, %v2742_v53  ;;  %v1171_v6 = vmul.f32 %v2746_v23, %v2744_v54 }
 0xa31   : > { %v1172_v8 = vpack.c.bf16 %v1171_v6, %v1170_v35 }
 0xa33   : > { %1173 = vxpose.xlu0.c.b16.start.end [1/1] (short) (narrow) %v1172_v8, 64 }
 0xa48   : > { %1576 = vrot.lane.b32.xlu0 %v3068_v34, %s2793_s17 }
 0xa4c   : > { %1568 = vrot.lane.b32.xlu0 %v2889_v9, %s2793_s17 }
 0xa50   : > { %1827 = vrot.lane.b32.xlu0 %v3056_v36, %s2794_s20 }
 0xa54   : > { %1831 = vrot.lane.b32.xlu0 %v3064_v4, %s2794_s20  ;;  %v1328_v4 = vsel %vm416_vm1, %v1316_v10, 0 }
 0xa99   : > { %v1181_v11 = vpop.trf.xlu0 }
 0xa9a   : > { %2589 = vmatprep.mubr.msk.bf16.mxu1 %vm1192_vm3, %v1181_v11 }
 0xa9d   : > { %v1182_v14 = vpop.trf.xlu0 }
 0xa9e   : > { %2590 = vmatmul.mubr.msk.bf16.vlgmr.msra.gmra.mrb[16].mxu1 %vm1192_vm3, %v1182_v14 }
 0xa9f   : > { %2598 = vmatpush3.bf16.xpose.msra.mxu1 %v1325_v13 }
 0xaa0   : > { %2599 = vmatprep.subr.bf16.mxu1 %v2790_v0 }
 0xaa1   : > { %v1183_v9 = vpop.trf.xlu0 }
 0xaa2   : > { %2593 = vmatprep.mubr.msk.bf16.mxu1 %vm1192_vm3, %v1183_v9 }
 0xaa5   : > { %v1184_v36 = vpop.trf.xlu0 }
 0xaa6   : > { %2594 = vmatmul.mubr.msk.bf16.gmra.mrb[20].mxu1 %vm1192_vm3, %v1184_v36 }
 0xaa7   : > { %2600 = vmatpush3.bf16.xpose.msra.mxu1 %v1328_v4  ;;  %2605 = vmatprep.mubr.msk.bf16.mxu1 %vm2791_vm0, %v2790_v0 }
 0xaa8   : > { %2601 = vmatprep.subr.bf16.mxu1 %v2790_v0 }
 0xaaf   : > { %2602 = vmatpush3.bf16.xpose.msra.mxu1 %v1331_v7 }
 0xab0   : > { %2603 = vmatprep.subr.bf16.mxu1 %v2790_v0 }
 0xab7   : > { %2604 = vmatpush3.bf16.xpose.msra.mxu1 %v1334_v17  ;;  %v1573_v17 = vpop.permute.xlu1 %1572 }
 0xab8   : > { %2631 = vmatprep.subr.bf16.mxu1 %v1690_v19 }
 0xabb   : > { %v1575_v18 = vpop.permute.xlu1 %1574 }
 0xabe   : > { %2606 = vmatmul.mubr.msk.bf16.vlgmr.msra.gmra.mrb[24].mxu1 %vm416_vm1, %v1312_v20 }
 0xabf   : > { %2632 = vmatpush3.bf16.msra.mxu1 %v1690_v19 }
 0xac0   : > { %2641 = vmatprep.subr.bf16.mxu1 %v2790_v0 }
 0xb71   : > { %v2591_v21 = vpop.f32.mrb[16].mxu1 }
 0xb72   : > { %v2331_v22 = vpack.c.bf16 %v2591_v21, %v2591_v21  ;;  %v1239_v24 = vpop.f32.mrb[17].mxu1  ;;  %v1582_v21 = vsel %vm416_vm1, %v1571_v16, 0 }
 0xb73   : > { %v2329_v25 = vpack.c.bf16 %v1239_v24, %v1239_v24  ;;  %v2592_v26 = vpop.f32.mrb[18].mxu1  ;;  %v1588_v24 = vsel %vm416_vm1, %v1575_v18, 0 }
 0xb74   : > { %1305 = vst.msk [vmem:[%s3136_s11 + $0x8] sm:$0xf] %vm1302_vm4, %v2331_v22  ;;  %v2332_v1 = vpack.c.bf16 %v2592_v26, %v2592_v26  ;;  %v1242_v5 = vpop.f32.mrb[19].mxu1  ;;  %v1585_v22 = vsel %vm416_vm1, %v1573_v17, 0  ;;  %v1946_v26 = vld [vmem:[#allocation2 + $0x38] sm:$0xff] }
 0xb75   : > { %1303 = vst.msk [vmem:[%s3136_s11] sm:$0xf] %vm1302_vm4, %v2329_v25  ;;  %v2330_v27 = vpack.c.bf16 %v1242_v5, %v1242_v5  ;;  %v1577_v25 = vpop.permute.xlu0 %1576  ;;  %v1945_v5 = vld [vmem:[#allocation2 + $0x30] sm:$0xff] }
 0xb76   : > { %1306 = vst.msk [vmem:[%s3136_s11 + $0xc] sm:$0xf] %vm1302_vm4, %v2332_v1  ;;  %v1591_v1 = vsel %vm416_vm1, %v1577_v25, 0 }
 0xb77   : > { %1304 = vst.msk [vmem:[%s3136_s11 + $0x4] sm:$0xf] %vm1302_vm4, %v2330_v27  ;;  %v1947_v27 = vpack.c.bf16 %v1946_v26, %v1945_v5 }
 0xb79   : > { %v2595_v28 = vpop.f32.mrb[20].mxu1 }
 0xb7a   : > { %v2335_v29 = vpack.c.bf16 %v2595_v28, %v2595_v28  ;;  %v1255_v30 = vpop.f32.mrb[21].mxu1  ;;  %v1569_v28 = vpop.permute.xlu0 %1568 }
 0xb7b   : > { %v2333_v31 = vpack.c.bf16 %v1255_v30, %v1255_v30  ;;  %v2596_v32 = vpop.f32.mrb[22].mxu1 }
 0xb7c   : > { %1309 = vst.msk [vmem:[%s3136_s11 + $0x18] sm:$0xf] %vm1302_vm4, %v2335_v29  ;;  %v2336_v33 = vpack.c.bf16 %v2596_v32, %v2596_v32  ;;  %v1258_v37 = vpop.f32.mrb[23].mxu1 }
 0xb7d   : > { %1307 = vst.msk [vmem:[%s3136_s11 + $0x10] sm:$0xf] %vm1302_vm4, %v2333_v31  ;;  %v2334_v38 = vpack.c.bf16 %v1258_v37, %v1258_v37 }
 0xb7e   : > { %1310 = vst.msk [vmem:[%s3136_s11 + $0x1c] sm:$0xf] %vm1302_vm4, %v2336_v33 }
 0xb7f   : > { %1308 = vst.msk [vmem:[%s3136_s11 + $0x14] sm:$0xf] %vm1302_vm4, %v2334_v38 }
 0xb91   : > { %v1370_v41 = vpop.f32.mrb[24].mxu1 }
 0xb92   : > { %v1377_v42 = vmul.f32 0.35355338, %v1370_v41  ;;  %v2607_v43 = vpop.f32.mrb[25].mxu1 }
 0xb93   : > { %v1373_v45 = vpop.f32.mrb[26].mxu1 }
 0xb94   : > { %v1384_v46 = vadd.f32 %v2383_v40, %v1377_v42  ;;  %v1378_v47 = vmul.f32 0.35355338, %v1373_v45  ;;  %v2608_v48 = vpop.f32.mrb[27].mxu1  ;;  %v2397_v40 = vld [vmem:[%s3315_s5 + $0x10] sm:$0xff]  }
 0xb95   : > { %v2387_v41 = vunpack.c.l.bf16 %v2397_v40  ;;  %v2388_v45 = vunpack.c.h.bf16 %v2397_v40 }
 0xb96   : > { %v1385_v49 = vadd.f32 %v2384_v44, %v1378_v47  ;;  %v1386_v50 = vsel %vm481_vm2, %v1384_v46, -inf }
 0xb98   : > { %v1387_v51 = vsel %vm481_vm2, %v1385_v49, -inf }
 0xb99   : > { %v1388_v52 = vmax.f32 %v1386_v50, %v1387_v51 }
 0xb9b   : > { %v1389_v53 = vrot.slane %v1388_v52, 4 }
 0xb9d   : > { %v1390_v54 = vmax.f32 %v1388_v52, %v1389_v53 }
 0xb9f   : > { %v1391_v55 = vrot.slane %v1390_v54, 2 }
 0xba1   : > { %v1392_v56 = vmax.f32 %v1390_v54, %v1391_v55 }
 0xba3   : > { %v1393_v57 = vrot.slane %v1392_v56, 1 }
 0xba5   : > { %v1394_v58 = vmax.f32 %v1392_v56, %v1393_v57 }
 0xba7   : > { %v1395_v59 = vsub.f32 %v1384_v46, %v1394_v58  ;;  %v1396_v60 = vsub.f32 %v1385_v49, %v1394_v58 }
 0xba9   : > { %v1397_v61 = vmul.f32 1.442695, %v1395_v59  ;;  %v1399_v62 = vmul.f32 1.442695, %v1396_v60 }
 0xbab   : > { %2747 = vpow2.f32 %v1397_v61 }
 0xbac   : > { %2749 = vpow2.f32 %v1399_v62 }
 0xbb5   : > { %v2748_v63 = vpop.eup %2747 }
 0xbb6   : > { %v2750_v23 = vpop.eup %2749  ;;  %v1401_v35 = vsel %vm481_vm2, %v2748_v63, 0.0 }
 0xbb7   : > { %v1402_v6 = vsel %vm481_vm2, %v2750_v23, 0.0 }
 0xbb8   : > { %v1403_v8 = vadd.f32 %v1402_v6, %v1401_v35 }
 0xbba   : > { %v1404_v10 = vrot.slane %v1403_v8, 4 }
 0xbbc   : > { %v1405_v11 = vadd.f32 %v1404_v10, %v1403_v8 }
 0xbbe   : > { %v1406_v12 = vrot.slane %v1405_v11, 2 }
 0xbc0   : > { %v1407_v13 = vadd.f32 %v1406_v12, %v1405_v11 }
 0xbc2   : > { %v1408_v14 = vrot.slane %v1407_v13, 1 }
 0xbc4   : > { %v1409_v9 = vadd.f32 %v1408_v14, %v1407_v13 }
 0xbc6   : > { %2751 = vrcp.f32 %v1409_v9 }
 0xbd0   : > { %v2752_v36 = vpop.eup %2751 }
 0xbd1   : > { %v1411_v4 = vmul.f32 %v2752_v36, %v2748_v63  ;;  %v1412_v3 = vmul.f32 %v2752_v36, %v2750_v23 }
 0xbd3   : > { %v1413_v7 = vpack.c.bf16 %v1412_v3, %v1411_v4 }
 0xbd5   : > { %1414 = vxpose.xlu1.c.b16.start.end [1/1] (short) (narrow) %v1413_v7, 64 }
 0xbe5   : > { %1829 = vrot.lane.b32.xlu1 %v3060_v2, %s2794_s20 }
 0xbe9   : > { %1833 = vrot.lane.b32.xlu1 %v3068_v34, %s2794_s20 }
 0xbed   : > { %1825 = vrot.lane.b32.xlu1 %v2765_v15, %s2794_s20 }
 0xc3b   : > { %v1422_v19 = vpop.trf.xlu1 }
 0xc3c   : > { %2611 = vmatprep.mubr.msk.bf16.mxu0 %vm1192_vm3, %v1422_v19 }
 0xc3f   : > { %v1423_v20 = vpop.trf.xlu1 }
 0xc40   : > { %2612 = vmatmul.mubr.msk.bf16.vlgmr.msra.gmra.mrb[20].mxu0 %vm1192_vm3, %v1423_v20 }
 0xc41   : > { %2620 = vmatpush3.bf16.xpose.msra.mxu0 %v1582_v21 }
 0xc42   : > { %2621 = vmatprep.subr.bf16.mxu0 %v2790_v0 }
 0xc43   : > { %v1424_v2 = vpop.trf.xlu1 }
 0xc44   : > { %2615 = vmatprep.mubr.msk.bf16.mxu0 %vm1192_vm3, %v1424_v2  ;;  %v1828_v2 = vpop.permute.xlu0 %1827 }
 0xc45   : > { %v1839_v25 = vsel %vm416_vm1, %v1828_v2, 0 }
 0xc47   : > { %v1425_v34 = vpop.trf.xlu1 }
 0xc48   : > { %2616 = vmatmul.mubr.msk.bf16.gmra.mrb[24].mxu0 %vm1192_vm3, %v1425_v34  ;;  %v1832_v34 = vpop.permute.xlu0 %1831 }
 0xc49   : > { %2622 = vmatpush3.bf16.xpose.msra.mxu0 %v1585_v22  ;;  %2627 = vmatprep.mubr.msk.bf16.mxu0 %vm2791_vm0, %v2790_v0 }
 0xc4a   : > { %2623 = vmatprep.subr.bf16.mxu0 %v2790_v0 }
 0xc51   : > { %2624 = vmatpush3.bf16.xpose.msra.mxu0 %v1588_v24 }
 0xc52   : > { %2625 = vmatprep.subr.bf16.mxu0 %v2790_v0 }
 0xc57   : > { %v1830_v26 = vpop.permute.xlu1 %1829 }
 0xc58   : > { %v1842_v5 = vsel %vm416_vm1, %v1830_v26, 0 }
 0xc59   : > { %2626 = vmatpush3.bf16.xpose.msra.mxu0 %v1591_v1 }
 0xc5a   : > { %2653 = vmatprep.subr.bf16.mxu0 %v1947_v27 }
 0xc60   : > { %2628 = vmatmul.mubr.msk.bf16.vlgmr.msra.gmra.mrb[28].mxu0 %vm416_vm1, %v1569_v28  ;;  %v1845_v28 = vsel %vm416_vm1, %v1832_v34, 0 }
 0xc61   : > { %2654 = vmatpush3.bf16.msra.mxu0 %v1947_v27 }
 0xd13   : > { %v3181_v29 = vpop.f32.mrb[20].mxu0 }
 0xd14   : > { %v1480_v30 = vpop.f32.mrb[21].mxu0 }
 0xd15   : > { %v2614_v31 = vpop.f32.mrb[22].mxu0  ;;  %v2337_v16 = vpack.c.bf16 %v1480_v30, %v1480_v30  ;;  %v1834_v30 = vpop.permute.xlu1 %1833 }
 0xd16   : > { %v1483_v32 = vpop.f32.mrb[23].mxu0  ;;  %v2340_v18 = vpack.c.bf16 %v2614_v31, %v2614_v31  ;;  %v1848_v31 = vsel %vm416_vm1, %v1834_v30, 0 }
 0xd17   : > { %v2338_v17 = vpack.c.bf16 %v1483_v32, %v1483_v32 }
 0xd1b   : > { %v2617_v33 = vpop.f32.mrb[24].mxu0 }
 0xd1c   : > { %v1496_v37 = vpop.f32.mrb[25].mxu0  ;;  %v2343_v21 = vpack.c.bf16 %v2617_v33, %v2617_v33  ;;  %v1826_v33 = vpop.permute.xlu1 %1825 }
 0xd1d   : > { %v3183_v38 = vpop.f32.mrb[26].mxu0  ;;  %v2341_v19 = vpack.c.bf16 %v1496_v37, %v1496_v37 }
 0xd1e   : > { %v1499_v39 = vpop.f32.mrb[27].mxu0 }
 0xd1f   : > { %v2342_v20 = vpack.c.bf16 %v1499_v39, %v1499_v39 }
 0xd33   : > { %v1627_v42 = vpop.f32.mrb[28].mxu0 }
 0xd34   : > { %v1634_v43 = vmul.f32 0.35355338, %v1627_v42  ;;  %v2629_v44 = vpop.f32.mrb[29].mxu0 }
 0xd35   : > { %v1630_v46 = vpop.f32.mrb[30].mxu0 }
 0xd36   : > { %v1641_v47 = vadd.f32 %v2387_v41, %v1634_v43  ;;  %v1635_v48 = vmul.f32 0.35355338, %v1630_v46  ;;  %v2630_v49 = vpop.f32.mrb[31].mxu0 }
 0xd38   : > { %v1642_v50 = vadd.f32 %v2388_v45, %v1635_v48  ;;  %v1643_v51 = vsel %vm481_vm2, %v1641_v47, -inf }
 0xd3a   : > { %v1644_v52 = vsel %vm481_vm2, %v1642_v50, -inf }
 0xd3b   : > { %v1645_v53 = vmax.f32 %v1643_v51, %v1644_v52 }
 0xd3d   : > { %v1646_v54 = vrot.slane %v1645_v53, 4 }
 0xd3f   : > { %v1647_v55 = vmax.f32 %v1645_v53, %v1646_v54  ;;  %v2398_v54 = vld [vmem:[%s3315_s5 + $0x18] sm:$0xff]  }
 0xd41   : > { %v1648_v56 = vrot.slane %v1647_v55, 2 }
 0xd43   : > { %v1649_v57 = vmax.f32 %v1647_v55, %v1648_v56  ;;  %v2391_v55 = vunpack.c.l.bf16 %v2398_v54 }
 0xd45   : > { %v1650_v58 = vrot.slane %v1649_v57, 1 }
 0xd47   : > { %v1651_v59 = vmax.f32 %v1649_v57, %v1650_v58 }
 0xd49   : > { %v1652_v60 = vsub.f32 %v1641_v47, %v1651_v59  ;;  %v1653_v61 = vsub.f32 %v1642_v50, %v1651_v59  ;;  %v2392_v59 = vunpack.c.h.bf16 %v2398_v54 }
 0xd4b   : > { %v1654_v62 = vmul.f32 1.442695, %v1652_v60  ;;  %v1656_v63 = vmul.f32 1.442695, %v1653_v61 }
 0xd4d   : > { %2753 = vpow2.f32 %v1654_v62 }
 0xd4e   : > { %2755 = vpow2.f32 %v1656_v63 }
 0xd57   : > { %v2754_v23 = vpop.eup %2753 }
 0xd58   : > { %v2756_v35 = vpop.eup %2755  ;;  %v1658_v6 = vsel %vm481_vm2, %v2754_v23, 0.0 }
 0xd59   : > { %v1659_v8 = vsel %vm481_vm2, %v2756_v35, 0.0 }
 0xd5a   : > { %v1660_v10 = vadd.f32 %v1659_v8, %v1658_v6 }
 0xd5c   : > { %v1661_v11 = vrot.slane %v1660_v10, 4 }
 0xd5e   : > { %v1662_v12 = vadd.f32 %v1661_v11, %v1660_v10 }
 0xd60   : > { %v1663_v13 = vrot.slane %v1662_v12, 2 }
 0xd62   : > { %v1664_v14 = vadd.f32 %v1663_v13, %v1662_v12 }
 0xd64   : > { %v1665_v9 = vrot.slane %v1664_v14, 1 }
 0xd66   : > { %v1666_v36 = vadd.f32 %v1665_v9, %v1664_v14 }
 0xd68   : > { %2757 = vrcp.f32 %v1666_v36 }
 0xd72   : > { %v2758_v4 = vpop.eup %2757 }
 0xd73   : > { %v1668_v3 = vmul.f32 %v2758_v4, %v2754_v23  ;;  %v1669_v7 = vmul.f32 %v2758_v4, %v2756_v35 }
 0xd75   : > { %v1670_v15 = vpack.c.bf16 %v1669_v7, %v1668_v3 }
 0xd77   : > { %1671 = vxpose.xlu0.c.b16.start.end [1/1] (short) (narrow) %v1670_v15, 64 }
 0xd8c   : > { %1535 = vrot.lane.b32.xlu0 %v2337_v16, %s2795_s14 }
 0xd90   : > { %1537 = vrot.lane.b32.xlu0 %v2338_v17, %s2795_s14 }
 0xd94   : > { %1541 = vrot.lane.b32.xlu0 %v2340_v18, %s2795_s14 }
 0xd98   : > { %1543 = vrot.lane.b32.xlu0 %v2341_v19, %s2795_s14 }
 0xd9c   : > { %1545 = vrot.lane.b32.xlu0 %v2342_v20, %s2795_s14 }
 0xda0   : > { %1547 = vrot.lane.b32.xlu0 %v2343_v21, %s2795_s14 }
 0xddd   : > { %v1679_v22 = vpop.trf.xlu0 }
 0xdde   : > { %2633 = vmatprep.mubr.msk.bf16.mxu1 %vm1192_vm3, %v1679_v22 }
 0xde1   : > { %v1680_v24 = vpop.trf.xlu0 }
 0xde2   : > { %2634 = vmatmul.mubr.msk.bf16.vlgmr.msra.gmra.mrb[28].mxu1 %vm1192_vm3, %v1680_v24 }
 0xde3   : > { %2642 = vmatpush3.bf16.xpose.msra.mxu1 %v1839_v25 }
 0xde4   : > { %2643 = vmatprep.subr.bf16.mxu1 %v2790_v0 }
 0xde5   : > { %v1681_v1 = vpop.trf.xlu0 }
 0xde6   : > { %2637 = vmatprep.mubr.msk.bf16.mxu1 %vm1192_vm3, %v1681_v1 }
 0xde9   : > { %v1682_v27 = vpop.trf.xlu0 }
 0xdea   : > { %2638 = vmatmul.mubr.msk.bf16.gmra.mrb[32].mxu1 %vm1192_vm3, %v1682_v27  ;;  %v2339_v27 = vpack.c.bf16 %v3181_v29, %v3181_v29 }
 0xdeb   : > { %2644 = vmatpush3.bf16.xpose.msra.mxu1 %v1842_v5  ;;  %2649 = vmatprep.mubr.msk.bf16.mxu1 %vm2791_vm0, %v2790_v0 }
 0xdec   : > { %2645 = vmatprep.subr.bf16.mxu1 %v2790_v0 }
 0xdf3   : > { %2646 = vmatpush3.bf16.xpose.msra.mxu1 %v1845_v28  ;;  %v2344_v28 = vpack.c.bf16 %v3183_v38, %v3183_v38 }
 0xdf4   : > { %2647 = vmatprep.subr.bf16.mxu1 %v2790_v0 }
 0xdfb   : > { %2648 = vmatpush3.bf16.xpose.msra.mxu1 %v1848_v31 }
 0xdfe   : > { %v1536_v32 = vpop.permute.xlu0 %1535 }
 0xdff   : > { %1560 = vst.msk [vmem:[%s3136_s11] sm:$0xf] %vm1559_vm5, %v1536_v32 }
 0xe02   : > { %2650 = vmatmul.mubr.msk.bf16.vlgmr.msra.gmra.mrb[36].mxu1 %vm416_vm1, %v1826_v33  ;;  %v1538_v37 = vpop.permute.xlu0 %1537 }
 0xe03   : > { %1561 = vst.msk [vmem:[%s3136_s11 + $0x4] sm:$0xf] %vm1559_vm5, %v1538_v37 }
 0xe06   : > { %v1542_v39 = vpop.permute.xlu0 %1541 }
 0xe07   : > { %1563 = vst.msk [vmem:[%s3136_s11 + $0xc] sm:$0xf] %vm1559_vm5, %v1542_v39 }
 0xe0a   : > { %v1544_v0 = vpop.permute.xlu0 %1543 }
 0xe0b   : > { %1564 = vst.msk [vmem:[%s3136_s11 + $0x10] sm:$0xf] %vm1559_vm5, %v1544_v0 }
 0xe0e   : > { %v1546_v40 = vpop.permute.xlu0 %1545 }
 0xe0f   : > { %1565 = vst.msk [vmem:[%s3136_s11 + $0x14] sm:$0xf] %vm1559_vm5, %v1546_v40 }
 0xe12   : > { %v1548_v41 = vpop.permute.xlu0 %1547 }
 0xe13   : > { %1566 = vst.msk [vmem:[%s3136_s11 + $0x18] sm:$0xf] %vm1559_vm5, %v1548_v41 }
 0xeb5   : > { %v2635_v42 = vpop.f32.mrb[28].mxu1 }
 0xeb6   : > { %v1737_v43 = vpop.f32.mrb[29].mxu1  ;;  %v2347_v47 = vpack.c.bf16 %v2635_v42, %v2635_v42 }
 0xeb7   : > { %v2345_v44 = vpack.c.bf16 %v1737_v43, %v1737_v43  ;;  %v3224_v45 = vpop.f32.mrb[30].mxu1 }
 0xeb8   : > { %v3226_v46 = vpop.f32.mrb[31].mxu1  ;;  %v2348_v29 = vpack.c.bf16 %v3224_v45, %v3224_v45 }
 0xeb9   : > { %1792 = vrot.lane.b32.xlu0 %v2345_v44, %s2796_s15  ;;  %v2346_v31 = vpack.c.bf16 %v3226_v46, %v3226_v46 }
 0xebd   : > { %1796 = vrot.lane.b32.xlu0 %v2347_v47, %s2796_s15  ;;  %v2639_v48 = vpop.f32.mrb[32].mxu1 }
 0xebe   : > { %v1753_v49 = vpop.f32.mrb[33].mxu1  ;;  %v2351_v53 = vpack.c.bf16 %v2639_v48, %v2639_v48 }
 0xebf   : > { %v2349_v50 = vpack.c.bf16 %v1753_v49, %v1753_v49  ;;  %v3230_v51 = vpop.f32.mrb[34].mxu1 }
 0xec0   : > { %v3232_v52 = vpop.f32.mrb[35].mxu1  ;;  %v2352_v39 = vpack.c.bf16 %v3230_v51, %v3230_v51 }
 0xec1   : > { %1800 = vrot.lane.b32.xlu0 %v2349_v50, %s2796_s15  ;;  %v2350_v38 = vpack.c.bf16 %v3232_v52, %v3232_v52 }
 0xec5   : > { %1804 = vrot.lane.b32.xlu0 %v2351_v53, %s2796_s15 }
 0xed5   : > { %v1884_v56 = vpop.f32.mrb[36].mxu1 }
 0xed6   : > { %v1891_v57 = vmul.f32 0.35355338, %v1884_v56  ;;  %v2651_v58 = vpop.f32.mrb[37].mxu1 }
 0xed7   : > { %v1887_v60 = vpop.f32.mrb[38].mxu1 }
 0xed8   : > { %v1898_v61 = vadd.f32 %v2391_v55, %v1891_v57  ;;  %v1892_v62 = vmul.f32 0.35355338, %v1887_v60  ;;  %v2652_v63 = vpop.f32.mrb[39].mxu1 }
 0xeda   : > { %v1899_v23 = vadd.f32 %v2392_v59, %v1892_v62  ;;  %v1900_v35 = vsel %vm481_vm2, %v1898_v61, -inf }
 0xedc   : > { %v1901_v6 = vsel %vm481_vm2, %v1899_v23, -inf }
 0xedd   : > { %v1902_v8 = vmax.f32 %v1900_v35, %v1901_v6 }
 0xedf   : > { %v1903_v10 = vrot.slane %v1902_v8, 4 }
 0xee1   : > { %v1904_v11 = vmax.f32 %v1902_v8, %v1903_v10 }
 0xee3   : > { %v1905_v12 = vrot.slane %v1904_v11, 2 }
 0xee5   : > { %v1906_v13 = vmax.f32 %v1904_v11, %v1905_v12 }
 0xee7   : > { %v1907_v14 = vrot.slane %v1906_v13, 1 }
 0xee9   : > { %v1908_v9 = vmax.f32 %v1906_v13, %v1907_v14 }
 0xeeb   : > { %v1909_v36 = vsub.f32 %v1898_v61, %v1908_v9  ;;  %v1910_v4 = vsub.f32 %v1899_v23, %v1908_v9 }
 0xeed   : > { %v1911_v3 = vmul.f32 1.442695, %v1909_v36  ;;  %v1913_v7 = vmul.f32 1.442695, %v1910_v4 }
 0xeef   : > { %2759 = vpow2.f32 %v1911_v3 }
 0xef0   : > { %2761 = vpow2.f32 %v1913_v7 }
 0xef9   : > { %v2760_v15 = vpop.eup %2759 }
 0xefa   : > { %v2762_v16 = vpop.eup %2761  ;;  %v1915_v17 = vsel %vm481_vm2, %v2760_v15, 0.0 }
 0xefb   : > { %v1916_v18 = vsel %vm481_vm2, %v2762_v16, 0.0 }
 0xefc   : > { %v1917_v19 = vadd.f32 %v1916_v18, %v1915_v17 }
 0xefe   : > { %v1918_v20 = vrot.slane %v1917_v19, 4 }
 0xf00   : > { %v1919_v21 = vadd.f32 %v1918_v20, %v1917_v19 }
 0xf02   : > { %v1920_v2 = vrot.slane %v1919_v21, 2 }
 0xf04   : > { %v1921_v34 = vadd.f32 %v1920_v2, %v1919_v21 }
 0xf06   : > { %v1922_v22 = vrot.slane %v1921_v34, 1 }
 0xf08   : > { %v1923_v24 = vadd.f32 %v1922_v22, %v1921_v34 }
 0xf0a   : > { %2763 = vrcp.f32 %v1923_v24 }
 0xf14   : > { %v2764_v25 = vpop.eup %2763 }
 0xf15   : > { %v1925_v26 = vmul.f32 %v2764_v25, %v2760_v15  ;;  %v1926_v1 = vmul.f32 %v2764_v25, %v2762_v16 }
 0xf17   : > { %v1927_v5 = vpack.c.bf16 %v1926_v1, %v1925_v26 }
 0xf19   : > { %1928 = vxpose.xlu1.c.b16.start.end [1/1] (short) (narrow) %v1927_v5, 64 }
 0xf29   : > { %1539 = vrot.lane.b32.xlu1 %v2339_v27, %s2795_s14 }
 0xf2b   : > { %v1793_v30 = vpop.permute.xlu0 %1792 }
 0xf2c   : > { %1817 = vst.msk [vmem:[%s3136_s11] sm:$0xf] %vm1816_vm6, %v1793_v30 }
 0xf2d   : > { %1549 = vrot.lane.b32.xlu1 %v2344_v28, %s2795_s14 }
 0xf2f   : > { %v1797_v32 = vpop.permute.xlu0 %1796 }
 0xf31   : > { %1794 = vrot.lane.b32.xlu1 %v2346_v31, %s2796_s15 }
 0xf33   : > { %v1801_v33 = vpop.permute.xlu0 %1800 }
 0xf34   : > { %1821 = vst.msk [vmem:[%s3136_s11 + $0x10] sm:$0xf] %vm1816_vm6, %v1801_v33 }
 0xf35   : > { %1798 = vrot.lane.b32.xlu1 %v2348_v29, %s2796_s15 }
 0xf37   : > { %v1805_v37 = vpop.permute.xlu0 %1804 }
 0xf38   : > { %1823 = vst.msk [vmem:[%s3136_s11 + $0x18] sm:$0xf] %vm1816_vm6, %v1805_v37 }
 0xf39   : > { %1802 = vrot.lane.b32.xlu1 %v2350_v38, %s2796_s15 }
 0xf3d   : > { %1806 = vrot.lane.b32.xlu1 %v2352_v39, %s2796_s15 }
 0xf7f   : > { %v1936_v0 = vpop.trf.xlu1 }
 0xf80   : > { %2655 = vmatprep.mubr.msk.bf16.mxu0 %vm1192_vm3, %v1936_v0 }
 0xf83   : > { %v1937_v40 = vpop.trf.xlu1 }
 0xf84   : > { %2656 = vmatmul.mubr.msk.bf16.vlgmr.msra.gmra.mrb[32].mxu0 %vm1192_vm3, %v1937_v40 }
 0xf87   : > { %v1938_v41 = vpop.trf.xlu1 }
 0xf88   : > { %2659 = vmatprep.mubr.msk.bf16.mxu0 %vm1192_vm3, %v1938_v41 }
 0xf8b   : > { %v1939_v42 = vpop.trf.xlu1 }
 0xf8c   : > { %2660 = vmatmul.mubr.msk.bf16.gmra.mrb[36].mxu0 %vm1192_vm3, %v1939_v42 }
 0xf9b   : > { %v1540_v43 = vpop.permute.xlu1 %1539 }
 0xf9c   : > { %1562 = vst.msk [vmem:[%s3136_s11 + $0x8] sm:$0xf] %vm1559_vm5, %v1540_v43 }
 0xf9d   : > { %1819 = vst.msk [vmem:[%s3136_s11 + $0x8] sm:$0xf] %vm1816_vm6, %v1797_v32 }
 0xf9f   : > { %v1550_v44 = vpop.permute.xlu1 %1549 }
 0xfa0   : > { %1567 = vst.msk [vmem:[%s3136_s11 + $0x1c] sm:$0xf] %vm1559_vm5, %v1550_v44 }
 0xfa3   : > { %v1795_v45 = vpop.permute.xlu1 %1794 }
 0xfa4   : > { %1818 = vst.msk [vmem:[%s3136_s11 + $0x4] sm:$0xf] %vm1816_vm6, %v1795_v45 }
 0xfa7   : > { %v1799_v46 = vpop.permute.xlu1 %1798 }
 0xfa8   : > { %1820 = vst.msk [vmem:[%s3136_s11 + $0xc] sm:$0xf] %vm1816_vm6, %v1799_v46 }
 0xfab   : > { %v1803_v47 = vpop.permute.xlu1 %1802 }
 0xfac   : > { %1822 = vst.msk [vmem:[%s3136_s11 + $0x14] sm:$0xf] %vm1816_vm6, %v1803_v47 }
 0xfaf   : > { %v1807_v48 = vpop.permute.xlu1 %1806 }
 0xfb0   : > { %1824 = vst.msk [vmem:[%s3136_s11 + $0x1c] sm:$0xf] %vm1816_vm6, %v1807_v48 }
0x1057   : > { %v2657_v49 = vpop.f32.mrb[32].mxu0 }
0x1058   : > { %v2355_v50 = vpack.c.bf16 %v2657_v49, %v2657_v49  ;;  %v1994_v51 = vpop.f32.mrb[33].mxu0 }
0x1059   : > { %v2658_v52 = vpop.f32.mrb[34].mxu0  ;;  %v2353_v55 = vpack.c.bf16 %v1994_v51, %v1994_v51 }
0x105a   : > { %v2356_v53 = vpack.c.bf16 %v2658_v52, %v2658_v52  ;;  %v1997_v54 = vpop.f32.mrb[35].mxu0  ;;  %2053 = vrot.lane.b32.xlu0 %v2355_v50, %s2797_s18 }
0x105b   : > { %v2354_v56 = vpack.c.bf16 %v1997_v54, %v1997_v54 }
0x105c   : > { %2055 = vrot.lane.b32.xlu1 %v2356_v53, %s2797_s18 }
0x105e   : > { %2049 = vrot.lane.b32.xlu0 %v2353_v55, %s2797_s18 }
0x105f   : > { %v2661_v57 = vpop.f32.mrb[36].mxu0 }
0x1060   : > { %2051 = vrot.lane.b32.xlu1 %v2354_v56, %s2797_s18  ;;  %v2010_v58 = vpop.f32.mrb[37].mxu0  ;;  %v2359_v63 = vpack.c.bf16 %v2661_v57, %v2661_v57 }
0x1061   : > { %v2357_v59 = vpack.c.bf16 %v2010_v58, %v2010_v58  ;;  %v2662_v60 = vpop.f32.mrb[38].mxu0 }
0x1062   : > { %v2013_v61 = vpop.f32.mrb[39].mxu0  ;;  %v2360_v23 = vpack.c.bf16 %v2662_v60, %v2662_v60 }
0x1063   : > { %v2358_v62 = vpack.c.bf16 %v2013_v61, %v2013_v61  ;;  %2057 = vrot.lane.b32.xlu0 %v2357_v59, %s2797_s18 }
0x1065   : > { %2059 = vrot.lane.b32.xlu1 %v2358_v62, %s2797_s18 }
0x1067   : > { %2061 = vrot.lane.b32.xlu0 %v2359_v63, %s2797_s18 }
0x1069   : > { %2063 = vrot.lane.b32.xlu1 %v2360_v23, %s2797_s18 }
0x10cc   : > { %v2054_v35 = vpop.permute.xlu0 %2053 }
0x10cd   : > { %2076 = vst.msk [vmem:[%s3136_s11 + $0x8] sm:$0xf] %vm2073_vm7, %v2054_v35 }
0x10ce   : > { %v2056_v6 = vpop.permute.xlu1 %2055 }
0x10cf   : > { %2077 = vst.msk [vmem:[%s3136_s11 + $0xc] sm:$0xf] %vm2073_vm7, %v2056_v6 }
0x10d0   : > { %v2050_v8 = vpop.permute.xlu0 %2049 }
0x10d1   : > { %2074 = vst.msk [vmem:[%s3136_s11] sm:$0xf] %vm2073_vm7, %v2050_v8 }
0x10d2   : > { %v2052_v10 = vpop.permute.xlu1 %2051 }
0x10d3   : > { %2075 = vst.msk [vmem:[%s3136_s11 + $0x4] sm:$0xf] %vm2073_vm7, %v2052_v10 }
0x10d5   : > { %v2058_v11 = vpop.permute.xlu0 %2057 }
0x10d6   : > { %2078 = vst.msk [vmem:[%s3136_s11 + $0x10] sm:$0xf] %vm2073_vm7, %v2058_v11 }
0x10d7   : > { %v2060_v12 = vpop.permute.xlu1 %2059 }
0x10d8   : > { %2079 = vst.msk [vmem:[%s3136_s11 + $0x14] sm:$0xf] %vm2073_vm7, %v2060_v12 }
0x10d9   : > { %v2062_v13 = vpop.permute.xlu0 %2061 }
0x10da   : > { %2080 = vst.msk [vmem:[%s3136_s11 + $0x18] sm:$0xf] %vm2073_vm7, %v2062_v13 }
0x10db   : > { %v2064_v14 = vpop.permute.xlu1 %2063 }
0x10dc   : > { %2081 = vst.msk [vmem:[%s3136_s11 + $0x1c] sm:$0xf] %vm2073_vm7, %v2064_v14 }
0x10dd PF: > { %s16_s23 = sadd.s32 1, %s2788_s23   ;;  %s3317_s21 = smov %s2784_s22 }
0x10de   : > { %p13_p5 = scmp.ge.s32.totalorder %s16_s23, 4   ;;  %s3318_s22 = smov %s3320_s24 }
0x10e0   :  { %15 = sbr.rel (!%p13_p5) target bundleno = 2 (0x2), region = 102 }

</bundles_post_ra>
